<compile_context>
chip_gen: v7x
topology: tpu7x:2x2x1
jax: 0.10.0
libtpu: 0.0.40
codegen_flags: <defaults>
</compile_context>

<pallas_src>
import functools

import jax
import jax.numpy as jnp
from jax.experimental import pallas as pl
from jax.experimental.pallas import tpu as pltpu


# ----------------------------------------------------------------------------
# Tile-size selection
# ----------------------------------------------------------------------------

_TH_CANDIDATES = (512, 384, 256, 192, 128, 96, 64, 48, 32, 16, 8)


def _vmem_capacity_bytes():
    try:
        return int(pltpu.get_tpu_info().vmem_capacity_bytes)
    except Exception:
        return 64 * 1024 * 1024  # conservative (v7x-sized) fallback


def _choose_tile_h(B, C, H, W, in_itemsize, use_ssim):
    """Tile height from a total-live-VMEM model, with a v7x-aware budget and a
    preference for >= 8 grid steps (keeps both v7x TensorCores busy)."""
    cap = _vmem_capacity_bytes()
    budget = (30 if cap <= 64 * 1024 * 1024 else 40) * 1024 * 1024

    def fits(th):
        # f32 intermediates live inside the kernel (planes of [C, th, W]):
        #   SSIM path ~13 planes (5 box slabs + p/t + ssim temporaries),
        #   L1 path   ~4 planes.
        live_f32 = (13 if use_ssim else 4) * C * th * W * 4
        dma = 2 * 2 * C * th * W * in_itemsize        # 2 inputs, double-buffered
        dma += 2 * th * W * 4                         # output, double-buffered
        if use_ssim:
            dma += 2 * 4 * C * W * in_itemsize        # merged halo block
        return live_f32 + dma <= budget

    cands = [th for th in _TH_CANDIDATES if th <= max(H, 8)]
    if in_itemsize < 4:  # bf16 packs (16,128) per vreg: keep TH a 16-multiple
        cands = [th for th in cands if th % 16 == 0] or cands
    fitting = [th for th in cands if fits(th)] or [cands[-1]]

    # Prefer the largest fitting tile that still yields >= 8 grid steps
    # (without dropping below 64 rows); otherwise just take the largest.
    for th in fitting:
        if th >= 64 and B * pl.cdiv(H, th) >= 8:
            return th
    return fitting[0]


# ----------------------------------------------------------------------------
# In-kernel helpers
# ----------------------------------------------------------------------------

def _hsum3(x, W):
    """Horizontal 3-tap sum with zero padding: out[..., c] = x[c-1]+x[c]+x[c+1]."""
    if W % 128 == 0:
        # Lane rotations run on the XLU; zero-mask the wrapped edge columns.
        col = jax.lax.broadcasted_iota(jnp.int32, x.shape, x.ndim - 1)
        left = jnp.where(col == 0, 0.0, pltpu.roll(x, 1, x.ndim - 1))
        right = jnp.where(col == W - 1, 0.0, pltpu.roll(x, W - 1, x.ndim - 1))
        return x + left + right
    # Small / unaligned W: lane layout is padded anyway; zero-column concat.
    zcol = jnp.zeros(x.shape[:-1] + (1,), x.dtype)
    xp = jnp.concatenate([zcol, x, zcol], axis=-1)
    return xp[..., 0:W] + xp[..., 1:W + 1] + xp[..., 2:W + 2]


def _ssim_channel_mean(box):
    """SSIM loss from the five box-filtered stats; mean over channel axis 0."""
    mu1, mu2, e_pp, e_tt, e_pt = box
    c1 = 0.01 ** 2
    c2 = 0.03 ** 2
    mu1_sq = mu1 * mu1
    mu2_sq = mu2 * mu2
    mu1_mu2 = mu1 * mu2
    sigma1_sq = e_pp - mu1_sq
    sigma2_sq = e_tt - mu2_sq
    sigma12 = e_pt - mu1_mu2
    num = (2.0 * mu1_mu2 + c1) * (2.0 * sigma12 + c2)
    den = (mu1_sq + mu2_sq + c1) * (sigma1_sq + sigma2_sq + c2)
    ssim = num * pl.reciprocal(den + 1e-7, approx=False)
    loss = jnp.clip((1.0 - ssim) * 0.5, 0.0, 1.0)
    return jnp.mean(loss, axis=0)


# ----------------------------------------------------------------------------
# Kernels
# ----------------------------------------------------------------------------

def _reprojection_ssim_kernel(pred_ref, target_ref, halo_ref, out_ref):
    # pred_ref / target_ref : [1, C, TH, W]   (current H-tile)
    # halo_ref              : [1, 1, 4, C, W] (pred-top, pred-bot, target-top,
    #                                          target-bot rows; zeros at border)
    # out_ref               : [1, 1, TH, W]
    p = pred_ref[0].astype(jnp.float32)            # [C, TH, W]
    t = target_ref[0].astype(jnp.float32)
    C, TH, W = p.shape

    halo = halo_ref[0, 0].astype(jnp.float32)      # [4, C, W]
    p_top = halo[0][:, None, :]                    # [C, 1, W]
    p_bot = halo[1][:, None, :]
    t_top = halo[2][:, None, :]
    t_bot = halo[3][:, None, :]

    # ---- L1 term -----------------------------------------------------------
    l1 = jnp.mean(jnp.abs(t - p), axis=0)          # [TH, W]

    # ---- SSIM term: separable 3x3 box filter on five quantities -------------
    inv9 = 1.0 / 9.0
    box_mid, box_top, box_bot = [], [], []
    for q, q_top, q_bot in (
        (p, p_top, p_bot),
        (t, t_top, t_bot),
        (p * p, p_top * p_top, p_bot * p_bot),
        (t * t, t_top * t_top, t_bot * t_bot),
        (p * t, p_top * t_top, p_bot * t_bot),
    ):
        h = _hsum3(q, W)                            # [C, TH, W]
        ht = _hsum3(q_top, W)                       # [C, 1, W]
        hb = _hsum3(q_bot, W)
        # Vertical 3-tap via sublane rolls. Rows 0 and TH-1 pick up wrapped
        # rows; they are recomputed exactly below (so the wrap direction of
        # the rotation is irrelevant for correctness).
        v = h + pltpu.roll(h, 1, 1) + pltpu.roll(h, TH - 1, 1)
        box_mid.append(v * inv9)
        box_top.append((ht + h[:, 0:1, :] + h[:, 1:2, :]) * inv9)
        box_bot.append((h[:, TH - 2:TH - 1, :] + h[:, TH - 1:TH, :] + hb) * inv9)

    ssim_mid = _ssim_channel_mean(box_mid)          # [TH, W]
    ssim_top = _ssim_channel_mean(box_top)          # [1, W]
    ssim_bot = _ssim_channel_mean(box_bot)          # [1, W]

    out_ref[0, 0] = 0.85 * ssim_mid + 0.15 * l1
    out_ref[0, 0, 0:1, :] = 0.85 * ssim_top + 0.15 * l1[0:1, :]
    out_ref[0, 0, TH - 1:TH, :] = 0.85 * ssim_bot + 0.15 * l1[TH - 1:TH, :]


def _l1_kernel(pred_ref, target_ref, out_ref):
    p = pred_ref[0].astype(jnp.float32)
    t = target_ref[0].astype(jnp.float32)
    out_ref[0, 0] = jnp.mean(jnp.abs(t - p), axis=0)


# ----------------------------------------------------------------------------
# Wrapper
# ----------------------------------------------------------------------------

def _build_halo(pred, target, TH):
    """Per-tile halo rows merged into one tensor: [B, n_h, 4, C, W] with planes
    (pred-top, pred-bot, target-top, target-bot); zeros at the image border."""
    B, C, H, W = pred.shape

    def rows(x):
        zero = jnp.zeros((B, C, 1, W), x.dtype)
        top = jnp.concatenate([zero, x[:, :, TH - 1:H - 1:TH, :]], axis=2)  # [B,C,n_h,W]
        bot = jnp.concatenate([x[:, :, TH:H:TH, :], zero], axis=2)
        return top, bot

    p_top, p_bot = rows(pred)
    t_top, t_bot = rows(target)
    halo = jnp.stack([p_top, p_bot, t_top, t_bot], axis=0)    # [4, B, C, n_h, W]
    return jnp.transpose(halo, (1, 3, 0, 2, 4))               # [B, n_h, 4, C, W]


@functools.partial(jax.jit, static_argnames=("use_ssim",))
def reprojection_loss(pred, target, use_ssim=True):
    """pred, target: [B, C, H, W] (f32 or bf16)  ->  [B, 1, H, W] float32."""
    B, C, H, W = pred.shape
    in_itemsize = jnp.dtype(pred.dtype).itemsize
    TH = _choose_tile_h(B, C, H, W, in_itemsize, use_ssim)

    H_pad = int(pl.cdiv(H, TH)) * TH
    if H_pad != H:
        pad = ((0, 0), (0, 0), (0, H_pad - H), (0, 0))
        pred_p = jnp.pad(pred, pad)       # zero rows == the conv's zero padding
        target_p = jnp.pad(target, pad)
    else:
        pred_p, target_p = pred, target
    n_h = H_pad // TH

    grid = (B, n_h)
    img_spec = pl.BlockSpec((1, C, TH, W), lambda b, i: (b, 0, i, 0))
    out_spec = pl.BlockSpec((1, 1, TH, W), lambda b, i: (b, 0, i, 0))
    compiler_params = pltpu.CompilerParams(
        dimension_semantics=("parallel", "parallel"),
        vmem_limit_bytes=48 * 1024 * 1024,
    )

    if not use_ssim:
        out = pl.pallas_call(
            _l1_kernel,
            out_shape=jax.ShapeDtypeStruct((B, 1, H_pad, W), jnp.float32),
            grid=grid,
            in_specs=[img_spec, img_spec],
            out_specs=out_spec,
            compiler_params=compiler_params,
        )(pred_p, target_p)
        return out[:, :, :H, :] if H_pad != H else out

    halo = _build_halo(pred_p, target_p, TH)              # [B, n_h, 4, C, W]
    halo_spec = pl.BlockSpec((1, 1, 4, C, W), lambda b, i: (b, i, 0, 0, 0))

    out = pl.pallas_call(
        _reprojection_ssim_kernel,
        out_shape=jax.ShapeDtypeStruct((B, 1, H_pad, W), jnp.float32),
        grid=grid,
        in_specs=[img_spec, img_spec, halo_spec],
        out_specs=out_spec,
        compiler_params=compiler_params,
    )(pred_p, target_p, halo)
    return out[:, :, :H, :] if H_pad != H else out


# ----------------------------------------------------------------------------
# Pure-JAX reference (mirrors the PyTorch module)
# ----------------------------------------------------------------------------

def _reference(pred, target, use_ssim=True):
    def box(x):
        H, W = x.shape[2], x.shape[3]
        xp = jnp.pad(x, ((0, 0), (0, 0), (1, 1), (1, 1)))
        s = jnp.zeros_like(x)
        for dy in range(3):
            for dx in range(3):
                s = s + xp[:, :, dy:dy + H, dx:dx + W]
        return s / 9.0

    l1 = jnp.mean(jnp.abs(target - pred), axis=1, keepdims=True)
    if not use_ssim:
        return l1
    C1, C2 = 0.01 ** 2, 0.03 ** 2
    mu1, mu2 = box(pred), box(target)
    s1 = box(pred * pred) - mu1 ** 2
    s2 = box(target * target) - mu2 ** 2
    s12 = box(pred * target) - mu1 * mu2
    ssim = ((2 * mu1 * mu2 + C1) * (2 * s12 + C2)) / (
        ((mu1 ** 2 + mu2 ** 2 + C1) * (s1 + s2 + C2)) + 1e-7)
    ssim_loss = jnp.clip((1 - ssim) / 2, 0.0, 1.0).mean(axis=1, keepdims=True)
    return 0.85 * ssim_loss + 0.15 * l1


if __name__ == "__main__":
    key = jax.random.PRNGKey(0)
    # Small module-consistent case, a lane-aligned case exercising the roll
    # paths, and a non-tile-multiple H exercising the padding + halo paths.
    for (B, C, H, W) in [(2, 4, 16, 16), (1, 3, 48, 256), (1, 3, 40, 256)]:
        key, k1, k2 = jax.random.split(key, 3)
        pred = jax.random.uniform(k1, (B, C, H, W), dtype=jnp.float32)
        target = jax.random.uniform(k2, (B, C, H, W), dtype=jnp.float32)

        out = jax.block_until_ready(reprojection_loss(pred, target, use_ssim=True))
        ref = _reference(pred, target, use_ssim=True)
        assert out.shape == (B, 1, H, W)
        assert jnp.allclose(out, ref, atol=1e-4, rtol=1e-4), (
            (B, C, H, W), float(jnp.max(jnp.abs(out - ref))))

        out_l1 = jax.block_until_ready(reprojection_loss(pred, target, use_ssim=False))
        ref_l1 = _reference(pred, target, use_ssim=False)
        assert jnp.allclose(out_l1, ref_l1, atol=1e-5, rtol=1e-5)

    print("KERNEL_OK")
</pallas_src>

<mosaic_0001>
module attributes {stable_mosaic.version = 11 : i64} {
  func.func @_reprojection_ssim_kernel(%arg0: i32, %arg1: i32, %arg2: memref<1x4x16x16xf32, #tpu.memory_space<vmem>>, %arg3: memref<1x4x16x16xf32, #tpu.memory_space<vmem>>, %arg4: memref<1x1x4x4x16xf32, #tpu.memory_space<vmem>>, %arg5: memref<1x1x16x16xf32, #tpu.memory_space<vmem>>) attributes {dimension_semantics = [#tpu.dimension_semantics<parallel>, #tpu.dimension_semantics<parallel>], iteration_bounds = array<i64: 2, 1>, scalar_prefetch = 0 : i64, scratch_operands = 0 : i64, tpu.core_type = #tpu.core_type<tc>, window_params = [{transform_indices = @transform_0, window_bounds = array<i64: 1, 4, 16, 16>}, {transform_indices = @transform_1, window_bounds = array<i64: 1, 4, 16, 16>}, {transform_indices = @transform_2, window_bounds = array<i64: 1, 1, 4, 4, 16>}, {transform_indices = @transform_3, window_bounds = array<i64: 1, 1, 16, 16>}]} {
    %c0 = arith.constant 0 : index
    %c0_0 = arith.constant 0 : index
    %c0_1 = arith.constant 0 : index
    %c0_2 = arith.constant 0 : index
    %0 = vector.load %arg2[%c0, %c0_0, %c0_1, %c0_2] : memref<1x4x16x16xf32, #tpu.memory_space<vmem>>, vector<1x4x16x16xf32>
    %1 = vector.shape_cast %0 : vector<1x4x16x16xf32> to vector<4x16x16xf32>
    %c0_3 = arith.constant 0 : index
    %c0_4 = arith.constant 0 : index
    %c0_5 = arith.constant 0 : index
    %c0_6 = arith.constant 0 : index
    %2 = vector.load %arg3[%c0_3, %c0_4, %c0_5, %c0_6] : memref<1x4x16x16xf32, #tpu.memory_space<vmem>>, vector<1x4x16x16xf32>
    %3 = vector.shape_cast %2 : vector<1x4x16x16xf32> to vector<4x16x16xf32>
    %c0_7 = arith.constant 0 : index
    %c0_8 = arith.constant 0 : index
    %c0_9 = arith.constant 0 : index
    %c0_10 = arith.constant 0 : index
    %c0_11 = arith.constant 0 : index
    %4 = vector.load %arg4[%c0_7, %c0_8, %c0_9, %c0_10, %c0_11] : memref<1x1x4x4x16xf32, #tpu.memory_space<vmem>>, vector<1x1x4x4x16xf32>
    %5 = vector.shape_cast %4 : vector<1x1x4x4x16xf32> to vector<4x4x16xf32>
    %6 = vector.extract_strided_slice %5 {offsets = [0, 0, 0], sizes = [1, 4, 16], strides = [1, 1, 1]} : vector<4x4x16xf32> to vector<1x4x16xf32>
    %7 = vector.shape_cast %6 : vector<1x4x16xf32> to vector<4x16xf32>
    %8 = vector.shape_cast %7 : vector<4x16xf32> to vector<4x1x16xf32>
    %9 = vector.extract_strided_slice %5 {offsets = [1, 0, 0], sizes = [1, 4, 16], strides = [1, 1, 1]} : vector<4x4x16xf32> to vector<1x4x16xf32>
    %10 = vector.shape_cast %9 : vector<1x4x16xf32> to vector<4x16xf32>
    %11 = vector.shape_cast %10 : vector<4x16xf32> to vector<4x1x16xf32>
    %12 = vector.extract_strided_slice %5 {offsets = [2, 0, 0], sizes = [1, 4, 16], strides = [1, 1, 1]} : vector<4x4x16xf32> to vector<1x4x16xf32>
    %13 = vector.shape_cast %12 : vector<1x4x16xf32> to vector<4x16xf32>
    %14 = vector.shape_cast %13 : vector<4x16xf32> to vector<4x1x16xf32>
    %15 = vector.extract_strided_slice %5 {offsets = [3, 0, 0], sizes = [1, 4, 16], strides = [1, 1, 1]} : vector<4x4x16xf32> to vector<1x4x16xf32>
    %16 = vector.shape_cast %15 : vector<1x4x16xf32> to vector<4x16xf32>
    %17 = vector.shape_cast %16 : vector<4x16xf32> to vector<4x1x16xf32>
    %18 = arith.subf %3, %1 : vector<4x16x16xf32>
    %19 = math.absf %18 : vector<4x16x16xf32>
    %cst = arith.constant dense<0.000000e+00> : vector<16x16xf32>
    %20 = vector.multi_reduction <add>, %19, %cst [0] : vector<4x16x16xf32> to vector<16x16xf32>
    %cst_12 = arith.constant 4.000000e+00 : f32
    %21 = vector.broadcast %cst_12 : f32 to vector<16x16xf32>
    %22 = arith.divf %20, %21 : vector<16x16xf32>
    %23 = arith.mulf %1, %1 : vector<4x16x16xf32>
    %24 = arith.mulf %8, %8 : vector<4x1x16xf32>
    %25 = arith.mulf %11, %11 : vector<4x1x16xf32>
    %26 = arith.mulf %3, %3 : vector<4x16x16xf32>
    %27 = arith.mulf %14, %14 : vector<4x1x16xf32>
    %28 = arith.mulf %17, %17 : vector<4x1x16xf32>
    %29 = arith.mulf %1, %3 : vector<4x16x16xf32>
    %30 = arith.mulf %8, %14 : vector<4x1x16xf32>
    %31 = arith.mulf %11, %17 : vector<4x1x16xf32>
    %cst_13 = arith.constant 0.000000e+00 : f32
    %32 = vector.broadcast %cst_13 : f32 to vector<4x16x1xf32>
    %33 = tpu.concatenate %32, %1, %32 in 2 : vector<4x16x1xf32>, vector<4x16x16xf32>, vector<4x16x1xf32> -> vector<4x16x18xf32>
    %34 = vector.extract_strided_slice %33 {offsets = [0, 0, 0], sizes = [4, 16, 16], strides = [1, 1, 1]} : vector<4x16x18xf32> to vector<4x16x16xf32>
    %35 = vector.extract_strided_slice %33 {offsets = [0, 0, 1], sizes = [4, 16, 16], strides = [1, 1, 1]} : vector<4x16x18xf32> to vector<4x16x16xf32>
    %36 = arith.addf %34, %35 : vector<4x16x16xf32>
    %37 = vector.extract_strided_slice %33 {offsets = [0, 0, 2], sizes = [4, 16, 16], strides = [1, 1, 1]} : vector<4x16x18xf32> to vector<4x16x16xf32>
    %38 = arith.addf %36, %37 : vector<4x16x16xf32>
    %cst_14 = arith.constant 0.000000e+00 : f32
    %39 = vector.broadcast %cst_14 : f32 to vector<4x1x1xf32>
    %40 = tpu.concatenate %39, %8, %39 in 2 : vector<4x1x1xf32>, vector<4x1x16xf32>, vector<4x1x1xf32> -> vector<4x1x18xf32>
    %41 = vector.extract_strided_slice %40 {offsets = [0, 0, 0], sizes = [4, 1, 16], strides = [1, 1, 1]} : vector<4x1x18xf32> to vector<4x1x16xf32>
    %42 = vector.extract_strided_slice %40 {offsets = [0, 0, 1], sizes = [4, 1, 16], strides = [1, 1, 1]} : vector<4x1x18xf32> to vector<4x1x16xf32>
    %43 = arith.addf %41, %42 : vector<4x1x16xf32>
    %44 = vector.extract_strided_slice %40 {offsets = [0, 0, 2], sizes = [4, 1, 16], strides = [1, 1, 1]} : vector<4x1x18xf32> to vector<4x1x16xf32>
    %45 = arith.addf %43, %44 : vector<4x1x16xf32>
    %cst_15 = arith.constant 0.000000e+00 : f32
    %46 = vector.broadcast %cst_15 : f32 to vector<4x1x1xf32>
    %47 = tpu.concatenate %46, %11, %46 in 2 : vector<4x1x1xf32>, vector<4x1x16xf32>, vector<4x1x1xf32> -> vector<4x1x18xf32>
    %48 = vector.extract_strided_slice %47 {offsets = [0, 0, 0], sizes = [4, 1, 16], strides = [1, 1, 1]} : vector<4x1x18xf32> to vector<4x1x16xf32>
    %49 = vector.extract_strided_slice %47 {offsets = [0, 0, 1], sizes = [4, 1, 16], strides = [1, 1, 1]} : vector<4x1x18xf32> to vector<4x1x16xf32>
    %50 = arith.addf %48, %49 : vector<4x1x16xf32>
    %51 = vector.extract_strided_slice %47 {offsets = [0, 0, 2], sizes = [4, 1, 16], strides = [1, 1, 1]} : vector<4x1x18xf32> to vector<4x1x16xf32>
    %52 = arith.addf %50, %51 : vector<4x1x16xf32>
    %c1_i32 = arith.constant 1 : i32
    %53 = tpu.dynamic_rotate %38 by %c1_i32 dim 1 : vector<4x16x16xf32>, i32 -> vector<4x16x16xf32>
    %54 = arith.addf %38, %53 : vector<4x16x16xf32>
    %c15_i32 = arith.constant 15 : i32
    %55 = tpu.dynamic_rotate %38 by %c15_i32 dim 1 : vector<4x16x16xf32>, i32 -> vector<4x16x16xf32>
    %56 = arith.addf %54, %55 : vector<4x16x16xf32>
    %cst_16 = arith.constant 0.111111112 : f32
    %57 = vector.broadcast %cst_16 : f32 to vector<4x16x16xf32>
    %58 = arith.mulf %56, %57 : vector<4x16x16xf32>
    %59 = vector.extract_strided_slice %38 {offsets = [0, 0, 0], sizes = [4, 1, 16], strides = [1, 1, 1]} : vector<4x16x16xf32> to vector<4x1x16xf32>
    %60 = arith.addf %45, %59 : vector<4x1x16xf32>
    %61 = vector.extract_strided_slice %38 {offsets = [0, 1, 0], sizes = [4, 1, 16], strides = [1, 1, 1]} : vector<4x16x16xf32> to vector<4x1x16xf32>
    %62 = arith.addf %60, %61 : vector<4x1x16xf32>
    %cst_17 = arith.constant 0.111111112 : f32
    %63 = vector.broadcast %cst_17 : f32 to vector<4x1x16xf32>
    %64 = arith.mulf %62, %63 : vector<4x1x16xf32>
    %65 = vector.extract_strided_slice %38 {offsets = [0, 14, 0], sizes = [4, 1, 16], strides = [1, 1, 1]} : vector<4x16x16xf32> to vector<4x1x16xf32>
    %66 = vector.extract_strided_slice %38 {offsets = [0, 15, 0], sizes = [4, 1, 16], strides = [1, 1, 1]} : vector<4x16x16xf32> to vector<4x1x16xf32>
    %67 = arith.addf %65, %66 : vector<4x1x16xf32>
    %68 = arith.addf %67, %52 : vector<4x1x16xf32>
    %cst_18 = arith.constant 0.111111112 : f32
    %69 = vector.broadcast %cst_18 : f32 to vector<4x1x16xf32>
    %70 = arith.mulf %68, %69 : vector<4x1x16xf32>
    %cst_19 = arith.constant 0.000000e+00 : f32
    %71 = vector.broadcast %cst_19 : f32 to vector<4x16x1xf32>
    %72 = tpu.concatenate %71, %3, %71 in 2 : vector<4x16x1xf32>, vector<4x16x16xf32>, vector<4x16x1xf32> -> vector<4x16x18xf32>
    %73 = vector.extract_strided_slice %72 {offsets = [0, 0, 0], sizes = [4, 16, 16], strides = [1, 1, 1]} : vector<4x16x18xf32> to vector<4x16x16xf32>
    %74 = vector.extract_strided_slice %72 {offsets = [0, 0, 1], sizes = [4, 16, 16], strides = [1, 1, 1]} : vector<4x16x18xf32> to vector<4x16x16xf32>
    %75 = arith.addf %73, %74 : vector<4x16x16xf32>
    %76 = vector.extract_strided_slice %72 {offsets = [0, 0, 2], sizes = [4, 16, 16], strides = [1, 1, 1]} : vector<4x16x18xf32> to vector<4x16x16xf32>
    %77 = arith.addf %75, %76 : vector<4x16x16xf32>
    %cst_20 = arith.constant 0.000000e+00 : f32
    %78 = vector.broadcast %cst_20 : f32 to vector<4x1x1xf32>
    %79 = tpu.concatenate %78, %14, %78 in 2 : vector<4x1x1xf32>, vector<4x1x16xf32>, vector<4x1x1xf32> -> vector<4x1x18xf32>
    %80 = vector.extract_strided_slice %79 {offsets = [0, 0, 0], sizes = [4, 1, 16], strides = [1, 1, 1]} : vector<4x1x18xf32> to vector<4x1x16xf32>
    %81 = vector.extract_strided_slice %79 {offsets = [0, 0, 1], sizes = [4, 1, 16], strides = [1, 1, 1]} : vector<4x1x18xf32> to vector<4x1x16xf32>
    %82 = arith.addf %80, %81 : vector<4x1x16xf32>
    %83 = vector.extract_strided_slice %79 {offsets = [0, 0, 2], sizes = [4, 1, 16], strides = [1, 1, 1]} : vector<4x1x18xf32> to vector<4x1x16xf32>
    %84 = arith.addf %82, %83 : vector<4x1x16xf32>
    %cst_21 = arith.constant 0.000000e+00 : f32
    %85 = vector.broadcast %cst_21 : f32 to vector<4x1x1xf32>
    %86 = tpu.concatenate %85, %17, %85 in 2 : vector<4x1x1xf32>, vector<4x1x16xf32>, vector<4x1x1xf32> -> vector<4x1x18xf32>
    %87 = vector.extract_strided_slice %86 {offsets = [0, 0, 0], sizes = [4, 1, 16], strides = [1, 1, 1]} : vector<4x1x18xf32> to vector<4x1x16xf32>
    %88 = vector.extract_strided_slice %86 {offsets = [0, 0, 1], sizes = [4, 1, 16], strides = [1, 1, 1]} : vector<4x1x18xf32> to vector<4x1x16xf32>
    %89 = arith.addf %87, %88 : vector<4x1x16xf32>
    %90 = vector.extract_strided_slice %86 {offsets = [0, 0, 2], sizes = [4, 1, 16], strides = [1, 1, 1]} : vector<4x1x18xf32> to vector<4x1x16xf32>
    %91 = arith.addf %89, %90 : vector<4x1x16xf32>
    %c1_i32_22 = arith.constant 1 : i32
    %92 = tpu.dynamic_rotate %77 by %c1_i32_22 dim 1 : vector<4x16x16xf32>, i32 -> vector<4x16x16xf32>
    %93 = arith.addf %77, %92 : vector<4x16x16xf32>
    %c15_i32_23 = arith.constant 15 : i32
    %94 = tpu.dynamic_rotate %77 by %c15_i32_23 dim 1 : vector<4x16x16xf32>, i32 -> vector<4x16x16xf32>
    %95 = arith.addf %93, %94 : vector<4x16x16xf32>
    %cst_24 = arith.constant 0.111111112 : f32
    %96 = vector.broadcast %cst_24 : f32 to vector<4x16x16xf32>
    %97 = arith.mulf %95, %96 : vector<4x16x16xf32>
    %98 = vector.extract_strided_slice %77 {offsets = [0, 0, 0], sizes = [4, 1, 16], strides = [1, 1, 1]} : vector<4x16x16xf32> to vector<4x1x16xf32>
    %99 = arith.addf %84, %98 : vector<4x1x16xf32>
    %100 = vector.extract_strided_slice %77 {offsets = [0, 1, 0], sizes = [4, 1, 16], strides = [1, 1, 1]} : vector<4x16x16xf32> to vector<4x1x16xf32>
    %101 = arith.addf %99, %100 : vector<4x1x16xf32>
    %cst_25 = arith.constant 0.111111112 : f32
    %102 = vector.broadcast %cst_25 : f32 to vector<4x1x16xf32>
    %103 = arith.mulf %101, %102 : vector<4x1x16xf32>
    %104 = vector.extract_strided_slice %77 {offsets = [0, 14, 0], sizes = [4, 1, 16], strides = [1, 1, 1]} : vector<4x16x16xf32> to vector<4x1x16xf32>
    %105 = vector.extract_strided_slice %77 {offsets = [0, 15, 0], sizes = [4, 1, 16], strides = [1, 1, 1]} : vector<4x16x16xf32> to vector<4x1x16xf32>
    %106 = arith.addf %104, %105 : vector<4x1x16xf32>
    %107 = arith.addf %106, %91 : vector<4x1x16xf32>
    %cst_26 = arith.constant 0.111111112 : f32
    %108 = vector.broadcast %cst_26 : f32 to vector<4x1x16xf32>
    %109 = arith.mulf %107, %108 : vector<4x1x16xf32>
    %cst_27 = arith.constant 0.000000e+00 : f32
    %110 = vector.broadcast %cst_27 : f32 to vector<4x16x1xf32>
    %111 = tpu.concatenate %110, %23, %110 in 2 : vector<4x16x1xf32>, vector<4x16x16xf32>, vector<4x16x1xf32> -> vector<4x16x18xf32>
    %112 = vector.extract_strided_slice %111 {offsets = [0, 0, 0], sizes = [4, 16, 16], strides = [1, 1, 1]} : vector<4x16x18xf32> to vector<4x16x16xf32>
    %113 = vector.extract_strided_slice %111 {offsets = [0, 0, 1], sizes = [4, 16, 16], strides = [1, 1, 1]} : vector<4x16x18xf32> to vector<4x16x16xf32>
    %114 = arith.addf %112, %113 : vector<4x16x16xf32>
    %115 = vector.extract_strided_slice %111 {offsets = [0, 0, 2], sizes = [4, 16, 16], strides = [1, 1, 1]} : vector<4x16x18xf32> to vector<4x16x16xf32>
    %116 = arith.addf %114, %115 : vector<4x16x16xf32>
    %cst_28 = arith.constant 0.000000e+00 : f32
    %117 = vector.broadcast %cst_28 : f32 to vector<4x1x1xf32>
    %118 = tpu.concatenate %117, %24, %117 in 2 : vector<4x1x1xf32>, vector<4x1x16xf32>, vector<4x1x1xf32> -> vector<4x1x18xf32>
    %119 = vector.extract_strided_slice %118 {offsets = [0, 0, 0], sizes = [4, 1, 16], strides = [1, 1, 1]} : vector<4x1x18xf32> to vector<4x1x16xf32>
    %120 = vector.extract_strided_slice %118 {offsets = [0, 0, 1], sizes = [4, 1, 16], strides = [1, 1, 1]} : vector<4x1x18xf32> to vector<4x1x16xf32>
    %121 = arith.addf %119, %120 : vector<4x1x16xf32>
    %122 = vector.extract_strided_slice %118 {offsets = [0, 0, 2], sizes = [4, 1, 16], strides = [1, 1, 1]} : vector<4x1x18xf32> to vector<4x1x16xf32>
    %123 = arith.addf %121, %122 : vector<4x1x16xf32>
    %cst_29 = arith.constant 0.000000e+00 : f32
    %124 = vector.broadcast %cst_29 : f32 to vector<4x1x1xf32>
    %125 = tpu.concatenate %124, %25, %124 in 2 : vector<4x1x1xf32>, vector<4x1x16xf32>, vector<4x1x1xf32> -> vector<4x1x18xf32>
    %126 = vector.extract_strided_slice %125 {offsets = [0, 0, 0], sizes = [4, 1, 16], strides = [1, 1, 1]} : vector<4x1x18xf32> to vector<4x1x16xf32>
    %127 = vector.extract_strided_slice %125 {offsets = [0, 0, 1], sizes = [4, 1, 16], strides = [1, 1, 1]} : vector<4x1x18xf32> to vector<4x1x16xf32>
    %128 = arith.addf %126, %127 : vector<4x1x16xf32>
    %129 = vector.extract_strided_slice %125 {offsets = [0, 0, 2], sizes = [4, 1, 16], strides = [1, 1, 1]} : vector<4x1x18xf32> to vector<4x1x16xf32>
    %130 = arith.addf %128, %129 : vector<4x1x16xf32>
    %c1_i32_30 = arith.constant 1 : i32
    %131 = tpu.dynamic_rotate %116 by %c1_i32_30 dim 1 : vector<4x16x16xf32>, i32 -> vector<4x16x16xf32>
    %132 = arith.addf %116, %131 : vector<4x16x16xf32>
    %c15_i32_31 = arith.constant 15 : i32
    %133 = tpu.dynamic_rotate %116 by %c15_i32_31 dim 1 : vector<4x16x16xf32>, i32 -> vector<4x16x16xf32>
    %134 = arith.addf %132, %133 : vector<4x16x16xf32>
    %cst_32 = arith.constant 0.111111112 : f32
    %135 = vector.broadcast %cst_32 : f32 to vector<4x16x16xf32>
    %136 = arith.mulf %134, %135 : vector<4x16x16xf32>
    %137 = vector.extract_strided_slice %116 {offsets = [0, 0, 0], sizes = [4, 1, 16], strides = [1, 1, 1]} : vector<4x16x16xf32> to vector<4x1x16xf32>
    %138 = arith.addf %123, %137 : vector<4x1x16xf32>
    %139 = vector.extract_strided_slice %116 {offsets = [0, 1, 0], sizes = [4, 1, 16], strides = [1, 1, 1]} : vector<4x16x16xf32> to vector<4x1x16xf32>
    %140 = arith.addf %138, %139 : vector<4x1x16xf32>
    %cst_33 = arith.constant 0.111111112 : f32
    %141 = vector.broadcast %cst_33 : f32 to vector<4x1x16xf32>
    %142 = arith.mulf %140, %141 : vector<4x1x16xf32>
    %143 = vector.extract_strided_slice %116 {offsets = [0, 14, 0], sizes = [4, 1, 16], strides = [1, 1, 1]} : vector<4x16x16xf32> to vector<4x1x16xf32>
    %144 = vector.extract_strided_slice %116 {offsets = [0, 15, 0], sizes = [4, 1, 16], strides = [1, 1, 1]} : vector<4x16x16xf32> to vector<4x1x16xf32>
    %145 = arith.addf %143, %144 : vector<4x1x16xf32>
    %146 = arith.addf %145, %130 : vector<4x1x16xf32>
    %cst_34 = arith.constant 0.111111112 : f32
    %147 = vector.broadcast %cst_34 : f32 to vector<4x1x16xf32>
    %148 = arith.mulf %146, %147 : vector<4x1x16xf32>
    %cst_35 = arith.constant 0.000000e+00 : f32
    %149 = vector.broadcast %cst_35 : f32 to vector<4x16x1xf32>
    %150 = tpu.concatenate %149, %26, %149 in 2 : vector<4x16x1xf32>, vector<4x16x16xf32>, vector<4x16x1xf32> -> vector<4x16x18xf32>
    %151 = vector.extract_strided_slice %150 {offsets = [0, 0, 0], sizes = [4, 16, 16], strides = [1, 1, 1]} : vector<4x16x18xf32> to vector<4x16x16xf32>
    %152 = vector.extract_strided_slice %150 {offsets = [0, 0, 1], sizes = [4, 16, 16], strides = [1, 1, 1]} : vector<4x16x18xf32> to vector<4x16x16xf32>
    %153 = arith.addf %151, %152 : vector<4x16x16xf32>
    %154 = vector.extract_strided_slice %150 {offsets = [0, 0, 2], sizes = [4, 16, 16], strides = [1, 1, 1]} : vector<4x16x18xf32> to vector<4x16x16xf32>
    %155 = arith.addf %153, %154 : vector<4x16x16xf32>
    %cst_36 = arith.constant 0.000000e+00 : f32
    %156 = vector.broadcast %cst_36 : f32 to vector<4x1x1xf32>
    %157 = tpu.concatenate %156, %27, %156 in 2 : vector<4x1x1xf32>, vector<4x1x16xf32>, vector<4x1x1xf32> -> vector<4x1x18xf32>
    %158 = vector.extract_strided_slice %157 {offsets = [0, 0, 0], sizes = [4, 1, 16], strides = [1, 1, 1]} : vector<4x1x18xf32> to vector<4x1x16xf32>
    %159 = vector.extract_strided_slice %157 {offsets = [0, 0, 1], sizes = [4, 1, 16], strides = [1, 1, 1]} : vector<4x1x18xf32> to vector<4x1x16xf32>
    %160 = arith.addf %158, %159 : vector<4x1x16xf32>
    %161 = vector.extract_strided_slice %157 {offsets = [0, 0, 2], sizes = [4, 1, 16], strides = [1, 1, 1]} : vector<4x1x18xf32> to vector<4x1x16xf32>
    %162 = arith.addf %160, %161 : vector<4x1x16xf32>
    %cst_37 = arith.constant 0.000000e+00 : f32
    %163 = vector.broadcast %cst_37 : f32 to vector<4x1x1xf32>
    %164 = tpu.concatenate %163, %28, %163 in 2 : vector<4x1x1xf32>, vector<4x1x16xf32>, vector<4x1x1xf32> -> vector<4x1x18xf32>
    %165 = vector.extract_strided_slice %164 {offsets = [0, 0, 0], sizes = [4, 1, 16], strides = [1, 1, 1]} : vector<4x1x18xf32> to vector<4x1x16xf32>
    %166 = vector.extract_strided_slice %164 {offsets = [0, 0, 1], sizes = [4, 1, 16], strides = [1, 1, 1]} : vector<4x1x18xf32> to vector<4x1x16xf32>
    %167 = arith.addf %165, %166 : vector<4x1x16xf32>
    %168 = vector.extract_strided_slice %164 {offsets = [0, 0, 2], sizes = [4, 1, 16], strides = [1, 1, 1]} : vector<4x1x18xf32> to vector<4x1x16xf32>
    %169 = arith.addf %167, %168 : vector<4x1x16xf32>
    %c1_i32_38 = arith.constant 1 : i32
    %170 = tpu.dynamic_rotate %155 by %c1_i32_38 dim 1 : vector<4x16x16xf32>, i32 -> vector<4x16x16xf32>
    %171 = arith.addf %155, %170 : vector<4x16x16xf32>
    %c15_i32_39 = arith.constant 15 : i32
    %172 = tpu.dynamic_rotate %155 by %c15_i32_39 dim 1 : vector<4x16x16xf32>, i32 -> vector<4x16x16xf32>
    %173 = arith.addf %171, %172 : vector<4x16x16xf32>
    %cst_40 = arith.constant 0.111111112 : f32
    %174 = vector.broadcast %cst_40 : f32 to vector<4x16x16xf32>
    %175 = arith.mulf %173, %174 : vector<4x16x16xf32>
    %176 = vector.extract_strided_slice %155 {offsets = [0, 0, 0], sizes = [4, 1, 16], strides = [1, 1, 1]} : vector<4x16x16xf32> to vector<4x1x16xf32>
    %177 = arith.addf %162, %176 : vector<4x1x16xf32>
    %178 = vector.extract_strided_slice %155 {offsets = [0, 1, 0], sizes = [4, 1, 16], strides = [1, 1, 1]} : vector<4x16x16xf32> to vector<4x1x16xf32>
    %179 = arith.addf %177, %178 : vector<4x1x16xf32>
    %cst_41 = arith.constant 0.111111112 : f32
    %180 = vector.broadcast %cst_41 : f32 to vector<4x1x16xf32>
    %181 = arith.mulf %179, %180 : vector<4x1x16xf32>
    %182 = vector.extract_strided_slice %155 {offsets = [0, 14, 0], sizes = [4, 1, 16], strides = [1, 1, 1]} : vector<4x16x16xf32> to vector<4x1x16xf32>
    %183 = vector.extract_strided_slice %155 {offsets = [0, 15, 0], sizes = [4, 1, 16], strides = [1, 1, 1]} : vector<4x16x16xf32> to vector<4x1x16xf32>
    %184 = arith.addf %182, %183 : vector<4x1x16xf32>
    %185 = arith.addf %184, %169 : vector<4x1x16xf32>
    %cst_42 = arith.constant 0.111111112 : f32
    %186 = vector.broadcast %cst_42 : f32 to vector<4x1x16xf32>
    %187 = arith.mulf %185, %186 : vector<4x1x16xf32>
    %cst_43 = arith.constant 0.000000e+00 : f32
    %188 = vector.broadcast %cst_43 : f32 to vector<4x16x1xf32>
    %189 = tpu.concatenate %188, %29, %188 in 2 : vector<4x16x1xf32>, vector<4x16x16xf32>, vector<4x16x1xf32> -> vector<4x16x18xf32>
    %190 = vector.extract_strided_slice %189 {offsets = [0, 0, 0], sizes = [4, 16, 16], strides = [1, 1, 1]} : vector<4x16x18xf32> to vector<4x16x16xf32>
    %191 = vector.extract_strided_slice %189 {offsets = [0, 0, 1], sizes = [4, 16, 16], strides = [1, 1, 1]} : vector<4x16x18xf32> to vector<4x16x16xf32>
    %192 = arith.addf %190, %191 : vector<4x16x16xf32>
    %193 = vector.extract_strided_slice %189 {offsets = [0, 0, 2], sizes = [4, 16, 16], strides = [1, 1, 1]} : vector<4x16x18xf32> to vector<4x16x16xf32>
    %194 = arith.addf %192, %193 : vector<4x16x16xf32>
    %cst_44 = arith.constant 0.000000e+00 : f32
    %195 = vector.broadcast %cst_44 : f32 to vector<4x1x1xf32>
    %196 = tpu.concatenate %195, %30, %195 in 2 : vector<4x1x1xf32>, vector<4x1x16xf32>, vector<4x1x1xf32> -> vector<4x1x18xf32>
    %197 = vector.extract_strided_slice %196 {offsets = [0, 0, 0], sizes = [4, 1, 16], strides = [1, 1, 1]} : vector<4x1x18xf32> to vector<4x1x16xf32>
    %198 = vector.extract_strided_slice %196 {offsets = [0, 0, 1], sizes = [4, 1, 16], strides = [1, 1, 1]} : vector<4x1x18xf32> to vector<4x1x16xf32>
    %199 = arith.addf %197, %198 : vector<4x1x16xf32>
    %200 = vector.extract_strided_slice %196 {offsets = [0, 0, 2], sizes = [4, 1, 16], strides = [1, 1, 1]} : vector<4x1x18xf32> to vector<4x1x16xf32>
    %201 = arith.addf %199, %200 : vector<4x1x16xf32>
    %cst_45 = arith.constant 0.000000e+00 : f32
    %202 = vector.broadcast %cst_45 : f32 to vector<4x1x1xf32>
    %203 = tpu.concatenate %202, %31, %202 in 2 : vector<4x1x1xf32>, vector<4x1x16xf32>, vector<4x1x1xf32> -> vector<4x1x18xf32>
    %204 = vector.extract_strided_slice %203 {offsets = [0, 0, 0], sizes = [4, 1, 16], strides = [1, 1, 1]} : vector<4x1x18xf32> to vector<4x1x16xf32>
    %205 = vector.extract_strided_slice %203 {offsets = [0, 0, 1], sizes = [4, 1, 16], strides = [1, 1, 1]} : vector<4x1x18xf32> to vector<4x1x16xf32>
    %206 = arith.addf %204, %205 : vector<4x1x16xf32>
    %207 = vector.extract_strided_slice %203 {offsets = [0, 0, 2], sizes = [4, 1, 16], strides = [1, 1, 1]} : vector<4x1x18xf32> to vector<4x1x16xf32>
    %208 = arith.addf %206, %207 : vector<4x1x16xf32>
    %c1_i32_46 = arith.constant 1 : i32
    %209 = tpu.dynamic_rotate %194 by %c1_i32_46 dim 1 : vector<4x16x16xf32>, i32 -> vector<4x16x16xf32>
    %210 = arith.addf %194, %209 : vector<4x16x16xf32>
    %c15_i32_47 = arith.constant 15 : i32
    %211 = tpu.dynamic_rotate %194 by %c15_i32_47 dim 1 : vector<4x16x16xf32>, i32 -> vector<4x16x16xf32>
    %212 = arith.addf %210, %211 : vector<4x16x16xf32>
    %cst_48 = arith.constant 0.111111112 : f32
    %213 = vector.broadcast %cst_48 : f32 to vector<4x16x16xf32>
    %214 = arith.mulf %212, %213 : vector<4x16x16xf32>
    %215 = vector.extract_strided_slice %194 {offsets = [0, 0, 0], sizes = [4, 1, 16], strides = [1, 1, 1]} : vector<4x16x16xf32> to vector<4x1x16xf32>
    %216 = arith.addf %201, %215 : vector<4x1x16xf32>
    %217 = vector.extract_strided_slice %194 {offsets = [0, 1, 0], sizes = [4, 1, 16], strides = [1, 1, 1]} : vector<4x16x16xf32> to vector<4x1x16xf32>
    %218 = arith.addf %216, %217 : vector<4x1x16xf32>
    %cst_49 = arith.constant 0.111111112 : f32
    %219 = vector.broadcast %cst_49 : f32 to vector<4x1x16xf32>
    %220 = arith.mulf %218, %219 : vector<4x1x16xf32>
    %221 = vector.extract_strided_slice %194 {offsets = [0, 14, 0], sizes = [4, 1, 16], strides = [1, 1, 1]} : vector<4x16x16xf32> to vector<4x1x16xf32>
    %222 = vector.extract_strided_slice %194 {offsets = [0, 15, 0], sizes = [4, 1, 16], strides = [1, 1, 1]} : vector<4x16x16xf32> to vector<4x1x16xf32>
    %223 = arith.addf %221, %222 : vector<4x1x16xf32>
    %224 = arith.addf %223, %208 : vector<4x1x16xf32>
    %cst_50 = arith.constant 0.111111112 : f32
    %225 = vector.broadcast %cst_50 : f32 to vector<4x1x16xf32>
    %226 = arith.mulf %224, %225 : vector<4x1x16xf32>
    %227 = arith.mulf %58, %58 : vector<4x16x16xf32>
    %228 = arith.mulf %97, %97 : vector<4x16x16xf32>
    %229 = arith.mulf %58, %97 : vector<4x16x16xf32>
    %230 = arith.subf %136, %227 : vector<4x16x16xf32>
    %231 = arith.subf %175, %228 : vector<4x16x16xf32>
    %232 = arith.subf %214, %229 : vector<4x16x16xf32>
    %cst_51 = arith.constant 2.000000e+00 : f32
    %233 = vector.broadcast %cst_51 : f32 to vector<4x16x16xf32>
    %234 = arith.mulf %233, %229 : vector<4x16x16xf32>
    %cst_52 = arith.constant 9.99999974E-5 : f32
    %235 = vector.broadcast %cst_52 : f32 to vector<4x16x16xf32>
    %236 = arith.addf %234, %235 : vector<4x16x16xf32>
    %cst_53 = arith.constant 2.000000e+00 : f32
    %237 = vector.broadcast %cst_53 : f32 to vector<4x16x16xf32>
    %238 = arith.mulf %237, %232 : vector<4x16x16xf32>
    %cst_54 = arith.constant 8.99999984E-4 : f32
    %239 = vector.broadcast %cst_54 : f32 to vector<4x16x16xf32>
    %240 = arith.addf %238, %239 : vector<4x16x16xf32>
    %241 = arith.mulf %236, %240 : vector<4x16x16xf32>
    %242 = arith.addf %227, %228 : vector<4x16x16xf32>
    %cst_55 = arith.constant 9.99999974E-5 : f32
    %243 = vector.broadcast %cst_55 : f32 to vector<4x16x16xf32>
    %244 = arith.addf %242, %243 : vector<4x16x16xf32>
    %245 = arith.addf %230, %231 : vector<4x16x16xf32>
    %cst_56 = arith.constant 8.99999984E-4 : f32
    %246 = vector.broadcast %cst_56 : f32 to vector<4x16x16xf32>
    %247 = arith.addf %245, %246 : vector<4x16x16xf32>
    %248 = arith.mulf %244, %247 : vector<4x16x16xf32>
    %cst_57 = arith.constant 1.000000e-07 : f32
    %249 = vector.broadcast %cst_57 : f32 to vector<4x16x16xf32>
    %250 = arith.addf %248, %249 : vector<4x16x16xf32>
    %251 = tpu.reciprocal %250 : vector<4x16x16xf32> -> vector<4x16x16xf32>
    %252 = arith.mulf %241, %251 : vector<4x16x16xf32>
    %cst_58 = arith.constant 1.000000e+00 : f32
    %253 = vector.broadcast %cst_58 : f32 to vector<4x16x16xf32>
    %254 = arith.subf %253, %252 : vector<4x16x16xf32>
    %cst_59 = arith.constant 5.000000e-01 : f32
    %255 = vector.broadcast %cst_59 : f32 to vector<4x16x16xf32>
    %256 = arith.mulf %254, %255 : vector<4x16x16xf32>
    %cst_60 = arith.constant 0.000000e+00 : f32
    %cst_61 = arith.constant 1.000000e+00 : f32
    %257 = vector.broadcast %cst_60 : f32 to vector<4x16x16xf32>
    %258 = arith.maximumf %257, %256 : vector<4x16x16xf32>
    %259 = vector.broadcast %cst_61 : f32 to vector<4x16x16xf32>
    %260 = arith.minimumf %259, %258 : vector<4x16x16xf32>
    %cst_62 = arith.constant dense<0.000000e+00> : vector<16x16xf32>
    %261 = vector.multi_reduction <add>, %260, %cst_62 [0] : vector<4x16x16xf32> to vector<16x16xf32>
    %cst_63 = arith.constant 4.000000e+00 : f32
    %262 = vector.broadcast %cst_63 : f32 to vector<16x16xf32>
    %263 = arith.divf %261, %262 : vector<16x16xf32>
    %264 = arith.mulf %64, %64 : vector<4x1x16xf32>
    %265 = arith.mulf %103, %103 : vector<4x1x16xf32>
    %266 = arith.mulf %64, %103 : vector<4x1x16xf32>
    %267 = arith.subf %142, %264 : vector<4x1x16xf32>
    %268 = arith.subf %181, %265 : vector<4x1x16xf32>
    %269 = arith.subf %220, %266 : vector<4x1x16xf32>
    %cst_64 = arith.constant 2.000000e+00 : f32
    %270 = vector.broadcast %cst_64 : f32 to vector<4x1x16xf32>
    %271 = arith.mulf %270, %266 : vector<4x1x16xf32>
    %cst_65 = arith.constant 9.99999974E-5 : f32
    %272 = vector.broadcast %cst_65 : f32 to vector<4x1x16xf32>
    %273 = arith.addf %271, %272 : vector<4x1x16xf32>
    %cst_66 = arith.constant 2.000000e+00 : f32
    %274 = vector.broadcast %cst_66 : f32 to vector<4x1x16xf32>
    %275 = arith.mulf %274, %269 : vector<4x1x16xf32>
    %cst_67 = arith.constant 8.99999984E-4 : f32
    %276 = vector.broadcast %cst_67 : f32 to vector<4x1x16xf32>
    %277 = arith.addf %275, %276 : vector<4x1x16xf32>
    %278 = arith.mulf %273, %277 : vector<4x1x16xf32>
    %279 = arith.addf %264, %265 : vector<4x1x16xf32>
    %cst_68 = arith.constant 9.99999974E-5 : f32
    %280 = vector.broadcast %cst_68 : f32 to vector<4x1x16xf32>
    %281 = arith.addf %279, %280 : vector<4x1x16xf32>
    %282 = arith.addf %267, %268 : vector<4x1x16xf32>
    %cst_69 = arith.constant 8.99999984E-4 : f32
    %283 = vector.broadcast %cst_69 : f32 to vector<4x1x16xf32>
    %284 = arith.addf %282, %283 : vector<4x1x16xf32>
    %285 = arith.mulf %281, %284 : vector<4x1x16xf32>
    %cst_70 = arith.constant 1.000000e-07 : f32
    %286 = vector.broadcast %cst_70 : f32 to vector<4x1x16xf32>
    %287 = arith.addf %285, %286 : vector<4x1x16xf32>
    %288 = tpu.reciprocal %287 : vector<4x1x16xf32> -> vector<4x1x16xf32>
    %289 = arith.mulf %278, %288 : vector<4x1x16xf32>
    %cst_71 = arith.constant 1.000000e+00 : f32
    %290 = vector.broadcast %cst_71 : f32 to vector<4x1x16xf32>
    %291 = arith.subf %290, %289 : vector<4x1x16xf32>
    %cst_72 = arith.constant 5.000000e-01 : f32
    %292 = vector.broadcast %cst_72 : f32 to vector<4x1x16xf32>
    %293 = arith.mulf %291, %292 : vector<4x1x16xf32>
    %cst_73 = arith.constant 0.000000e+00 : f32
    %cst_74 = arith.constant 1.000000e+00 : f32
    %294 = vector.broadcast %cst_73 : f32 to vector<4x1x16xf32>
    %295 = arith.maximumf %294, %293 : vector<4x1x16xf32>
    %296 = vector.broadcast %cst_74 : f32 to vector<4x1x16xf32>
    %297 = arith.minimumf %296, %295 : vector<4x1x16xf32>
    %cst_75 = arith.constant dense<0.000000e+00> : vector<1x16xf32>
    %298 = vector.multi_reduction <add>, %297, %cst_75 [0] : vector<4x1x16xf32> to vector<1x16xf32>
    %cst_76 = arith.constant 4.000000e+00 : f32
    %299 = vector.broadcast %cst_76 : f32 to vector<1x16xf32>
    %300 = arith.divf %298, %299 : vector<1x16xf32>
    %301 = arith.mulf %70, %70 : vector<4x1x16xf32>
    %302 = arith.mulf %109, %109 : vector<4x1x16xf32>
    %303 = arith.mulf %70, %109 : vector<4x1x16xf32>
    %304 = arith.subf %148, %301 : vector<4x1x16xf32>
    %305 = arith.subf %187, %302 : vector<4x1x16xf32>
    %306 = arith.subf %226, %303 : vector<4x1x16xf32>
    %cst_77 = arith.constant 2.000000e+00 : f32
    %307 = vector.broadcast %cst_77 : f32 to vector<4x1x16xf32>
    %308 = arith.mulf %307, %303 : vector<4x1x16xf32>
    %cst_78 = arith.constant 9.99999974E-5 : f32
    %309 = vector.broadcast %cst_78 : f32 to vector<4x1x16xf32>
    %310 = arith.addf %308, %309 : vector<4x1x16xf32>
    %cst_79 = arith.constant 2.000000e+00 : f32
    %311 = vector.broadcast %cst_79 : f32 to vector<4x1x16xf32>
    %312 = arith.mulf %311, %306 : vector<4x1x16xf32>
    %cst_80 = arith.constant 8.99999984E-4 : f32
    %313 = vector.broadcast %cst_80 : f32 to vector<4x1x16xf32>
    %314 = arith.addf %312, %313 : vector<4x1x16xf32>
    %315 = arith.mulf %310, %314 : vector<4x1x16xf32>
    %316 = arith.addf %301, %302 : vector<4x1x16xf32>
    %cst_81 = arith.constant 9.99999974E-5 : f32
    %317 = vector.broadcast %cst_81 : f32 to vector<4x1x16xf32>
    %318 = arith.addf %316, %317 : vector<4x1x16xf32>
    %319 = arith.addf %304, %305 : vector<4x1x16xf32>
    %cst_82 = arith.constant 8.99999984E-4 : f32
    %320 = vector.broadcast %cst_82 : f32 to vector<4x1x16xf32>
    %321 = arith.addf %319, %320 : vector<4x1x16xf32>
    %322 = arith.mulf %318, %321 : vector<4x1x16xf32>
    %cst_83 = arith.constant 1.000000e-07 : f32
    %323 = vector.broadcast %cst_83 : f32 to vector<4x1x16xf32>
    %324 = arith.addf %322, %323 : vector<4x1x16xf32>
    %325 = tpu.reciprocal %324 : vector<4x1x16xf32> -> vector<4x1x16xf32>
    %326 = arith.mulf %315, %325 : vector<4x1x16xf32>
    %cst_84 = arith.constant 1.000000e+00 : f32
    %327 = vector.broadcast %cst_84 : f32 to vector<4x1x16xf32>
    %328 = arith.subf %327, %326 : vector<4x1x16xf32>
    %cst_85 = arith.constant 5.000000e-01 : f32
    %329 = vector.broadcast %cst_85 : f32 to vector<4x1x16xf32>
    %330 = arith.mulf %328, %329 : vector<4x1x16xf32>
    %cst_86 = arith.constant 0.000000e+00 : f32
    %cst_87 = arith.constant 1.000000e+00 : f32
    %331 = vector.broadcast %cst_86 : f32 to vector<4x1x16xf32>
    %332 = arith.maximumf %331, %330 : vector<4x1x16xf32>
    %333 = vector.broadcast %cst_87 : f32 to vector<4x1x16xf32>
    %334 = arith.minimumf %333, %332 : vector<4x1x16xf32>
    %cst_88 = arith.constant dense<0.000000e+00> : vector<1x16xf32>
    %335 = vector.multi_reduction <add>, %334, %cst_88 [0] : vector<4x1x16xf32> to vector<1x16xf32>
    %cst_89 = arith.constant 4.000000e+00 : f32
    %336 = vector.broadcast %cst_89 : f32 to vector<1x16xf32>
    %337 = arith.divf %335, %336 : vector<1x16xf32>
    %cst_90 = arith.constant 8.500000e-01 : f32
    %338 = vector.broadcast %cst_90 : f32 to vector<16x16xf32>
    %339 = arith.mulf %338, %263 : vector<16x16xf32>
    %cst_91 = arith.constant 1.500000e-01 : f32
    %340 = vector.broadcast %cst_91 : f32 to vector<16x16xf32>
    %341 = arith.mulf %340, %22 : vector<16x16xf32>
    %342 = arith.addf %339, %341 : vector<16x16xf32>
    %c0_92 = arith.constant 0 : index
    %c0_93 = arith.constant 0 : index
    %c0_94 = arith.constant 0 : index
    %c0_95 = arith.constant 0 : index
    %343 = vector.load %arg5[%c0_92, %c0_93, %c0_94, %c0_95] : memref<1x1x16x16xf32, #tpu.memory_space<vmem>>, vector<1x1x16x16xf32>
    %344 = vector.shape_cast %343 : vector<1x1x16x16xf32> to vector<16x16xf32>
    %345 = vector.shape_cast %342 : vector<16x16xf32> to vector<1x1x16x16xf32>
    tpu.vector_store %arg5[%c0_92, %c0_93, %c0_94, %c0_95], %345 {strides = array<i32>} : memref<1x1x16x16xf32, #tpu.memory_space<vmem>>, vector<1x1x16x16xf32>,
    %cst_96 = arith.constant 8.500000e-01 : f32
    %346 = vector.broadcast %cst_96 : f32 to vector<1x16xf32>
    %347 = arith.mulf %346, %300 : vector<1x16xf32>
    %348 = vector.extract_strided_slice %22 {offsets = [0, 0], sizes = [1, 16], strides = [1, 1]} : vector<16x16xf32> to vector<1x16xf32>
    %cst_97 = arith.constant 1.500000e-01 : f32
    %349 = vector.broadcast %cst_97 : f32 to vector<1x16xf32>
    %350 = arith.mulf %349, %348 : vector<1x16xf32>
    %351 = arith.addf %347, %350 : vector<1x16xf32>
    %c0_98 = arith.constant 0 : index
    %c0_99 = arith.constant 0 : index
    %c0_100 = arith.constant 0 : index
    %c0_101 = arith.constant 0 : index
    %352 = vector.load %arg5[%c0_98, %c0_99, %c0_100, %c0_101] : memref<1x1x16x16xf32, #tpu.memory_space<vmem>>, vector<1x1x1x16xf32>
    %353 = vector.shape_cast %352 : vector<1x1x1x16xf32> to vector<1x16xf32>
    %354 = vector.shape_cast %351 : vector<1x16xf32> to vector<1x1x1x16xf32>
    tpu.vector_store %arg5[%c0_98, %c0_99, %c0_100, %c0_101], %354 {strides = array<i32>} : memref<1x1x16x16xf32, #tpu.memory_space<vmem>>, vector<1x1x1x16xf32>,
    %cst_102 = arith.constant 8.500000e-01 : f32
    %355 = vector.broadcast %cst_102 : f32 to vector<1x16xf32>
    %356 = arith.mulf %355, %337 : vector<1x16xf32>
    %357 = vector.extract_strided_slice %22 {offsets = [15, 0], sizes = [1, 16], strides = [1, 1]} : vector<16x16xf32> to vector<1x16xf32>
    %cst_103 = arith.constant 1.500000e-01 : f32
    %358 = vector.broadcast %cst_103 : f32 to vector<1x16xf32>
    %359 = arith.mulf %358, %357 : vector<1x16xf32>
    %360 = arith.addf %356, %359 : vector<1x16xf32>
    %c0_104 = arith.constant 0 : index
    %c0_105 = arith.constant 0 : index
    %c15 = arith.constant 15 : index
    %c0_106 = arith.constant 0 : index
    %361 = vector.load %arg5[%c0_104, %c0_105, %c15, %c0_106] : memref<1x1x16x16xf32, #tpu.memory_space<vmem>>, vector<1x1x1x16xf32>
    %362 = vector.shape_cast %361 : vector<1x1x1x16xf32> to vector<1x16xf32>
    %363 = vector.shape_cast %360 : vector<1x16xf32> to vector<1x1x1x16xf32>
    tpu.vector_store %arg5[%c0_104, %c0_105, %c15, %c0_106], %363 {strides = array<i32>} : memref<1x1x16x16xf32, #tpu.memory_space<vmem>>, vector<1x1x1x16xf32>,
    return
  }
  func.func @transform_0(%arg0: i32, %arg1: i32) -> (i32, i32, i32, i32) {
    %c0_i32 = arith.constant 0 : i32
    %c0_i32_0 = arith.constant 0 : i32
    %c0_i32_1 = arith.constant 0 : i32
    return %arg0, %c0_i32, %arg1, %c0_i32_0 : i32, i32, i32, i32
  }
  func.func @transform_1(%arg0: i32, %arg1: i32) -> (i32, i32, i32, i32) {
    %c0_i32 = arith.constant 0 : i32
    %c0_i32_0 = arith.constant 0 : i32
    %c0_i32_1 = arith.constant 0 : i32
    return %arg0, %c0_i32, %arg1, %c0_i32_0 : i32, i32, i32, i32
  }
  func.func @transform_2(%arg0: i32, %arg1: i32) -> (i32, i32, i32, i32, i32) {
    %c0_i32 = arith.constant 0 : i32
    %c0_i32_0 = arith.constant 0 : i32
    %c0_i32_1 = arith.constant 0 : i32
    %c0_i32_2 = arith.constant 0 : i32
    return %arg0, %arg1, %c0_i32, %c0_i32_0, %c0_i32_1 : i32, i32, i32, i32, i32
  }
  func.func @transform_3(%arg0: i32, %arg1: i32) -> (i32, i32, i32, i32) {
    %c0_i32 = arith.constant 0 : i32
    %c0_i32_0 = arith.constant 0 : i32
    %c0_i32_1 = arith.constant 0 : i32
    return %arg0, %c0_i32, %arg1, %c0_i32_0 : i32, i32, i32, i32
  }
}

</mosaic_0001>

<bundles_post_ra>
// kernel: reprojection_loss.1
= control target key start
LH: loop header
LB: loop body
LE: loop exit
PB: predicated region body
PF: predicated region fallthrough
CT: control target
= control target key end

     0   :  { %8 = vsyncpa [#allocation3], 0  ;;  %s6268_s0 = inlined_call_operand.hbm [shape: f32[2,4,16,16], index: 0, kind: input, shape index: {}]   ;;  %s6269_s1 = inlined_call_operand.hbm [shape: f32[2,4,16,16], index: 1, kind: input, shape index: {}]   ;;  %s6270_s2 = inlined_call_operand.vmem [shape: f32[2,1,4,4,16], index: 2, kind: input, shape index: {}]   ;;  %s6271_s3 = inlined_call_operand.hbm [shape: f32[2,1,16,16], index: 3, kind: output, shape index: {}]  }
   0x1   :  { %10 = vsyncpa [#allocation3 + $0x1], 0 }
   0x2   :  { %11 = vsyncpa [#allocation6], 0 }
   0x3   :  { %13 = vsyncpa [#allocation6 + $0x1], 0 }
   0x4   :  { %14 = vsyncpa [#allocation4], 0 }
   0x5   :  { %16 = vsyncpa [#allocation4 + $0x1], 0  ;;  %s3336_s12 = smov 0   ;;  %s3338_s13 = smov 0  }
   0x6   :  { %s3340_s14 = smov 0   ;;  %s3342_s15 = smov 0  }
   0x7   :  { %s3344_s16 = smov 0   ;;  %s3346_s17 = smov 0  }
   0x8 LB: > { %s3005_s18 = sadd.s32 4294967295, %s3303_s17   ;;  %s3006_s19 = sadd.s32 4294967294, %s3303_s17   ;;  %s3303_s17 = sphi %s3346_s17, %s22_s17   ;;  %s3299_s16 = sphi %s3344_s16, %s6948_s16   ;;  %s3295_s15 = sphi %s3342_s15, %s6947_s15   ;;  %s3291_s14 = sphi %s3340_s14, %s6946_s14   ;;  %s3287_s13 = sphi %s3338_s13, %s6945_s13   ;;  %s3283_s12 = sphi %s3336_s12, %s6944_s12  }
   0x9   : > { %s34_s20 = sadd.s32 1, %s3299_s16  ;;  %s43_s21 = sadd.s32 1, %s3291_s14 }
   0xa   : > { %p36_p0 = scmp.ge.s32.totalorder %s34_s20, 2  ;;  %p50_p1 = scmp.ne.s32.totalorder %s3291_s14, %s3287_s13 }
   0xb   : > { %p51_p2 = scmp.eq.s32.totalorder %s3303_s17, 0  ;;  %p56_p3 = scmp.ne.s32.totalorder %s3287_s13, %s3283_s12 }
   0xc   : > { %s6950_s20 = smov (%p36_p0, %s34_s20), 0  ;;  %p57_p5 = scmp.eq.s32.totalorder %s3005_s18, 0 }
   0xd   : > { %p3377_p4 = por %p51_p2, %p50_p1  ;;  %s38_s23 = ssub.s32 %s3299_s16, %s6950_s20 }
   0xe   : > { %p138_p6 = scmp.eq.s32.totalorder %s3005_s18, 1  ;;  %p41_p7 = scmp.eq.s32.totalorder %s38_s23, 0 }
   0xf   : > { %p3383_p8 = por %p57_p5, %p56_p3  ;;  %p144_p10 = scmp.eq.s32.totalorder %s3006_s19, 1 }
  0x10   : > { %p3387_p9 = por %p138_p6, %p50_p1  ;;  %p3051_p13 = scmp.lt.s32.totalorder %s3303_s17, 2 }
  0x11   : > { %s6420_s24 = scalar_select %p3383_p8, 1, 0 }
  0x12   : > { %s6421_s25 = scalar_select %p3387_p9, 1, 0 }
  0x13   : > { %s3392_s26 = scalar_select %p41_p7, %s3291_s14, %s43_s21  }
  0x14   : > { %p3394_p11 = por %p144_p10, %p56_p3  ;;  %s3401_s28 = sand.u32 1, %s3291_s14  }
  0x15   : > { %s3009_s29 = sshll.u32 %s3401_s28, 6  ;;  %s3030_s30 = sshll.u32 %s3299_s16, 10 }
  0x16   : > { %s6422_s27 = scalar_select %p3394_p11, 1, 0 }
  0x17   : > { %s3410_s6 = scalar_lea.hbm %s6268_s0, %s3030_s30  ;;  %s168_s7 = scalar_lea.vmem [#allocation2], %s3009_s29 }
  0x18   : > { %s177_s8 = sshll.u32 %s168_s7, 4  ;;  %p3418_p0 = pnand %p3051_p13, %p3377_p4  ;;  %s3414_s8 = int_to_ptr.vmem [resolvable:$true] %s177_s8 }
  0x19   : > { %s165_s10 = scalar_lea.sflag [#allocation3], %s3401_s28  ;;  %s3157_s11 = scalar_lea.hbm %s3410_s6, 1024 }
  0x1a   : > { %p3158_p2 = scmp.ne.s32.totalorder %s3410_s6, %s3157_s11  ;;  %p3159_p3 = pneg %p3418_p0 }
  0x1b   : > { %s3162_s21 = scalar_lea.hbm %s6268_s0, 2048  ;;  %p3163_p4 = scmp.lt.u32.totalorder %s3410_s6, %s6268_s0 }
  0x1c   : > { %p3160_p5 = pnand %p3159_p3, %p3158_p2  ;;  %p3164_p7 = scmp.lt.u32.totalorder %s3162_s21, %s3157_s11 }
  0x1d   : > { %p3166_p13 = scmp.lt.u32.totalorder %s3157_s11, %s3410_s6 }
  0x1e   : > { %p3161_p6 = pneg %p3160_p5  ;;  %p3165_p10 = por %p3164_p7, %p3163_p4 }
  0x20   : > { %p3167_p12 = por %p3166_p13, %p3165_p10 }
  0x22   : > { %p3168_p1 = pnand %p3167_p12, %p3161_p6 }
  0x24   : > { %3171 = shalt.err (!%p3168_p1)
}
  0x25   : > { %s3172_s4 = scalar_lea.vmem %s3414_s8, 1024  ;;  %s3305_s5 = smov [#allocation2]  }
  0x26   : > { %p3173_p2 = scmp.ne.s32.totalorder %s3414_s8, %s3172_s4  ;;  %s3177_s7 = sshll.u32 %s3305_s5, 4  ;;  %s3178_s7 = int_to_ptr.vmem [resolvable:$false] %s3177_s7 }
  0x27   : > { %s3179_s18 = scalar_lea.vmem %s3178_s7, 2048  ;;  %p3180_p9 = scmp.lt.s32.totalorder %s3414_s8, %s3178_s7 }
  0x28   : > { %p3175_p5 = pnand %p3173_p2, %p3159_p3  ;;  %p3181_p4 = scmp.lt.s32.totalorder %s3179_s18, %s3172_s4 }
  0x2a   : > { %p3176_p11 = pneg %p3175_p5  ;;  %p3182_p7 = por %p3181_p4, %p3180_p9 }
  0x2c   : > { %p3183_p10 = pnand %p3182_p7, %p3176_p11 }
  0x2e   : > { %3186 = shalt.err (!%p3183_p10)
}
  0x2f   : > { %s3306_s11 = smov 128   ;;  %s3307_s19 = smov 8  }
  0x30   : > { %3043 = dma.hbm_to_vmem [thread:$0]  (!%p3418_p0), %s3410_s6, 1024, %s3414_s8, %s165_s10, %s3306_s11, %s3306_s11, %s3307_s19  }
  0x31   : > { %p220_p9 = scmp.lt.s32.totalorder %s3303_s17, 3  ;;  %s3460_s23 = scalar_lea.hbm %s6269_s1, %s3030_s30 }
  0x32   : > { %p6424_p11 = scmp.ge.s32.totalorder %s3303_s17, 1  ;;  %s191_s5 = scalar_lea.vmem [#allocation5], %s3009_s29 }
  0x33   : > { %s200_s7 = sshll.u32 %s191_s5, 4  ;;  %s188_s6 = scalar_lea.sflag [#allocation6], %s3401_s28  ;;  %s3470_s7 = int_to_ptr.vmem [resolvable:$true] %s200_s7 }
  0x34   : > { %p3464_p12 = pnand %p6424_p11, %p220_p9  ;;  %s3187_s8 = scalar_lea.hbm %s3460_s23, 1024 }
  0x35   : > { %p3188_p1 = scmp.ne.s32.totalorder %s3460_s23, %s3187_s8  ;;  %s3192_s18 = scalar_lea.hbm %s6269_s1, 2048 }
  0x36   : > { %p3193_p2 = scmp.lt.u32.totalorder %s3460_s23, %s6269_s1  ;;  %p3194_p5 = scmp.lt.u32.totalorder %s3192_s18, %s3187_s8 }
  0x37   : > { %p3190_p6 = pnand %p3188_p1, %p3159_p3  ;;  %p3196_p7 = scmp.lt.u32.totalorder %s3187_s8, %s3460_s23 }
  0x38   : > { %p3195_p4 = por %p3194_p5, %p3193_p2 }
  0x39   : > { %p3191_p13 = pneg %p3190_p6 }
  0x3a   : > { %p3197_p10 = por %p3196_p7, %p3195_p4 }
  0x3c   : > { %p3198_p9 = pnand %p3197_p10, %p3191_p13 }
  0x3e   : > { %3201 = shalt.err (!%p3198_p9)
}
  0x3f   : > { %s3202_s29 = scalar_lea.vmem %s3470_s7, 1024  ;;  %s3308_s5 = smov [#allocation5]  }
  0x40   : > { %p3203_p11 = scmp.ne.s32.totalorder %s3470_s7, %s3202_s29  ;;  %s3207_s30 = sshll.u32 %s3308_s5, 4  ;;  %s3208_s30 = int_to_ptr.vmem [resolvable:$false] %s3207_s30 }
  0x41   : > { %s3209_s10 = scalar_lea.vmem %s3208_s30, 2048  ;;  %p3210_p8 = scmp.lt.s32.totalorder %s3470_s7, %s3208_s30 }
  0x42   : > { %p3205_p1 = pnand %p3203_p11, %p3159_p3  ;;  %p3211_p2 = scmp.lt.s32.totalorder %s3209_s10, %s3202_s29 }
  0x44   : > { %p3206_p6 = pneg %p3205_p1  ;;  %p3212_p5 = por %p3211_p2, %p3210_p8 }
  0x46   : > { %p3213_p4 = pnand %p3212_p5, %p3206_p6 }
  0x48   : > { %3216 = shalt.err (!%p3213_p4)
}
  0x49   : > { %3046 = dma.hbm_to_vmem [thread:$0]  (!%p3418_p0), %s3460_s23, 1024, %s3470_s7, %s188_s6, %s3306_s11, %s3306_s11, %s3307_s19  }
  0x4a   : > { %224 = sbr.rel (%p3464_p12) target bundleno = 1508 (0x5e4), region = 32 }
  0x51   : > { %s3504_s8 = sand.u32 1, %s3287_s13   ;;  %p6426_p8 = scmp.ne.s32.totalorder %s6420_s24, 0 }
  0x52   : > { %s3016_s18 = sshll.u32 %s3504_s8, 6  ;;  %s227_s21 = scalar_lea.sflag [#allocation3], %s3504_s8 }
  0x53   : > { %s3508_s9 = scalar_lea.vmem [#allocation2], %s3016_s18 }
  0x54   : > { %3270 = dma.done.wait (%p6426_p8), %s227_s21, 1024  }
  0x55   : > { %3272 = vsyncadd (%p6426_p8), %s227_s21, 4294966272  ;;  %s236_s28 = scalar_lea.sflag [#allocation6], %s3504_s8  ;;  %s3515_s11 = scalar_lea.vmem [#allocation5], %s3016_s18 }
  0x56   : > { %3274 = dma.done.wait (%p6426_p8), %s236_s28, 1024  }
  0x57   : > { %3276 = vsyncadd (%p6426_p8), %s236_s28, 4294966272  ;;  %p278_p0 = scmp.lt.s32.totalorder %s3295_s15, 1  ;;  %v3309_v0 = vmov 1966171168   ;;  %v320_v2 = vlaneseq  ;;  %v3524_v3 = vld [vmem:[%s3508_s9] sm:$0xff]  ;;  %v3527_v4 = vld [vmem:[%s3508_s9 + $0x10] sm:$0xff] }
  0x58   : > { %v318_v1 = vunpack.c.l.s4 %v3309_v0  ;;  %s3310_s24 = smov 1   ;;  %v3541_v7 = vld [vmem:[%s3508_s9 + $0x8] sm:$0xff]  ;;  %v3544_v8 = vld [vmem:[%s3508_s9 + $0x18] sm:$0xff]  ;;  %v3555_v12 = vld [vmem:[%s3508_s9 + $0x20] sm:$0xff]  ;;  %vm538_vm0 = vcmask 7168   ;;  %vm547_vm1 = vcmask 138240  }
  0x59   : > { %s279_s19 = scalar_select %p278_p0, %s3295_s15, 1  ;;  %v3529_v6 = vshrl.u32 %v320_v2, 7  ;;  %514 = vrot.lane.b32.xlu0 %v3524_v3, %s3310_s24  ;;  %518 = vrot.lane.b32.xlu1 %v3527_v4, %s3310_s24  ;;  %v3558_v13 = vld [vmem:[%s3508_s9 + $0x28] sm:$0xff]  ;;  %v3574_v17 = vld [vmem:[%s3508_s9 + $0x30] sm:$0xff]  ;;  %vm440_vm2 = vcmask 130048   ;;  %vm2728_vm5 = vcmask 122880  }
  0x5a   : > { %v319_v5 = vunpack.c.0.s8 %v318_v1  ;;  %v3577_v18 = vld [vmem:[%s3508_s9 + $0x38] sm:$0xff]  ;;  %v3631_v35 = vld [vmem:[%s3515_s11] sm:$0xff]  ;;  %v3634_v36 = vld [vmem:[%s3515_s11 + $0x8] sm:$0xff]  ;;  %s3311_s22 = smov 127   ;;  %s3312_s29 = smov 126   ;;  %vm2829_vm6 = vcmask 129030  }
  0x5b   : > { %s3032_s23 = sshll.u32 %s279_s19, 4  ;;  %6427 = vst [vmem:[#allocation11_spill] sm:$0xff] %v3529_v6  ;;  %v3564_v15 = vsub.s32 0, %v3529_v6  ;;  %v3641_v37 = vld [vmem:[%s3515_s11 + $0x10] sm:$0xff]  ;;  %v3644_v38 = vld [vmem:[%s3515_s11 + $0x18] sm:$0xff]  ;;  %v3651_v39 = vld [vmem:[%s3515_s11 + $0x20] sm:$0xff] }
  0x5c   : > { %s3538_s6 = scalar_lea.vmem %s6270_s2, %s3032_s23  ;;  %v3548_v10 = vsub.s32 %v319_v5, %v3529_v6  ;;  %v3654_v40 = vld [vmem:[%s3515_s11 + $0x28] sm:$0xff]  ;;  %v3661_v41 = vld [vmem:[%s3515_s11 + $0x30] sm:$0xff]  ;;  %v3664_v42 = vld [vmem:[%s3515_s11 + $0x38] sm:$0xff]  ;;  %vm782_vm3 = vcmp.lt.s32.totalorder %v3529_v6, 1  ;;  %vm807_vm4 = vcmp.lt.s32.totalorder %v3529_v6, 7  ;;  %s3018_s5 = sshll.u32 %s3504_s8, 4 }
  0x5d   : > { %v3021_v9 = vld.sshfl [vmem:[%s3538_s6] sm:$0x33 pattern:$0x75316420]  ;;  %516 = vrot.lane.b32.xlu0 %v3541_v7, %s3310_s24  ;;  %520 = vrot.lane.b32.xlu1 %v3544_v8, %s3310_s24  ;;  %s6190_s30 = scalar_lea.vmem [#allocation7], %s3018_s5  ;;  %s3033_s10 = sshll.u32 %s3295_s15, 8 }
  0x5e   : > { %v316_v11 = vcombine.high %v3021_v9, %v3021_v9  ;;  %v3561_v14 = vrot.slane %v3021_v9, %v3548_v10  ;;  %v3022_v19 = vld.sshfl [vmem:[%s3538_s6 + $0x4] sm:$0x33 pattern:$0x75316420]  ;;  %s2871_s18 = sshll.u32 %s6190_s30, 4  ;;  %s6215_s28 = scalar_lea.hbm %s6271_s3, %s3033_s10  ;;  %s6217_s18 = int_to_ptr.vmem [resolvable:$true] %s2871_s18 }
  0x5f   : > { %v345_v21 = vcombine.high %v3022_v19, %v3022_v19  ;;  %v3597_v25 = vrot.slane %v3022_v19, %v3548_v10  ;;  %s3217_s19 = scalar_lea.vmem %s6217_s18, 256  ;;  %p6941_p12 = scmp.ne.s32.totalorder %s6421_s25, 0 }
  0x60   : > { %v3571_v16 = vrot.slane %v316_v11, %v3548_v10  ;;  %v631_v20 = vrot.slane %v3561_v14, %v3564_v15  ;;  %v3590_v23 = vcombine.high %v3561_v14, %v3561_v14  ;;  %p3218_p3 = scmp.ne.s32.totalorder %s6217_s18, %s3217_s19  ;;  %s3313_s15 = smov [#allocation7]  }
  0x61   : > { %522 = vrot.lane.b32.xlu0 %v3555_v12, %s3310_s24  ;;  %524 = vrot.lane.b32.xlu1 %v3558_v13, %s3310_s24  ;;  %v3606_v28 = vrot.slane %v345_v21, %v3548_v10  ;;  %v703_v29 = vrot.slane %v3597_v25, %v3564_v15  ;;  %v3616_v31 = vcombine.high %v3597_v25, %v3597_v25  ;;  %s3221_s23 = sshll.u32 %s3313_s15, 4  ;;  %s3222_s23 = int_to_ptr.vmem [resolvable:$false] %s3221_s23 }
  0x62   : > { %v635_v22 = vrot.slane %v3571_v16, %v3564_v15  ;;  %v3594_v24 = vcombine.high %v3571_v16, %v3571_v16  ;;  %v639_v26 = vrot.slane %v3590_v23, %v3564_v15  ;;  %p3219_p13 = pnand %p3218_p3, %p6941_p12  ;;  %p3224_p10 = scmp.lt.s32.totalorder %s6217_s18, %s3222_s23 }
  0x63   : > { %v707_v30 = vrot.slane %v3606_v28, %v3564_v15  ;;  %v3620_v32 = vcombine.high %v3606_v28, %v3606_v28  ;;  %v711_v33 = vrot.slane %v3616_v31, %v3564_v15 }
  0x64   : > { %v643_v27 = vrot.slane %v3594_v24, %v3564_v15  ;;  %p3220_p7 = pneg %p3219_p13 }
  0x65   : > { %526 = vrot.lane.b32.xlu0 %v3574_v17, %s3310_s24  ;;  %528 = vrot.lane.b32.xlu1 %v3577_v18, %s3310_s24  ;;  %v715_v34 = vrot.slane %v3620_v32, %v3564_v15 }
  0x69   : > { %644 = vrot.lane.b32.xlu0 %v631_v20, %s3310_s24  ;;  %646 = vrot.lane.b32.xlu1 %v635_v22, %s3310_s24 }
  0x6d   : > { %648 = vrot.lane.b32.xlu0 %v639_v26, %s3310_s24  ;;  %650 = vrot.lane.b32.xlu1 %v643_v27, %s3310_s24 }
  0x71   : > { %716 = vrot.lane.b32.xlu0 %v703_v29, %s3310_s24  ;;  %718 = vrot.lane.b32.xlu1 %v707_v30, %s3310_s24 }
  0x75   : > { %720 = vrot.lane.b32.xlu0 %v711_v33, %s3310_s24  ;;  %722 = vrot.lane.b32.xlu1 %v715_v34, %s3310_s24 }
  0x79   : > { %900 = vrot.lane.b32.xlu0 %v3631_v35, %s3310_s24  ;;  %902 = vrot.lane.b32.xlu1 %v3634_v36, %s3310_s24 }
  0x7d   : > { %904 = vrot.lane.b32.xlu0 %v3641_v37, %s3310_s24  ;;  %906 = vrot.lane.b32.xlu1 %v3644_v38, %s3310_s24 }
  0x81   : > { %908 = vrot.lane.b32.xlu0 %v3651_v39, %s3310_s24  ;;  %910 = vrot.lane.b32.xlu1 %v3654_v40, %s3310_s24 }
  0x85   : > { %912 = vrot.lane.b32.xlu0 %v3661_v41, %s3310_s24  ;;  %914 = vrot.lane.b32.xlu1 %v3664_v42, %s3310_s24 }
  0xcb   : > { %v515_v43 = vpop.permute.xlu0 %514  ;;  %v519_v44 = vpop.permute.xlu1 %518 }
  0xcc   : > { %v539_v45 = vsel %vm538_vm0, 0.0, %v515_v43  ;;  %v541_v46 = vsel %vm538_vm0, 0.0, %v519_v44 }
  0xcd   : > { %v3673_v47 = vsel %vm547_vm1, %v539_v45, 0.0  ;;  %v3678_v49 = vsel %vm547_vm1, %v541_v46, 0.0 }
  0xce   : > { %564 = vrot.lane.b32.xlu0 %v3673_v47, %s3311_s22 }
  0xcf   : > { %v517_v48 = vpop.permute.xlu0 %516  ;;  %v521_v50 = vpop.permute.xlu1 %520 }
  0xd0   : > { %v540_v51 = vsel %vm538_vm0, 0.0, %v517_v48  ;;  %v542_v52 = vsel %vm538_vm0, 0.0, %v521_v50 }
  0xd1   : > { %v3683_v53 = vsel %vm547_vm1, %v540_v51, 0.0  ;;  %v3690_v55 = vsel %vm547_vm1, %v542_v52, 0.0 }
  0xd2   : > { %568 = vrot.lane.b32.xlu0 %v3678_v49, %s3311_s22  ;;  %566 = vrot.lane.b32.xlu1 %v3683_v53, %s3311_s22 }
  0xd3   : > { %v523_v54 = vpop.permute.xlu0 %522  ;;  %v525_v56 = vpop.permute.xlu1 %524 }
  0xd4   : > { %v543_v57 = vsel %vm538_vm0, 0.0, %v523_v54  ;;  %v544_v58 = vsel %vm538_vm0, 0.0, %v525_v56 }
  0xd5   : > { %v3695_v59 = vsel %vm547_vm1, %v543_v57, 0.0  ;;  %v3702_v61 = vsel %vm547_vm1, %v544_v58, 0.0 }
  0xd6   : > { %570 = vrot.lane.b32.xlu1 %v3690_v55, %s3311_s22  ;;  %572 = vrot.lane.b32.xlu0 %v3695_v59, %s3311_s22 }
  0xd7   : > { %v527_v60 = vpop.permute.xlu0 %526  ;;  %v529_v62 = vpop.permute.xlu1 %528 }
  0xd8   : > { %v545_v63 = vsel %vm538_vm0, 0.0, %v527_v60  ;;  %v546_v0 = vsel %vm538_vm0, 0.0, %v529_v62 }
  0xd9   : > { %v3707_v1 = vsel %vm547_vm1, %v545_v63, 0.0  ;;  %v3714_v5 = vsel %vm547_vm1, %v546_v0, 0.0 }
  0xda   : > { %6428 = vst [vmem:[#allocation12_spill] sm:$0xff] %v3707_v1  ;;  %574 = vrot.lane.b32.xlu1 %v3702_v61, %s3311_s22  ;;  %576 = vrot.lane.b32.xlu0 %v3707_v1, %s3311_s22 }
  0xdb   : > { %v645_v2 = vpop.permute.xlu0 %644  ;;  %v647_v9 = vpop.permute.xlu1 %646 }
  0xde   : > { %578 = vrot.lane.b32.xlu1 %v3714_v5, %s3311_s22  ;;  %596 = vrot.lane.b32.xlu0 %v3673_v47, %s3312_s29 }
  0xdf   : > { %v649_v11 = vpop.permute.xlu0 %648  ;;  %v3720_v19 = vpop.permute.xlu1 %650 }
  0xe2   : > { %598 = vrot.lane.b32.xlu1 %v3683_v53, %s3312_s29  ;;  %600 = vrot.lane.b32.xlu0 %v3678_v49, %s3312_s29 }
  0xe3   : > { %v717_v20 = vpop.permute.xlu0 %716  ;;  %v719_v21 = vpop.permute.xlu1 %718 }
  0xe6   : > { %602 = vrot.lane.b32.xlu1 %v3690_v55, %s3312_s29  ;;  %604 = vrot.lane.b32.xlu0 %v3695_v59, %s3312_s29 }
  0xe7   : > { %v721_v22 = vpop.permute.xlu0 %720  ;;  %v3730_v26 = vpop.permute.xlu1 %722 }
  0xea   : > { %606 = vrot.lane.b32.xlu1 %v3702_v61, %s3312_s29  ;;  %608 = vrot.lane.b32.xlu0 %v3707_v1, %s3312_s29 }
  0xeb   : > { %v901_v27 = vpop.permute.xlu0 %900  ;;  %v903_v29 = vpop.permute.xlu1 %902 }
  0xec   : > { %v924_v30 = vsel %vm538_vm0, 0.0, %v901_v27  ;;  %v925_v33 = vsel %vm538_vm0, 0.0, %v903_v29 }
  0xed   : > { %v3739_v34 = vsel %vm547_vm1, %v924_v30, 0.0  ;;  %v3746_v44 = vsel %vm547_vm1, %v925_v33, 0.0  ;;  %v656_v33 = vsel %vm538_vm0, 0.0, %v645_v2  ;;  %v728_v2 = vsel %vm538_vm0, 0.0, %v717_v20 }
  0xee   : > { %6429 = vst [vmem:[#allocation13_spill] sm:$0xff] %v3739_v34  ;;  %610 = vrot.lane.b32.xlu1 %v3714_v5, %s3312_s29  ;;  %948 = vrot.lane.b32.xlu0 %v3739_v34, %s3311_s22  ;;  %6430 = vst [vmem:[#allocation14_spill] sm:$0xff] %v3746_v44  ;;  %v658_v20 = vsel %vm538_vm0, 0.0, %v649_v11  ;;  %v730_v11 = vsel %vm538_vm0, 0.0, %v721_v22 }
  0xef   : > { %v905_v43 = vpop.permute.xlu0 %904  ;;  %v907_v45 = vpop.permute.xlu1 %906 }
  0xf0   : > { %v926_v46 = vsel %vm538_vm0, 0.0, %v905_v43  ;;  %v927_v48 = vsel %vm538_vm0, 0.0, %v907_v45  ;;  %v3790_v43 = vsel %vm547_vm1, %v656_v33, 0.0  ;;  %v657_v45 = vsel %vm538_vm0, 0.0, %v647_v9 }
  0xf1   : > { %v3751_v50 = vsel %vm547_vm1, %v926_v46, 0.0  ;;  %v3758_v52 = vsel %vm547_vm1, %v927_v48, 0.0  ;;  %6437 = vst [vmem:[#allocation21_spill] sm:$0xff] %v3790_v43  ;;  %v3798_v46 = vsel %vm547_vm1, %v657_v45, 0.0  ;;  %v3806_v48 = vsel %vm547_vm1, %v728_v2, 0.0 }
  0xf2   : > { %6431 = vst [vmem:[#allocation15_spill] sm:$0xff] %v3751_v50  ;;  %950 = vrot.lane.b32.xlu1 %v3746_v44, %s3311_s22  ;;  %952 = vrot.lane.b32.xlu0 %v3751_v50, %s3311_s22  ;;  %6432 = vst [vmem:[#allocation16_spill] sm:$0xff] %v3758_v52  ;;  %v729_v9 = vsel %vm538_vm0, 0.0, %v719_v21  ;;  %v659_v21 = vsel %vm538_vm0, 0.0, %v3720_v19  ;;  %v731_v19 = vsel %vm538_vm0, 0.0, %v3730_v26 }
  0xf3   : > { %v909_v51 = vpop.permute.xlu0 %908  ;;  %v911_v54 = vpop.permute.xlu1 %910  ;;  %6438 = vst [vmem:[#allocation22_spill] sm:$0xff] %v3798_v46  ;;  %6439 = vst [vmem:[#allocation23_spill] sm:$0xff] %v3806_v48  ;;  %v3852_v22 = vsel %vm547_vm1, %v731_v19, 0.0 }
  0xf4   : > { %v928_v56 = vsel %vm538_vm0, 0.0, %v909_v51  ;;  %v929_v57 = vsel %vm538_vm0, 0.0, %v911_v54  ;;  %v3814_v51 = vsel %vm547_vm1, %v729_v9, 0.0  ;;  %v3822_v54 = vsel %vm547_vm1, %v658_v20, 0.0  ;;  %6444 = vst [vmem:[#allocation28_spill] sm:$0xff] %v3852_v22 }
  0xf5   : > { %v3763_v58 = vsel %vm547_vm1, %v928_v56, 0.0  ;;  %v3770_v62 = vsel %vm547_vm1, %v929_v57, 0.0  ;;  %6440 = vst [vmem:[#allocation24_spill] sm:$0xff] %v3814_v51  ;;  %6441 = vst [vmem:[#allocation25_spill] sm:$0xff] %v3822_v54  ;;  %v3836_v56 = vsel %vm547_vm1, %v659_v21, 0.0  ;;  %v3839_v57 = vsel %vm547_vm1, %v730_v11, 0.0 }
  0xf6   : > { %6433 = vst [vmem:[#allocation17_spill] sm:$0xff] %v3763_v58  ;;  %954 = vrot.lane.b32.xlu1 %v3758_v52, %s3311_s22  ;;  %956 = vrot.lane.b32.xlu0 %v3763_v58, %s3311_s22  ;;  %6434 = vst [vmem:[#allocation18_spill] sm:$0xff] %v3770_v62 }
  0xf7   : > { %v913_v60 = vpop.permute.xlu0 %912  ;;  %v915_v63 = vpop.permute.xlu1 %914  ;;  %6442 = vst [vmem:[#allocation26_spill] sm:$0xff] %v3836_v56  ;;  %6443 = vst [vmem:[#allocation27_spill] sm:$0xff] %v3839_v57 }
  0xf8   : > { %v930_v0 = vsel %vm538_vm0, 0.0, %v913_v60  ;;  %v931_v27 = vsel %vm538_vm0, 0.0, %v915_v63  ;;  %v3023_v60 = vld.sshfl [vmem:[%s3538_s6 + $0x8] sm:$0x33 pattern:$0x75316420] }
  0xf9   : > { %v3775_v29 = vsel %vm547_vm1, %v930_v0, 0.0  ;;  %v3782_v30 = vsel %vm547_vm1, %v931_v27, 0.0  ;;  %v3864_v26 = vrot.slane %v3023_v60, %v3548_v10  ;;  %v374_v63 = vcombine.high %v3023_v60, %v3023_v60 }
  0xfa   : > { %6435 = vst [vmem:[#allocation19_spill] sm:$0xff] %v3775_v29  ;;  %958 = vrot.lane.b32.xlu1 %v3770_v62, %s3311_s22  ;;  %960 = vrot.lane.b32.xlu0 %v3775_v29, %s3311_s22  ;;  %6436 = vst [vmem:[#allocation20_spill] sm:$0xff] %v3782_v30 }
  0xfb   : > { %v1015_v0 = vrot.slane %v3864_v26, %v3564_v15  ;;  %v3873_v27 = vrot.slane %v374_v63, %v3548_v10  ;;  %v3877_v33 = vcombine.high %v3864_v26, %v3864_v26 }
  0xfd   : > { %v1019_v45 = vrot.slane %v3873_v27, %v3564_v15  ;;  %v1023_v2 = vrot.slane %v3877_v33, %v3564_v15  ;;  %v3888_v9 = vcombine.high %v3873_v27, %v3873_v27 }
  0xfe   : > { %962 = vrot.lane.b32.xlu1 %v3782_v30, %s3311_s22  ;;  %980 = vrot.lane.b32.xlu0 %v3739_v34, %s3312_s29 }
  0xff   : > { %v1027_v20 = vrot.slane %v3888_v9, %v3564_v15 }
 0x102   : > { %982 = vrot.lane.b32.xlu1 %v3746_v44, %s3312_s29  ;;  %668 = vrot.lane.b32.xlu0 %v3790_v43, %s3311_s22 }
 0x106   : > { %670 = vrot.lane.b32.xlu1 %v3798_v46, %s3311_s22  ;;  %684 = vrot.lane.b32.xlu0 %v3790_v43, %s3312_s29 }
 0x10a   : > { %686 = vrot.lane.b32.xlu1 %v3798_v46, %s3312_s29  ;;  %740 = vrot.lane.b32.xlu0 %v3806_v48, %s3311_s22 }
 0x10e   : > { %742 = vrot.lane.b32.xlu1 %v3814_v51, %s3311_s22  ;;  %756 = vrot.lane.b32.xlu0 %v3806_v48, %s3312_s29 }
 0x112   : > { %758 = vrot.lane.b32.xlu1 %v3814_v51, %s3312_s29  ;;  %672 = vrot.lane.b32.xlu0 %v3822_v54, %s3311_s22 }
 0x116   : > { %986 = vrot.lane.b32.xlu1 %v3758_v52, %s3312_s29  ;;  %688 = vrot.lane.b32.xlu0 %v3822_v54, %s3312_s29 }
 0x11a   : > { %674 = vrot.lane.b32.xlu1 %v3836_v56, %s3311_s22  ;;  %744 = vrot.lane.b32.xlu0 %v3839_v57, %s3311_s22 }
 0x11e   : > { %690 = vrot.lane.b32.xlu1 %v3836_v56, %s3312_s29  ;;  %760 = vrot.lane.b32.xlu0 %v3839_v57, %s3312_s29 }
 0x122   : > { %746 = vrot.lane.b32.xlu1 %v3852_v22, %s3311_s22  ;;  %984 = vrot.lane.b32.xlu0 %v3751_v50, %s3312_s29 }
 0x126   : > { %762 = vrot.lane.b32.xlu1 %v3852_v22, %s3312_s29  ;;  %988 = vrot.lane.b32.xlu0 %v3763_v58, %s3312_s29 }
 0x12a   : > { %990 = vrot.lane.b32.xlu1 %v3770_v62, %s3312_s29  ;;  %992 = vrot.lane.b32.xlu0 %v3775_v29, %s3312_s29 }
 0x12e   : > { %994 = vrot.lane.b32.xlu1 %v3782_v30, %s3312_s29  ;;  %1028 = vrot.lane.b32.xlu0 %v1015_v0, %s3310_s24 }
 0x132   : > { %1030 = vrot.lane.b32.xlu1 %v1019_v45, %s3310_s24  ;;  %1032 = vrot.lane.b32.xlu0 %v1023_v2, %s3310_s24 }
 0x136   : > { %1034 = vrot.lane.b32.xlu1 %v1027_v20, %s3310_s24 }
 0x140   : > { %v3895_v21 = vpop.permute.xlu0 %564 }
 0x144   : > { %v3897_v11 = vpop.permute.xlu1 %566  ;;  %v3899_v19 = vpop.permute.xlu0 %568 }
 0x148   : > { %v3901_v60 = vpop.permute.xlu1 %570  ;;  %v3903_v63 = vpop.permute.xlu0 %572 }
 0x14c   : > { %v3905_v0 = vpop.permute.xlu1 %574  ;;  %v3907_v45 = vpop.permute.xlu0 %576 }
 0x14d   : > { %6445 = vst [vmem:[#allocation29_spill] sm:$0xff] %v3907_v45 }
 0x150   : > { %v3909_v2 = vpop.permute.xlu1 %578  ;;  %v3911_v22 = vpop.permute.xlu0 %596 }
 0x151   : > { %6446 = vst [vmem:[#allocation30_spill] sm:$0xff] %v3909_v2 }
 0x154   : > { %v3913_v57 = vpop.permute.xlu1 %598  ;;  %v3915_v20 = vpop.permute.xlu0 %600 }
 0x158   : > { %v3917_v30 = vpop.permute.xlu1 %602  ;;  %v3919_v56 = vpop.permute.xlu0 %604 }
 0x15c   : > { %v3921_v54 = vpop.permute.xlu1 %606  ;;  %v3923_v51 = vpop.permute.xlu0 %608 }
 0x15d   : > { %6447 = vst [vmem:[#allocation31_spill] sm:$0xff] %v3923_v51 }
 0x160   : > { %v3925_v29 = vpop.permute.xlu1 %610  ;;  %v3927_v62 = vpop.permute.xlu0 %948 }
 0x161   : > { %6448 = vst [vmem:[#allocation32_spill] sm:$0xff] %v3925_v29  ;;  %6449 = vst [vmem:[#allocation33_spill] sm:$0xff] %v3927_v62 }
 0x164   : > { %v3929_v58 = vpop.permute.xlu1 %950  ;;  %v3931_v52 = vpop.permute.xlu0 %952 }
 0x165   : > { %6450 = vst [vmem:[#allocation34_spill] sm:$0xff] %v3929_v58  ;;  %6451 = vst [vmem:[#allocation35_spill] sm:$0xff] %v3931_v52 }
 0x168   : > { %v3933_v50 = vpop.permute.xlu1 %954  ;;  %v3935_v48 = vpop.permute.xlu0 %956 }
 0x169   : > { %6452 = vst [vmem:[#allocation36_spill] sm:$0xff] %v3933_v50  ;;  %6453 = vst [vmem:[#allocation37_spill] sm:$0xff] %v3935_v48 }
 0x16c   : > { %v3937_v46 = vpop.permute.xlu1 %958  ;;  %v3939_v43 = vpop.permute.xlu0 %960 }
 0x16d   : > { %6454 = vst [vmem:[#allocation38_spill] sm:$0xff] %v3937_v46  ;;  %6455 = vst [vmem:[#allocation39_spill] sm:$0xff] %v3939_v43 }
 0x170   : > { %v3941_v34 = vpop.permute.xlu1 %962  ;;  %v3943_v45 = vpop.permute.xlu0 %980 }
 0x171   : > { %6456 = vst [vmem:[#allocation40_spill] sm:$0xff] %v3941_v34  ;;  %6457 = vst [vmem:[#allocation41_spill] sm:$0xff] %v3943_v45 }
 0x174   : > { %v3945_v51 = vpop.permute.xlu1 %982  ;;  %v3947_v29 = vpop.permute.xlu0 %668 }
 0x175   : > { %6458 = vst [vmem:[#allocation42_spill] sm:$0xff] %v3945_v51  ;;  %6459 = vst [vmem:[#allocation43_spill] sm:$0xff] %v3947_v29 }
 0x178   : > { %v3949_v62 = vpop.permute.xlu1 %670  ;;  %v3951_v1 = vpop.permute.xlu0 %684 }
 0x179   : > { %6460 = vst [vmem:[#allocation44_spill] sm:$0xff] %v3949_v62  ;;  %6461 = vst [vmem:[#allocation45_spill] sm:$0xff] %v3951_v1 }
 0x17c   : > { %v3953_v52 = vpop.permute.xlu1 %686  ;;  %v3955_v50 = vpop.permute.xlu0 %740 }
 0x17d   : > { %6462 = vst [vmem:[#allocation46_spill] sm:$0xff] %v3953_v52  ;;  %6463 = vst [vmem:[#allocation47_spill] sm:$0xff] %v3955_v50 }
 0x180   : > { %v3957_v48 = vpop.permute.xlu1 %742  ;;  %v3959_v46 = vpop.permute.xlu0 %756 }
 0x181   : > { %6464 = vst [vmem:[#allocation48_spill] sm:$0xff] %v3957_v48  ;;  %6465 = vst [vmem:[#allocation49_spill] sm:$0xff] %v3959_v46 }
 0x184   : > { %v3961_v43 = vpop.permute.xlu1 %758  ;;  %v3963_v34 = vpop.permute.xlu0 %672 }
 0x185   : > { %6466 = vst [vmem:[#allocation50_spill] sm:$0xff] %v3961_v43  ;;  %6467 = vst [vmem:[#allocation51_spill] sm:$0xff] %v3963_v34 }
 0x188   : > { %v3965_v45 = vpop.permute.xlu1 %986  ;;  %v3967_v51 = vpop.permute.xlu0 %688 }
 0x189   : > { %6468 = vst [vmem:[#allocation52_spill] sm:$0xff] %v3965_v45  ;;  %6469 = vst [vmem:[#allocation53_spill] sm:$0xff] %v3967_v51 }
 0x18c   : > { %v3969_v29 = vpop.permute.xlu1 %674  ;;  %v3971_v62 = vpop.permute.xlu0 %744 }
 0x18d   : > { %6470 = vst [vmem:[#allocation54_spill] sm:$0xff] %v3969_v29  ;;  %6471 = vst [vmem:[#allocation55_spill] sm:$0xff] %v3971_v62 }
 0x190   : > { %v3973_v1 = vpop.permute.xlu1 %690  ;;  %v3975_v52 = vpop.permute.xlu0 %760 }
 0x191   : > { %6472 = vst [vmem:[#allocation56_spill] sm:$0xff] %v3973_v1  ;;  %6473 = vst [vmem:[#allocation57_spill] sm:$0xff] %v3975_v52 }
 0x194   : > { %v3977_v50 = vpop.permute.xlu1 %746  ;;  %v3979_v48 = vpop.permute.xlu0 %984 }
 0x195   : > { %6474 = vst [vmem:[#allocation58_spill] sm:$0xff] %v3977_v50  ;;  %6475 = vst [vmem:[#allocation59_spill] sm:$0xff] %v3979_v48 }
 0x198   : > { %v3981_v46 = vpop.permute.xlu1 %762  ;;  %v3983_v43 = vpop.permute.xlu0 %988 }
 0x199   : > { %6476 = vst [vmem:[#allocation60_spill] sm:$0xff] %v3981_v46  ;;  %6477 = vst [vmem:[#allocation61_spill] sm:$0xff] %v3983_v43  ;;  %v3024_v43 = vld.sshfl [vmem:[%s3538_s6 + $0xc] sm:$0x33 pattern:$0x75316420] }
 0x19c   : > { %v3985_v34 = vpop.permute.xlu1 %990  ;;  %v3987_v45 = vpop.permute.xlu0 %992 }
 0x19d   : > { %6478 = vst [vmem:[#allocation62_spill] sm:$0xff] %v3985_v34  ;;  %6479 = vst [vmem:[#allocation63_spill] sm:$0xff] %v3987_v45 }
 0x1a0   : > { %v3989_v51 = vpop.permute.xlu1 %994  ;;  %v1029_v62 = vpop.permute.xlu0 %1028 }
 0x1a1   : > { %6480 = vst [vmem:[#allocation64_spill] sm:$0xff] %v3989_v51  ;;  %v1040_v1 = vsel %vm538_vm0, 0.0, %v1029_v62 }
 0x1a2   : > { %v3993_v50 = vsel %vm547_vm1, %v1040_v1, 0.0 }
 0x1a3   : > { %6481 = vst [vmem:[#allocation65_spill] sm:$0xff] %v3993_v50  ;;  %1052 = vrot.lane.b32.xlu0 %v3993_v50, %s3311_s22 }
 0x1a4   : > { %v1031_v29 = vpop.permute.xlu1 %1030  ;;  %v1033_v52 = vpop.permute.xlu0 %1032 }
 0x1a5   : > { %v1041_v48 = vsel %vm538_vm0, 0.0, %v1031_v29  ;;  %v1042_v46 = vsel %vm538_vm0, 0.0, %v1033_v52  ;;  %v403_v52 = vcombine.high %v3024_v43, %v3024_v43 }
 0x1a6   : > { %v4000_v45 = vsel %vm547_vm1, %v1041_v48, 0.0  ;;  %v4005_v62 = vsel %vm547_vm1, %v1042_v46, 0.0  ;;  %v4019_v48 = vrot.slane %v3024_v43, %v3548_v10 }
 0x1a7   : > { %6482 = vst [vmem:[#allocation66_spill] sm:$0xff] %v4000_v45  ;;  %1054 = vrot.lane.b32.xlu1 %v4000_v45, %s3311_s22  ;;  %6483 = vst [vmem:[#allocation67_spill] sm:$0xff] %v4005_v62  ;;  %1056 = vrot.lane.b32.xlu0 %v4005_v62, %s3311_s22  ;;  %v4024_v46 = vrot.slane %v403_v52, %v3548_v10 }
 0x1a8   : > { %v1035_v51 = vpop.permute.xlu1 %1034 }
 0x1a9   : > { %v1043_v1 = vsel %vm538_vm0, 0.0, %v1035_v51  ;;  %v1087_v51 = vrot.slane %v4019_v48, %v3564_v15  ;;  %v1091_v43 = vrot.slane %v4024_v46, %v3564_v15  ;;  %v4040_v10 = vcombine.high %v4024_v46, %v4024_v46 }
 0x1aa   : > { %v4011_v29 = vsel %vm547_vm1, %v1043_v1, 0.0  ;;  %v4032_v1 = vcombine.high %v4019_v48, %v4019_v48 }
 0x1ab   : > { %6484 = vst [vmem:[#allocation68_spill] sm:$0xff] %v4011_v29  ;;  %1058 = vrot.lane.b32.xlu1 %v4011_v29, %s3311_s22  ;;  %1068 = vrot.lane.b32.xlu0 %v3993_v50, %s3312_s29 }
 0x1ac   : > { %v1095_v52 = vrot.slane %v4032_v1, %v3564_v15 }
 0x1af   : > { %1070 = vrot.lane.b32.xlu1 %v4000_v45, %s3312_s29  ;;  %1072 = vrot.lane.b32.xlu0 %v4005_v62, %s3312_s29  ;;  %v1099_v62 = vrot.slane %v4040_v10, %v3564_v15 }
 0x1b3   : > { %1074 = vrot.lane.b32.xlu1 %v4011_v29, %s3312_s29  ;;  %1100 = vrot.lane.b32.xlu0 %v1087_v51, %s3310_s24 }
 0x1b7   : > { %1102 = vrot.lane.b32.xlu1 %v1091_v43, %s3310_s24  ;;  %1104 = vrot.lane.b32.xlu0 %v1095_v52, %s3310_s24 }
 0x1bb   : > { %1106 = vrot.lane.b32.xlu1 %v1099_v62, %s3310_s24 }
 0x215   : > { %v4050_v29 = vpop.permute.xlu0 %1052 }
 0x216   : > { %6485 = vst [vmem:[#allocation69_spill] sm:$0xff] %v4050_v29 }
 0x219   : > { %v4052_v45 = vpop.permute.xlu1 %1054  ;;  %v4054_v50 = vpop.permute.xlu0 %1056 }
 0x21a   : > { %6486 = vst [vmem:[#allocation70_spill] sm:$0xff] %v4052_v45  ;;  %6487 = vst [vmem:[#allocation71_spill] sm:$0xff] %v4054_v50 }
 0x21d   : > { %v4056_v34 = vpop.permute.xlu1 %1058  ;;  %v4058_v51 = vpop.permute.xlu0 %1068 }
 0x21e   : > { %6488 = vst [vmem:[#allocation72_spill] sm:$0xff] %v4056_v34  ;;  %6489 = vst [vmem:[#allocation73_spill] sm:$0xff] %v4058_v51 }
 0x221   : > { %v4060_v58 = vpop.permute.xlu1 %1070  ;;  %v4062_v43 = vpop.permute.xlu0 %1072 }
 0x222   : > { %6490 = vst [vmem:[#allocation74_spill] sm:$0xff] %v4060_v58  ;;  %6491 = vst [vmem:[#allocation75_spill] sm:$0xff] %v4062_v43 }
 0x225   : > { %v4064_v44 = vpop.permute.xlu1 %1074  ;;  %v1101_v2 = vpop.permute.xlu0 %1100 }
 0x226   : > { %6492 = vst [vmem:[#allocation76_spill] sm:$0xff] %v4064_v44  ;;  %v1112_v52 = vsel %vm538_vm0, 0.0, %v1101_v2 }
 0x227   : > { %v4068_v29 = vsel %vm547_vm1, %v1112_v52, 0.0 }
 0x228   : > { %6493 = vst [vmem:[#allocation77_spill] sm:$0xff] %v4068_v29  ;;  %1124 = vrot.lane.b32.xlu0 %v4068_v29, %s3311_s22 }
 0x229   : > { %v1103_v62 = vpop.permute.xlu1 %1102  ;;  %v1105_v50 = vpop.permute.xlu0 %1104 }
 0x22a   : > { %v1113_v45 = vsel %vm538_vm0, 0.0, %v1103_v62  ;;  %v1114_v34 = vsel %vm538_vm0, 0.0, %v1105_v50  ;;  %v459_v50 = vmul.f32 %v3541_v7, %v3541_v7  ;;  %v463_v7 = vmul.f32 %v3558_v13, %v3558_v13 }
 0x22b   : > { %v4075_v43 = vsel %vm547_vm1, %v1113_v45, 0.0  ;;  %v4078_v44 = vsel %vm547_vm1, %v1114_v34, 0.0  ;;  %v458_v34 = vmul.f32 %v3524_v3, %v3524_v3  ;;  %v461_v45 = vmul.f32 %v3544_v8, %v3544_v8 }
 0x22c   : > { %6494 = vst [vmem:[#allocation78_spill] sm:$0xff] %v4075_v43  ;;  %6495 = vst [vmem:[#allocation79_spill] sm:$0xff] %v4078_v44  ;;  %1126 = vrot.lane.b32.xlu1 %v4075_v43, %s3311_s22  ;;  %1128 = vrot.lane.b32.xlu0 %v4078_v44, %s3311_s22  ;;  %v462_v3 = vmul.f32 %v3555_v12, %v3555_v12  ;;  %v465_v8 = vmul.f32 %v3577_v18, %v3577_v18 }
 0x22d   : > { %v1107_v58 = vpop.permute.xlu1 %1106 }
 0x22e   : > { %v1115_v2 = vsel %vm538_vm0, 0.0, %v1107_v58  ;;  %v460_v58 = vmul.f32 %v3527_v4, %v3527_v4  ;;  %v464_v4 = vmul.f32 %v3574_v17, %v3574_v17 }
 0x22f   : > { %v4086_v52 = vsel %vm547_vm1, %v1115_v2, 0.0 }
 0x230   : > { %6496 = vst [vmem:[#allocation80_spill] sm:$0xff] %v4086_v52  ;;  %1130 = vrot.lane.b32.xlu1 %v4086_v52, %s3311_s22  ;;  %1140 = vrot.lane.b32.xlu0 %v4068_v29, %s3312_s29 }
 0x234   : > { %1142 = vrot.lane.b32.xlu1 %v4075_v43, %s3312_s29  ;;  %1144 = vrot.lane.b32.xlu0 %v4078_v44, %s3312_s29 }
 0x238   : > { %1146 = vrot.lane.b32.xlu1 %v4086_v52, %s3312_s29  ;;  %1280 = vrot.lane.b32.xlu0 %v458_v34, %s3310_s24 }
 0x23c   : > { %1282 = vrot.lane.b32.xlu1 %v459_v50, %s3310_s24  ;;  %1284 = vrot.lane.b32.xlu0 %v460_v58, %s3310_s24 }
 0x240   : > { %1286 = vrot.lane.b32.xlu1 %v461_v45, %s3310_s24  ;;  %1288 = vrot.lane.b32.xlu0 %v462_v3, %s3310_s24 }
 0x244   : > { %1290 = vrot.lane.b32.xlu1 %v463_v7, %s3310_s24  ;;  %1292 = vrot.lane.b32.xlu0 %v464_v4, %s3310_s24 }
 0x248   : > { %1294 = vrot.lane.b32.xlu1 %v465_v8, %s3310_s24 }
 0x29a   : > { %v4122_v12 = vpop.permute.xlu0 %1124 }
 0x29b   : > { %6497 = vst [vmem:[#allocation81_spill] sm:$0xff] %v4122_v12 }
 0x29e   : > { %v4124_v62 = vpop.permute.xlu1 %1126  ;;  %v4126_v2 = vpop.permute.xlu0 %1128 }
 0x29f   : > { %6498 = vst [vmem:[#allocation82_spill] sm:$0xff] %v4124_v62  ;;  %6499 = vst [vmem:[#allocation83_spill] sm:$0xff] %v4126_v2 }
 0x2a2   : > { %v4128_v13 = vpop.permute.xlu1 %1130  ;;  %v4130_v34 = vpop.permute.xlu0 %1140 }
 0x2a3   : > { %6500 = vst [vmem:[#allocation84_spill] sm:$0xff] %v4128_v13  ;;  %6501 = vst [vmem:[#allocation85_spill] sm:$0xff] %v4130_v34  ;;  %v469_v34 = vmul.f32 %v3594_v24, %v3594_v24 }
 0x2a6   : > { %v4132_v17 = vpop.permute.xlu1 %1142  ;;  %v4134_v50 = vpop.permute.xlu0 %1144 }
 0x2a7   : > { %6502 = vst [vmem:[#allocation86_spill] sm:$0xff] %v4132_v17  ;;  %6503 = vst [vmem:[#allocation87_spill] sm:$0xff] %v4134_v50 }
 0x2aa   : > { %v4136_v58 = vpop.permute.xlu1 %1146  ;;  %v1281_v18 = vpop.permute.xlu0 %1280 }
 0x2ab   : > { %6504 = vst [vmem:[#allocation88_spill] sm:$0xff] %v4136_v58  ;;  %v1304_v45 = vsel %vm538_vm0, 0.0, %v1281_v18 }
 0x2ac   : > { %v4140_v3 = vsel %vm547_vm1, %v1304_v45, 0.0 }
 0x2ad   : > { %1328 = vrot.lane.b32.xlu0 %v4140_v3, %s3311_s22 }
 0x2ae   : > { %v1283_v7 = vpop.permute.xlu1 %1282  ;;  %v1285_v8 = vpop.permute.xlu0 %1284 }
 0x2af   : > { %v1305_v4 = vsel %vm538_vm0, 0.0, %v1283_v7  ;;  %v1306_v50 = vsel %vm538_vm0, 0.0, %v1285_v8 }
 0x2b0   : > { %v4146_v13 = vsel %vm547_vm1, %v1305_v4, 0.0  ;;  %v4152_v45 = vsel %vm547_vm1, %v1306_v50, 0.0 }
 0x2b1   : > { %1330 = vrot.lane.b32.xlu1 %v4146_v13, %s3311_s22  ;;  %1332 = vrot.lane.b32.xlu0 %v4152_v45, %s3311_s22 }
 0x2b2   : > { %v1287_v58 = vpop.permute.xlu1 %1286  ;;  %v1289_v18 = vpop.permute.xlu0 %1288 }
 0x2b3   : > { %v1307_v52 = vsel %vm538_vm0, 0.0, %v1287_v58  ;;  %v1308_v4 = vsel %vm538_vm0, 0.0, %v1289_v18 }
 0x2b4   : > { %v4158_v7 = vsel %vm547_vm1, %v1307_v52, 0.0  ;;  %v4162_v8 = vsel %vm547_vm1, %v1308_v4, 0.0 }
 0x2b5   : > { %6505 = vst [vmem:[#allocation89_spill] sm:$0xff] %v4162_v8  ;;  %1334 = vrot.lane.b32.xlu1 %v4158_v7, %s3311_s22  ;;  %1336 = vrot.lane.b32.xlu0 %v4162_v8, %s3311_s22 }
 0x2b6   : > { %v1291_v2 = vpop.permute.xlu1 %1290  ;;  %v1293_v44 = vpop.permute.xlu0 %1292 }
 0x2b7   : > { %v1309_v50 = vsel %vm538_vm0, 0.0, %v1291_v2  ;;  %v1310_v17 = vsel %vm538_vm0, 0.0, %v1293_v44  ;;  %v466_v44 = vmul.f32 %v3561_v14, %v3561_v14 }
 0x2b8   : > { %v4168_v58 = vsel %vm547_vm1, %v1309_v50, 0.0  ;;  %v4174_v52 = vsel %vm547_vm1, %v1310_v17, 0.0  ;;  %v467_v17 = vmul.f32 %v3571_v16, %v3571_v16 }
 0x2b9   : > { %6506 = vst [vmem:[#allocation90_spill] sm:$0xff] %v4168_v58  ;;  %6507 = vst [vmem:[#allocation91_spill] sm:$0xff] %v4174_v52  ;;  %1338 = vrot.lane.b32.xlu1 %v4168_v58, %s3311_s22  ;;  %1340 = vrot.lane.b32.xlu0 %v4174_v52, %s3311_s22  ;;  %v1399_v50 = vrot.slane %v466_v44, %v3564_v15 }
 0x2ba   : > { %v1295_v18 = vpop.permute.xlu1 %1294 }
 0x2bb   : > { %v1311_v4 = vsel %vm538_vm0, 0.0, %v1295_v18  ;;  %v468_v18 = vmul.f32 %v3590_v23, %v3590_v23 }
 0x2bc   : > { %v4180_v2 = vsel %vm547_vm1, %v1311_v4, 0.0  ;;  %v1403_v4 = vrot.slane %v467_v17, %v3564_v15 }
 0x2bd   : > { %6508 = vst [vmem:[#allocation92_spill] sm:$0xff] %v4180_v2  ;;  %1342 = vrot.lane.b32.xlu1 %v4180_v2, %s3311_s22  ;;  %1360 = vrot.lane.b32.xlu0 %v4140_v3, %s3312_s29  ;;  %v1407_v62 = vrot.slane %v468_v18, %v3564_v15 }
 0x2c1   : > { %1362 = vrot.lane.b32.xlu1 %v4146_v13, %s3312_s29  ;;  %1364 = vrot.lane.b32.xlu0 %v4152_v45, %s3312_s29 }
 0x2c5   : > { %1366 = vrot.lane.b32.xlu1 %v4158_v7, %s3312_s29  ;;  %1368 = vrot.lane.b32.xlu0 %v4162_v8, %s3312_s29 }
 0x2c9   : > { %1370 = vrot.lane.b32.xlu1 %v4168_v58, %s3312_s29  ;;  %1372 = vrot.lane.b32.xlu0 %v4174_v52, %s3312_s29  ;;  %v1411_v52 = vrot.slane %v469_v34, %v3564_v15 }
 0x2cd   : > { %1374 = vrot.lane.b32.xlu1 %v4180_v2, %s3312_s29  ;;  %1412 = vrot.lane.b32.xlu0 %v1399_v50, %s3310_s24 }
 0x2d1   : > { %1414 = vrot.lane.b32.xlu1 %v1403_v4, %s3310_s24  ;;  %1416 = vrot.lane.b32.xlu0 %v1407_v62, %s3310_s24 }
 0x2d5   : > { %1418 = vrot.lane.b32.xlu1 %v1411_v52, %s3310_s24 }
 0x31f   : > { %v4218_v44 = vpop.permute.xlu0 %1328 }
 0x323   : > { %v4220_v2 = vpop.permute.xlu1 %1330  ;;  %v4222_v17 = vpop.permute.xlu0 %1332 }
 0x324   : > { %6509 = vst [vmem:[#allocation93_spill] sm:$0xff] %v4222_v17 }
 0x327   : > { %v4224_v43 = vpop.permute.xlu1 %1334  ;;  %v4226_v12 = vpop.permute.xlu0 %1336 }
 0x328   : > { %6510 = vst [vmem:[#allocation94_spill] sm:$0xff] %v4226_v12 }
 0x32b   : > { %v4228_v50 = vpop.permute.xlu1 %1338  ;;  %v4230_v18 = vpop.permute.xlu0 %1340 }
 0x32c   : > { %6511 = vst [vmem:[#allocation95_spill] sm:$0xff] %v4228_v50  ;;  %6512 = vst [vmem:[#allocation96_spill] sm:$0xff] %v4230_v18 }
 0x32f   : > { %v4232_v4 = vpop.permute.xlu1 %1342  ;;  %v4234_v34 = vpop.permute.xlu0 %1360 }
 0x330   : > { %6513 = vst [vmem:[#allocation97_spill] sm:$0xff] %v4232_v4  ;;  %6514 = vst [vmem:[#allocation98_spill] sm:$0xff] %v4234_v34 }
 0x333   : > { %v4236_v62 = vpop.permute.xlu1 %1362  ;;  %v4238_v52 = vpop.permute.xlu0 %1364 }
 0x334   : > { %6515 = vst [vmem:[#allocation99_spill] sm:$0xff] %v4238_v52 }
 0x337   : > { %v4240_v29 = vpop.permute.xlu1 %1366  ;;  %v4242_v51 = vpop.permute.xlu0 %1368 }
 0x338   : > { %6516 = vst [vmem:[#allocation100_spill] sm:$0xff] %v4240_v29  ;;  %6517 = vst [vmem:[#allocation101_spill] sm:$0xff] %v4242_v51 }
 0x33b   : > { %v4244_v8 = vpop.permute.xlu1 %1370  ;;  %v4246_v58 = vpop.permute.xlu0 %1372 }
 0x33c   : > { %6518 = vst [vmem:[#allocation102_spill] sm:$0xff] %v4244_v8  ;;  %6519 = vst [vmem:[#allocation103_spill] sm:$0xff] %v4246_v58 }
 0x33f   : > { %v4248_v12 = vpop.permute.xlu1 %1374  ;;  %v1413_v50 = vpop.permute.xlu0 %1412 }
 0x340   : > { %6520 = vst [vmem:[#allocation104_spill] sm:$0xff] %v4248_v12  ;;  %v1424_v4 = vsel %vm538_vm0, 0.0, %v1413_v50 }
 0x341   : > { %v4253_v17 = vsel %vm547_vm1, %v1424_v4, 0.0 }
 0x342   : > { %6521 = vst [vmem:[#allocation105_spill] sm:$0xff] %v4253_v17  ;;  %1436 = vrot.lane.b32.xlu0 %v4253_v17, %s3311_s22 }
 0x343   : > { %v1415_v18 = vpop.permute.xlu1 %1414  ;;  %v1417_v51 = vpop.permute.xlu0 %1416 }
 0x344   : > { %v1425_v34 = vsel %vm538_vm0, 0.0, %v1415_v18  ;;  %v1426_v58 = vsel %vm538_vm0, 0.0, %v1417_v51  ;;  %v471_v51 = vmul.f32 %v3606_v28, %v3606_v28 }
 0x345   : > { %v4256_v52 = vsel %vm547_vm1, %v1425_v34, 0.0  ;;  %v4264_v50 = vsel %vm547_vm1, %v1426_v58, 0.0  ;;  %v470_v34 = vmul.f32 %v3597_v25, %v3597_v25 }
 0x346   : > { %6522 = vst [vmem:[#allocation106_spill] sm:$0xff] %v4256_v52  ;;  %1438 = vrot.lane.b32.xlu1 %v4256_v52, %s3311_s22  ;;  %6523 = vst [vmem:[#allocation107_spill] sm:$0xff] %v4264_v50  ;;  %1440 = vrot.lane.b32.xlu0 %v4264_v50, %s3311_s22  ;;  %v1479_v58 = vrot.slane %v471_v51, %v3564_v15 }
 0x347   : > { %v1419_v12 = vpop.permute.xlu1 %1418 }
 0x348   : > { %v1427_v18 = vsel %vm538_vm0, 0.0, %v1419_v12  ;;  %v1475_v12 = vrot.slane %v470_v34, %v3564_v15 }
 0x349   : > { %v4268_v4 = vsel %vm547_vm1, %v1427_v18, 0.0  ;;  %v472_v18 = vmul.f32 %v3616_v31, %v3616_v31 }
 0x34a   : > { %6524 = vst [vmem:[#allocation108_spill] sm:$0xff] %v4268_v4  ;;  %1442 = vrot.lane.b32.xlu1 %v4268_v4, %s3311_s22  ;;  %1452 = vrot.lane.b32.xlu0 %v4253_v17, %s3312_s29  ;;  %v473_v17 = vmul.f32 %v3620_v32, %v3620_v32 }
 0x34b   : > { %v1483_v34 = vrot.slane %v472_v18, %v3564_v15 }
 0x34e   : > { %1454 = vrot.lane.b32.xlu1 %v4256_v52, %s3312_s29  ;;  %1456 = vrot.lane.b32.xlu0 %v4264_v50, %s3312_s29  ;;  %v1487_v52 = vrot.slane %v473_v17, %v3564_v15 }
 0x352   : > { %1458 = vrot.lane.b32.xlu1 %v4268_v4, %s3312_s29  ;;  %1488 = vrot.lane.b32.xlu0 %v1475_v12, %s3310_s24 }
 0x356   : > { %1490 = vrot.lane.b32.xlu1 %v1479_v58, %s3310_s24  ;;  %1492 = vrot.lane.b32.xlu0 %v1483_v34, %s3310_s24 }
 0x35a   : > { %1494 = vrot.lane.b32.xlu1 %v1487_v52, %s3310_s24 }
 0x3b4   : > { %v4298_v4 = vpop.permute.xlu0 %1436 }
 0x3b5   : > { %6525 = vst [vmem:[#allocation109_spill] sm:$0xff] %v4298_v4 }
 0x3b8   : > { %v4300_v51 = vpop.permute.xlu1 %1438  ;;  %v4302_v50 = vpop.permute.xlu0 %1440 }
 0x3b9   : > { %6526 = vst [vmem:[#allocation110_spill] sm:$0xff] %v4300_v51  ;;  %6527 = vst [vmem:[#allocation111_spill] sm:$0xff] %v4302_v50 }
 0x3bc   : > { %v4304_v8 = vpop.permute.xlu1 %1442  ;;  %v4306_v29 = vpop.permute.xlu0 %1452 }
 0x3bd   : > { %6528 = vst [vmem:[#allocation112_spill] sm:$0xff] %v4304_v8  ;;  %6529 = vst [vmem:[#allocation113_spill] sm:$0xff] %v4306_v29 }
 0x3c0   : > { %v4308_v12 = vpop.permute.xlu1 %1454  ;;  %v4310_v58 = vpop.permute.xlu0 %1456 }
 0x3c1   : > { %6530 = vst [vmem:[#allocation114_spill] sm:$0xff] %v4308_v12  ;;  %6531 = vst [vmem:[#allocation115_spill] sm:$0xff] %v4310_v58 }
 0x3c4   : > { %v4312_v18 = vpop.permute.xlu1 %1458  ;;  %v1489_v17 = vpop.permute.xlu0 %1488 }
 0x3c5   : > { %6532 = vst [vmem:[#allocation116_spill] sm:$0xff] %v4312_v18  ;;  %v1500_v52 = vsel %vm538_vm0, 0.0, %v1489_v17 }
 0x3c6   : > { %v4317_v51 = vsel %vm547_vm1, %v1500_v52, 0.0 }
 0x3c7   : > { %6533 = vst [vmem:[#allocation117_spill] sm:$0xff] %v4317_v51  ;;  %1512 = vrot.lane.b32.xlu0 %v4317_v51, %s3311_s22 }
 0x3c8   : > { %v1491_v34 = vpop.permute.xlu1 %1490  ;;  %v1493_v8 = vpop.permute.xlu0 %1492 }
 0x3c9   : > { %v1501_v4 = vsel %vm538_vm0, 0.0, %v1491_v34  ;;  %v1502_v58 = vsel %vm538_vm0, 0.0, %v1493_v8  ;;  %v474_v8 = vmul.f32 %v3631_v35, %v3631_v35 }
 0x3ca   : > { %v4320_v50 = vsel %vm547_vm1, %v1501_v4, 0.0  ;;  %v4329_v34 = vsel %vm547_vm1, %v1502_v58, 0.0  ;;  %v475_v4 = vmul.f32 %v3634_v36, %v3634_v36  ;;  %v476_v58 = vmul.f32 %v3641_v37, %v3641_v37 }
 0x3cb   : > { %6534 = vst [vmem:[#allocation118_spill] sm:$0xff] %v4320_v50  ;;  %1514 = vrot.lane.b32.xlu1 %v4320_v50, %s3311_s22  ;;  %6535 = vst [vmem:[#allocation119_spill] sm:$0xff] %v4329_v34  ;;  %1516 = vrot.lane.b32.xlu0 %v4329_v34, %s3311_s22 }
 0x3cc   : > { %v1495_v18 = vpop.permute.xlu1 %1494 }
 0x3cd   : > { %v1503_v17 = vsel %vm538_vm0, 0.0, %v1495_v18  ;;  %v477_v18 = vmul.f32 %v3644_v38, %v3644_v38 }
 0x3ce   : > { %v4332_v52 = vsel %vm547_vm1, %v1503_v17, 0.0  ;;  %v478_v17 = vmul.f32 %v3651_v39, %v3651_v39 }
 0x3cf   : > { %6536 = vst [vmem:[#allocation120_spill] sm:$0xff] %v4332_v52  ;;  %1518 = vrot.lane.b32.xlu1 %v4332_v52, %s3311_s22  ;;  %1528 = vrot.lane.b32.xlu0 %v4317_v51, %s3312_s29 }
 0x3d3   : > { %1530 = vrot.lane.b32.xlu1 %v4320_v50, %s3312_s29  ;;  %1532 = vrot.lane.b32.xlu0 %v4329_v34, %s3312_s29 }
 0x3d7   : > { %1534 = vrot.lane.b32.xlu1 %v4332_v52, %s3312_s29  ;;  %1668 = vrot.lane.b32.xlu0 %v474_v8, %s3310_s24  ;;  %v479_v52 = vmul.f32 %v3654_v40, %v3654_v40  ;;  %v480_v8 = vmul.f32 %v3661_v41, %v3661_v41 }
 0x3db   : > { %1670 = vrot.lane.b32.xlu1 %v475_v4, %s3310_s24  ;;  %1672 = vrot.lane.b32.xlu0 %v476_v58, %s3310_s24  ;;  %v481_v4 = vmul.f32 %v3664_v42, %v3664_v42 }
 0x3df   : > { %1674 = vrot.lane.b32.xlu1 %v477_v18, %s3310_s24  ;;  %1676 = vrot.lane.b32.xlu0 %v478_v17, %s3310_s24 }
 0x3e3   : > { %1678 = vrot.lane.b32.xlu1 %v479_v52, %s3310_s24  ;;  %1680 = vrot.lane.b32.xlu0 %v480_v8, %s3310_s24  ;;  %v482_v8 = vmul.f32 %v3864_v26, %v3864_v26 }
 0x3e7   : > { %1682 = vrot.lane.b32.xlu1 %v481_v4, %s3310_s24 }
 0x439   : > { %v4370_v58 = vpop.permute.xlu0 %1512 }
 0x43a   : > { %6537 = vst [vmem:[#allocation121_spill] sm:$0xff] %v4370_v58 }
 0x43d   : > { %v4372_v18 = vpop.permute.xlu1 %1514  ;;  %v4374_v34 = vpop.permute.xlu0 %1516 }
 0x43e   : > { %6538 = vst [vmem:[#allocation122_spill] sm:$0xff] %v4372_v18  ;;  %6539 = vst [vmem:[#allocation123_spill] sm:$0xff] %v4374_v34  ;;  %v483_v18 = vmul.f32 %v3873_v27, %v3873_v27 }
 0x441   : > { %v4376_v50 = vpop.permute.xlu1 %1518  ;;  %v4378_v17 = vpop.permute.xlu0 %1528 }
 0x442   : > { %6540 = vst [vmem:[#allocation124_spill] sm:$0xff] %v4376_v50  ;;  %6541 = vst [vmem:[#allocation125_spill] sm:$0xff] %v4378_v17 }
 0x445   : > { %v4380_v52 = vpop.permute.xlu1 %1530  ;;  %v4382_v51 = vpop.permute.xlu0 %1532 }
 0x446   : > { %6542 = vst [vmem:[#allocation126_spill] sm:$0xff] %v4380_v52  ;;  %6543 = vst [vmem:[#allocation127_spill] sm:$0xff] %v4382_v51  ;;  %v1791_v51 = vrot.slane %v483_v18, %v3564_v15  ;;  %v488_v18 = vmul.f32 %v4032_v1, %v4032_v1 }
 0x449   : > { %v4384_v12 = vpop.permute.xlu1 %1534  ;;  %v1669_v4 = vpop.permute.xlu0 %1668 }
 0x44a   : > { %6544 = vst [vmem:[#allocation128_spill] sm:$0xff] %v4384_v12  ;;  %v1692_v34 = vsel %vm538_vm0, 0.0, %v1669_v4  ;;  %v1787_v12 = vrot.slane %v482_v8, %v3564_v15  ;;  %v486_v4 = vmul.f32 %v4019_v48, %v4019_v48 }
 0x44b   : > { %v4393_v17 = vsel %vm547_vm1, %v1692_v34, 0.0 }
 0x44c   : > { %1716 = vrot.lane.b32.xlu0 %v4393_v17, %s3311_s22  ;;  %v1863_v34 = vrot.slane %v486_v4, %v3564_v15  ;;  %v489_v4 = vmul.f32 %v4040_v10, %v4040_v10 }
 0x44d   : > { %v1671_v29 = vpop.permute.xlu1 %1670 }
 0x44e   : > { %v1693_v50 = vsel %vm538_vm0, 0.0, %v1671_v29  ;;  %v487_v29 = vmul.f32 %v4024_v46, %v4024_v46 }
 0x44f   : > { %v4396_v52 = vsel %vm547_vm1, %v1693_v50, 0.0  ;;  %v484_v50 = vmul.f32 %v3877_v33, %v3877_v33 }
 0x450   : > { %6545 = vst [vmem:[#allocation129_spill] sm:$0xff] %v4396_v52  ;;  %1718 = vrot.lane.b32.xlu1 %v4396_v52, %s3311_s22  ;;  %1800 = vrot.lane.b32.xlu0 %v1787_v12, %s3310_s24  ;;  %v1867_v8 = vrot.slane %v487_v29, %v3564_v15  ;;  %v1871_v12 = vrot.slane %v488_v18, %v3564_v15  ;;  %v4436_v18 = vld [vmem:[%s3508_s9 + $0x8] sm:$0xff] }
 0x451   : > { %v1795_v58 = vrot.slane %v484_v50, %v3564_v15  ;;  %v1875_v50 = vrot.slane %v489_v4, %v3564_v15  ;;  %v4448_v4 = vld [vmem:[%s3508_s9 + $0x18] sm:$0xff] }
 0x454   : > { %1802 = vrot.lane.b32.xlu1 %v1791_v51, %s3310_s24  ;;  %1876 = vrot.lane.b32.xlu0 %v1863_v34, %s3310_s24  ;;  %v485_v51 = vmul.f32 %v3888_v9, %v3888_v9  ;;  %v4431_v34 = vld [vmem:[%s3508_s9] sm:$0xff] }
 0x456   : > { %v1799_v29 = vrot.slane %v485_v51, %v3564_v15 }
 0x458   : > { %1878 = vrot.lane.b32.xlu1 %v1867_v8, %s3310_s24  ;;  %1804 = vrot.lane.b32.xlu0 %v1795_v58, %s3310_s24  ;;  %v490_v8 = vmul.f32 %v4431_v34, %v3631_v35  ;;  %v491_v58 = vmul.f32 %v4436_v18, %v3634_v36  ;;  %v493_v35 = vmul.f32 %v4448_v4, %v3644_v38  ;;  %v4455_v36 = vld [vmem:[%s3508_s9 + $0x20] sm:$0xff]  ;;  %v4469_v38 = vld [vmem:[%s3508_s9 + $0x30] sm:$0xff] }
 0x45c   : > { %1880 = vrot.lane.b32.xlu1 %v1871_v12, %s3310_s24  ;;  %1806 = vrot.lane.b32.xlu0 %v1799_v29, %s3310_s24  ;;  %v4443_v12 = vld [vmem:[%s3508_s9 + $0x10] sm:$0xff]  ;;  %v494_v29 = vmul.f32 %v4455_v36, %v3651_v39 }
 0x45d   : > { %v492_v51 = vmul.f32 %v4443_v12, %v3641_v37  ;;  %v498_v37 = vmul.f32 %v3864_v26, %v3561_v14  ;;  %v502_v26 = vmul.f32 %v4019_v48, %v3597_v25  ;;  %v1673_v25 = vpop.permute.xlu0 %1672  ;;  %v1675_v48 = vpop.permute.xlu1 %1674 }
 0x460   : > { %1882 = vrot.lane.b32.xlu1 %v1875_v50, %s3310_s24  ;;  %2056 = vrot.lane.b32.xlu0 %v490_v8, %s3310_s24  ;;  %v4460_v50 = vld [vmem:[%s3508_s9 + $0x28] sm:$0xff] }
 0x461   : > { %v495_v8 = vmul.f32 %v4460_v50, %v3654_v40  ;;  %v499_v40 = vmul.f32 %v3873_v27, %v3571_v16  ;;  %v2251_v16 = vrot.slane %v502_v26, %v3564_v15 }
 0x463   : > { %v2179_v14 = vrot.slane %v499_v40, %v3564_v15 }
 0x464   : > { %2058 = vrot.lane.b32.xlu1 %v491_v58, %s3310_s24  ;;  %2060 = vrot.lane.b32.xlu0 %v492_v51, %s3310_s24  ;;  %v496_v58 = vmul.f32 %v4469_v38, %v3661_v41  ;;  %v4474_v51 = vld [vmem:[%s3508_s9 + $0x38] sm:$0xff]  ;;  %v503_v41 = vmul.f32 %v4024_v46, %v3606_v28  ;;  %v501_v28 = vmul.f32 %v3888_v9, %v3594_v24 }
 0x465   : > { %v497_v39 = vmul.f32 %v4474_v51, %v3664_v42  ;;  %v500_v42 = vmul.f32 %v3877_v33, %v3590_v23  ;;  %v505_v33 = vmul.f32 %v4040_v10, %v3620_v32 }
 0x466   : > { %v2255_v27 = vrot.slane %v503_v41, %v3564_v15 }
 0x467   : > { %v2263_v46 = vrot.slane %v505_v33, %v3564_v15  ;;  %v3152_v33 = vld [vmem:[%s3515_s11 + $0x18] sm:$0xff] }
 0x468   : > { %2062 = vrot.lane.b32.xlu1 %v493_v35, %s3310_s24  ;;  %2064 = vrot.lane.b32.xlu0 %v494_v29, %s3310_s24  ;;  %v2175_v35 = vrot.slane %v498_v37, %v3564_v15  ;;  %v504_v29 = vmul.f32 %v4032_v1, %v3616_v31  ;;  %v2187_v31 = vrot.slane %v501_v28, %v3564_v15  ;;  %v1677_v1 = vpop.permute.xlu0 %1676  ;;  %v1694_v37 = vsel %vm538_vm0, 0.0, %v1673_v25 }
 0x469   : > { %v4513_v24 = vsel %vm547_vm1, %v1694_v37, 0.0  ;;  %v1696_v9 = vsel %vm538_vm0, 0.0, %v1677_v1  ;;  %v3153_v37 = vld [vmem:[%s3515_s11 + $0x20] sm:$0xff] }
 0x46a   : > { %v2259_v23 = vrot.slane %v504_v29, %v3564_v15  ;;  %6546 = vst [vmem:[#allocation130_spill] sm:$0xff] %v4513_v24  ;;  %v4525_v40 = vsel %vm547_vm1, %v1696_v9, 0.0  ;;  %v3154_v9 = vld [vmem:[%s3515_s11 + $0x28] sm:$0xff] }
 0x46b   : > { %6548 = vst [vmem:[#allocation132_spill] sm:$0xff] %v4525_v40 }
 0x46c   : > { %2066 = vrot.lane.b32.xlu1 %v495_v8, %s3310_s24  ;;  %2068 = vrot.lane.b32.xlu0 %v496_v58, %s3310_s24  ;;  %v2183_v8 = vrot.slane %v500_v42, %v3564_v15  ;;  %v1695_v58 = vsel %vm538_vm0, 0.0, %v1675_v48  ;;  %v1681_v10 = vpop.permute.xlu0 %1680  ;;  %v427_v48 = vsub.f32 %v3152_v33, %v4448_v4  ;;  %v3155_v4 = vld [vmem:[%s3515_s11 + $0x30] sm:$0xff] }
 0x46d   : > { %v4516_v32 = vsel %vm547_vm1, %v1695_v58, 0.0  ;;  %v428_v58 = vsub.f32 %v3153_v37, %v4455_v36  ;;  %v590_v37 = vadd.f32 %v3899_v19, %v3678_v49 }
 0x46e   : > { %6547 = vst [vmem:[#allocation131_spill] sm:$0xff] %v4516_v32 }
 0x470   : > { %2070 = vrot.lane.b32.xlu1 %v497_v39, %s3310_s24  ;;  %2188 = vrot.lane.b32.xlu0 %v2175_v35, %s3310_s24  ;;  %v1679_v39 = vpop.permute.xlu1 %1678 }
 0x471   : > { %v1697_v15 = vsel %vm538_vm0, 0.0, %v1679_v39  ;;  %v435_v39 = vand.u32 2147483647, %v427_v48 }
 0x472   : > { %v4528_v35 = vsel %vm547_vm1, %v1697_v15, 0.0 }
 0x473   : > { %6549 = vst [vmem:[#allocation133_spill] sm:$0xff] %v4528_v35 }
 0x474   : > { %2190 = vrot.lane.b32.xlu1 %v2179_v14, %s3310_s24  ;;  %2264 = vrot.lane.b32.xlu0 %v2251_v16, %s3310_s24  ;;  %v1698_v14 = vsel %vm538_vm0, 0.0, %v1681_v10  ;;  %v1683_v41 = vpop.permute.xlu1 %1682  ;;  %v436_v10 = vand.u32 2147483647, %v428_v58 }
 0x475   : > { %v4536_v26 = vsel %vm547_vm1, %v1698_v14, 0.0  ;;  %v1699_v42 = vsel %vm538_vm0, 0.0, %v1683_v41  ;;  %v430_v14 = vsub.f32 %v3155_v4, %v4469_v38  ;;  %v449_v41 = vsel %vm440_vm2, %v435_v39, 0.0 }
 0x476   : > { %6550 = vst [vmem:[#allocation134_spill] sm:$0xff] %v4536_v26  ;;  %v4548_v16 = vsel %vm547_vm1, %v1699_v42, 0.0 }
 0x477   : > { %6551 = vst [vmem:[#allocation135_spill] sm:$0xff] %v4548_v16  ;;  %v438_v33 = vand.u32 2147483647, %v430_v14 }
 0x478   : > { %2266 = vrot.lane.b32.xlu1 %v2255_v27, %s3310_s24  ;;  %2192 = vrot.lane.b32.xlu0 %v2183_v8, %s3310_s24  ;;  %v3149_v27 = vld [vmem:[%s3515_s11] sm:$0xff]  ;;  %v3150_v8 = vld [vmem:[%s3515_s11 + $0x8] sm:$0xff] }
 0x479   : > { %v424_v29 = vsub.f32 %v3149_v27, %v4431_v34  ;;  %v425_v25 = vsub.f32 %v3150_v8, %v4436_v18  ;;  %v429_v34 = vsub.f32 %v3154_v9, %v4460_v50  ;;  %v3156_v27 = vld [vmem:[%s3515_s11 + $0x38] sm:$0xff]  ;;  %v589_v50 = vadd.f32 %v3897_v11, %v3683_v53 }
 0x47a   : > { %v431_v36 = vsub.f32 %v3156_v27, %v4474_v51  ;;  %v588_v8 = vadd.f32 %v3895_v21, %v3673_v47  ;;  %v446_v11 = vsel %vm440_vm2, %v438_v33, 0.0  ;;  %v6557_v33 = vld [vmem:[#allocation12_spill] sm:$0xff] }
 0x47b   : > { %v437_v42 = vand.u32 2147483647, %v429_v34 }
 0x47c   : > { %2268 = vrot.lane.b32.xlu1 %v2259_v23, %s3310_s24  ;;  %2194 = vrot.lane.b32.xlu0 %v2187_v31, %s3310_s24  ;;  %v3151_v23 = vld [vmem:[%s3515_s11 + $0x10] sm:$0xff]  ;;  %v432_v31 = vand.u32 2147483647, %v424_v29  ;;  %v439_v48 = vand.u32 2147483647, %v431_v36  ;;  %v6554_v36 = vld [vmem:[#allocation30_spill] sm:$0xff] }
 0x47d   : > { %v426_v28 = vsub.f32 %v3151_v23, %v4443_v12  ;;  %v451_v38 = vsel %vm440_vm2, %v437_v42, 0.0  ;;  %s2856_s11 = scalar_lea.sflag [#allocation4], %s3504_s8 }
 0x47e   : > { %v441_v18 = vsel %vm440_vm2, %v432_v31, 0.0  ;;  %v4586_v31 = vadd.f32 %v3911_v22, %v588_v8  ;;  %v453_v47 = vsel %vm440_vm2, %v439_v48, 0.0  ;;  %v6555_v8 = vld [vmem:[#allocation14_spill] sm:$0xff] }
 0x47f   : > { %v434_v1 = vand.u32 2147483647, %v426_v28  ;;  %v444_v28 = vsel %vm440_vm2, %v436_v10, 0.0 }
 0x480   : > { %2270 = vrot.lane.b32.xlu1 %v2263_v46, %s3310_s24  ;;  %1720 = vrot.lane.b32.xlu0 %v4513_v24, %s3311_s22  ;;  %v433_v46 = vand.u32 2147483647, %v425_v25  ;;  %v621_v25 = vadd.f32 %v3913_v57, %v589_v50  ;;  %v591_v57 = vadd.f32 %v3901_v60, %v3690_v55  ;;  %v772_v21 = vrot.slane %v4586_v31, 7  ;;  %s3223_s24 = scalar_lea.vmem %s3222_s23, 512 }
 0x481   : > { %v442_v15 = vsel %vm440_vm2, %v434_v1, 0.0  ;;  %v593_v55 = vadd.f32 %v3905_v0, %v3702_v61  ;;  %v4611_v60 = vrot.slane %v4586_v31, 1  ;;  %v595_v50 = vadd.f32 %v6554_v36, %v3714_v5  ;;  %p3225_p9 = scmp.lt.s32.totalorder %s3223_s24, %s3217_s19 }
 0x482   : > { %v448_v12 = vsel %vm440_vm2, %v433_v46, 0.0  ;;  %v443_v29 = vadd.f32 %v442_v15, %v441_v18  ;;  %v776_v46 = vrot.slane %v621_v25, 7  ;;  %v4599_v58 = vadd.f32 %v3917_v30, %v591_v57  ;;  %v6560_v57 = vld [vmem:[#allocation13_spill] sm:$0xff] }
 0x483   : > { %v450_v23 = vadd.f32 %v449_v41, %v448_v12  ;;  %v803_v34 = vrot.slane %v621_v25, 1  ;;  %v4604_v18 = vadd.f32 %v3915_v20, %v590_v37  ;;  %v592_v15 = vadd.f32 %v3903_v63, %v3695_v59  ;;  %v6562_v37 = vld [vmem:[#allocation42_spill] sm:$0xff]  ;;  %p3226_p11 = por %p3225_p9, %p3224_p10 }
 0x484   : > { %1722 = vrot.lane.b32.xlu1 %v4516_v32, %s3311_s22  ;;  %1724 = vrot.lane.b32.xlu0 %v4525_v40, %s3311_s22  ;;  %v445_v51 = vadd.f32 %v444_v28, %v443_v29  ;;  %v787_v22 = vsel %vm782_vm3, %v776_v46, %v772_v21  ;;  %v783_v9 = vsel %vm782_vm3, %v772_v21, %v776_v46  ;;  %v777_v30 = vrot.slane %v4599_v58, 7  ;;  %v6561_v21 = vld [vmem:[#allocation33_spill] sm:$0xff] }
 0x485   : > { %v452_v53 = vadd.f32 %v451_v38, %v450_v23  ;;  %v791_v49 = vadd.f32 %v787_v22, %v4586_v31  ;;  %v792_v10 = vadd.f32 %v783_v9, %v621_v25  ;;  %v4617_v20 = vadd.f32 %v3921_v54, %v593_v55  ;;  %v6556_v23 = vld [vmem:[#allocation34_spill] sm:$0xff]  ;;  %v6558_v38 = vld [vmem:[#allocation29_spill] sm:$0xff]  ;;  %p3227_p1 = pnand %p3226_p11, %p3220_p7 }
 0x486   : > { %v447_v1 = vadd.f32 %v446_v11, %v445_v51  ;;  %v808_v61 = vsel %vm807_vm4, %v4611_v60, %v803_v34  ;;  %v773_v0 = vrot.slane %v4604_v18, 7  ;;  %v4624_v14 = vadd.f32 %v3919_v56, %v592_v15  ;;  %v6559_v11 = vld [vmem:[#allocation32_spill] sm:$0xff] }
 0x487   : > { %v454_v39 = vadd.f32 %v453_v47, %v452_v53  ;;  %v816_v4 = vadd.f32 %v808_v61, %v791_v49  ;;  %v812_v41 = vsel %vm807_vm4, %v803_v34, %v4611_v60  ;;  %v778_v27 = vrot.slane %v4617_v20, 7 }
 0x488   : > { %1726 = vrot.lane.b32.xlu1 %v4528_v35, %s3311_s22  ;;  %1728 = vrot.lane.b32.xlu0 %v4536_v26, %s3311_s22  ;;  %v456_v19 = vmul.f32 0.25, %v447_v1  ;;  %v788_v59 = vsel %vm782_vm3, %v777_v30, %v773_v0  ;;  %v817_v42 = vadd.f32 %v812_v41, %v792_v10  ;;  %v784_v56 = vsel %vm782_vm3, %v773_v0, %v777_v30  ;;  %v6565_v10 = vld [vmem:[#allocation31_spill] sm:$0xff]  ;;  %v6566_v0 = vld [vmem:[#allocation41_spill] sm:$0xff] }
 0x489   : > { %v457_v12 = vmul.f32 0.25, %v454_v39  ;;  %v4641_v29 = vrot.slane %v4599_v58, 1  ;;  %v973_v28 = vadd.f32 %v6556_v23, %v6555_v8  ;;  %v594_v48 = vadd.f32 %v6558_v38, %v6557_v33 }
 0x48a   : > { %v4631_v63 = vmul.f32 0.15, %v456_v19  ;;  %v4647_v51 = vmul.f32 0.11111111, %v816_v4  ;;  %v793_v46 = vadd.f32 %v788_v59, %v4604_v18  ;;  %v774_v53 = vrot.slane %v4624_v14, 7 }
 0x48b   : > { %v4633_v54 = vmul.f32 0.15, %v457_v12  ;;  %v4652_v5 = vrot.slane %v4604_v18, 1  ;;  %v4655_v47 = vadd.f32 %v6559_v11, %v595_v50  ;;  %v972_v1 = vadd.f32 %v6561_v21, %v6560_v57 }
 0x48c   : > { %1748 = vrot.lane.b32.xlu1 %v4393_v17, %s3312_s29  ;;  %1750 = vrot.lane.b32.xlu0 %v4396_v52, %s3312_s29  ;;  %6552 = vst [vmem:[#allocation136_spill] sm:$0xff] %v4631_v63  ;;  %v4660_v22 = vadd.f32 %v6562_v37, %v973_v28  ;;  %v4666_v55 = vmul.f32 0.11111111, %v817_v42  ;;  %v794_v49 = vadd.f32 %v784_v56, %v4599_v58  ;;  %v4678_v15 = vrot.slane %v4624_v14, 1  ;;  %v6605_v52 = vld [vmem:[#allocation25_spill] sm:$0xff] }
 0x48d   : > { %6553 = vst [vmem:[#allocation137_spill] sm:$0xff] %v4633_v54  ;;  %v789_v19 = vsel %vm782_vm3, %v778_v27, %v774_v53  ;;  %v4671_v30 = vadd.f32 %v803_v34, %v621_v25  ;;  %v809_v12 = vsel %vm807_vm4, %v4652_v5, %v4641_v29  ;;  %v4681_v61 = vadd.f32 %v6565_v10, %v594_v48 }
 0x48e   : > { %v4684_v4 = vadd.f32 %v6566_v0, %v972_v1  ;;  %v4688_v41 = vmul.f32 %v4647_v51, %v4647_v51  ;;  %v813_v25 = vsel %vm807_vm4, %v4641_v29, %v4652_v5  ;;  %v818_v34 = vadd.f32 %v809_v12, %v793_v46 }
 0x48f   : > { %v805_v59 = vrot.slane %v4617_v20, 1  ;;  %v785_v42 = vsel %vm782_vm3, %v774_v53, %v778_v27  ;;  %v795_v36 = vadd.f32 %v789_v19, %v4624_v14  ;;  %v779_v50 = vrot.slane %v4655_v47, 7 }
 0x490   : > { %1752 = vrot.lane.b32.xlu1 %v4513_v24, %s3312_s29  ;;  %1754 = vrot.lane.b32.xlu0 %v4516_v32, %s3312_s29  ;;  %6567 = vst [vmem:[#allocation34_spill] sm:$0xff] %v4684_v4  ;;  %v1160_v56 = vrot.slane %v4660_v22, 7  ;;  %v4702_v28 = vmul.f32 %v4666_v55, %v4666_v55  ;;  %v819_v33 = vadd.f32 %v813_v25, %v794_v49  ;;  %v775_v46 = vrot.slane %v4681_v61, 7  ;;  %v6589_v32 = vld [vmem:[#allocation46_spill] sm:$0xff] }
 0x491   : > { %v1156_v27 = vrot.slane %v4684_v4, 7  ;;  %v796_v57 = vadd.f32 %v785_v42, %v4617_v20  ;;  %v810_v21 = vsel %vm807_vm4, %v4678_v15, %v805_v59  ;;  %v814_v1 = vsel %vm807_vm4, %v805_v59, %v4678_v15 }
 0x492   : > { %v4722_v37 = vrot.slane %v4681_v61, 1  ;;  %v4728_v49 = vmul.f32 0.11111111, %v818_v34  ;;  %v820_v19 = vadd.f32 %v810_v21, %v795_v36  ;;  %v790_v12 = vsel %vm782_vm3, %v779_v50, %v775_v46 }
 0x493   : > { %v1168_v10 = vsel %vm782_vm3, %v1160_v56, %v1156_v27  ;;  %v786_v42 = vsel %vm782_vm3, %v775_v46, %v779_v50  ;;  %v1164_v34 = vsel %vm782_vm3, %v1156_v27, %v1160_v56  ;;  %v4742_v36 = vrot.slane %v4660_v22, 1 }
 0x494   : > { %1730 = vrot.lane.b32.xlu1 %v4548_v16, %s3311_s22  ;;  %1756 = vrot.lane.b32.xlu0 %v4525_v40, %s3312_s29  ;;  %6570 = vst [vmem:[#allocation32_spill] sm:$0xff] %v4728_v49  ;;  %v4750_v54 = vmul.f32 0.11111111, %v819_v33  ;;  %v821_v50 = vadd.f32 %v814_v1, %v796_v57  ;;  %v797_v46 = vadd.f32 %v790_v12, %v4681_v61  ;;  %v4760_v27 = vrot.slane %v4684_v4, 1 }
 0x495   : > { %v798_v56 = vadd.f32 %v786_v42, %v4655_v47  ;;  %v4766_v57 = vadd.f32 %v4641_v29, %v4599_v58  ;;  %v4774_v42 = vadd.f32 %v805_v59, %v4617_v20 }
 0x496   : > { %6573 = vst [vmem:[#allocation42_spill] sm:$0xff] %v4750_v54  ;;  %6574 = vst [vmem:[#allocation31_spill] sm:$0xff] %v4760_v27  ;;  %v1188_v29 = vsel %vm807_vm4, %v4760_v27, %v4742_v36 }
 0x498   : > { %1758 = vrot.lane.b32.xlu1 %v4528_v35, %s3312_s29 }
 0x4be   : > { %v4662_v39 = vpop.permute.xlu0 %1716 }
 0x4bf   : > { %6563 = vst [vmem:[#allocation30_spill] sm:$0xff] %v4662_v39 }
 0x4c2   : > { %v4664_v9 = vpop.permute.xlu1 %1718  ;;  %v1801_v8 = vpop.permute.xlu0 %1800 }
 0x4c3   : > { %6564 = vst [vmem:[#allocation14_spill] sm:$0xff] %v4664_v9  ;;  %v1812_v38 = vsel %vm538_vm0, 0.0, %v1801_v8  ;;  %v806_v8 = vrot.slane %v4655_v47, 1 }
 0x4c4   : > { %v4709_v53 = vsel %vm547_vm1, %v1812_v38, 0.0 }
 0x4c5   : > { %6568 = vst [vmem:[#allocation12_spill] sm:$0xff] %v4709_v53  ;;  %1824 = vrot.lane.b32.xlu0 %v4709_v53, %s3311_s22  ;;  %v811_v58 = vsel %vm807_vm4, %v4722_v37, %v806_v8  ;;  %v815_v20 = vsel %vm807_vm4, %v806_v8, %v4722_v37 }
 0x4c6   : > { %v1803_v23 = vpop.permute.xlu1 %1802  ;;  %v1877_v0 = vpop.permute.xlu0 %1876  ;;  %v822_v59 = vadd.f32 %v811_v58, %v797_v46  ;;  %v4809_v58 = vmul.f32 %v4750_v54, %v4750_v54 }
 0x4c7   : > { %v1813_v48 = vsel %vm538_vm0, 0.0, %v1803_v23  ;;  %v1888_v23 = vsel %vm538_vm0, 0.0, %v1877_v0  ;;  %v1172_v0 = vadd.f32 %v1168_v10, %v4684_v4  ;;  %v4770_v10 = vmul.f32 %v4728_v49, %v4728_v49 }
 0x4c8   : > { %v4712_v11 = vsel %vm547_vm1, %v1813_v48, 0.0  ;;  %v4745_v48 = vsel %vm547_vm1, %v1888_v23, 0.0  ;;  %v6576_v23 = vld [vmem:[#allocation43_spill] sm:$0xff]  ;;  %v4777_v4 = vmul.f32 0.11111111, %v820_v19 }
 0x4c9   : > { %6569 = vst [vmem:[#allocation29_spill] sm:$0xff] %v4712_v11  ;;  %1826 = vrot.lane.b32.xlu1 %v4712_v11, %s3311_s22  ;;  %6571 = vst [vmem:[#allocation13_spill] sm:$0xff] %v4745_v48  ;;  %1900 = vrot.lane.b32.xlu0 %v4745_v48, %s3311_s22  ;;  %v4787_v49 = vmul.f32 0.11111111, %v821_v50  ;;  %v1196_v19 = vadd.f32 %v1188_v29, %v1172_v0  ;;  %v6580_v50 = vld [vmem:[#allocation22_spill] sm:$0xff] }
 0x4ca   : > { %v1879_v25 = vpop.permute.xlu1 %1878  ;;  %v1805_v1 = vpop.permute.xlu0 %1804  ;;  %6577 = vst [vmem:[#allocation41_spill] sm:$0xff] %v4777_v4 }
 0x4cb   : > { %v1889_v38 = vsel %vm538_vm0, 0.0, %v1879_v25  ;;  %v6575_v25 = vld [vmem:[#allocation21_spill] sm:$0xff]  ;;  %v1814_v63 = vsel %vm538_vm0, 0.0, %v1805_v1  ;;  %v6581_v1 = vld [vmem:[#allocation44_spill] sm:$0xff]  ;;  %v4824_v54 = vmul.f32 %v4787_v49, %v4787_v49 }
 0x4cc   : > { %v4748_v21 = vsel %vm547_vm1, %v1889_v38, 0.0  ;;  %v680_v33 = vadd.f32 %v6576_v23, %v6575_v25  ;;  %v1173_v38 = vadd.f32 %v1164_v34, %v4660_v22  ;;  %v6578_v25 = vld [vmem:[#allocation45_spill] sm:$0xff]  ;;  %6579 = vst [vmem:[#allocation21_spill] sm:$0xff] %v4787_v49  ;;  %v823_v34 = vadd.f32 %v815_v20, %v798_v56  ;;  %v6584_v56 = vld [vmem:[#allocation23_spill] sm:$0xff]  ;;  %v6600_v49 = vld [vmem:[#allocation38_spill] sm:$0xff] }
 0x4cd   : > { %6572 = vst [vmem:[#allocation33_spill] sm:$0xff] %v4748_v21  ;;  %1902 = vrot.lane.b32.xlu1 %v4748_v21, %s3311_s22  ;;  %1760 = vrot.lane.b32.xlu0 %v4536_v26, %s3312_s29  ;;  %v4803_v35 = vsel %vm547_vm1, %v1814_v63, 0.0  ;;  %6583 = vst [vmem:[#allocation45_spill] sm:$0xff] %v4809_v58  ;;  %v6585_v20 = vld [vmem:[#allocation47_spill] sm:$0xff] }
 0x4ce   : > { %v1881_v12 = vpop.permute.xlu1 %1880  ;;  %v696_v23 = vadd.f32 %v6578_v25, %v680_v33  ;;  %v1192_v33 = vsel %vm807_vm4, %v4742_v36, %v4760_v27  ;;  %v681_v25 = vadd.f32 %v6581_v1, %v6580_v50  ;;  %6582 = vst [vmem:[#allocation43_spill] sm:$0xff] %v4803_v35  ;;  %v1807_v46 = vpop.permute.xlu0 %1806  ;;  %v4816_v27 = vmul.f32 %v4777_v4, %v4777_v4  ;;  %v6587_v50 = vld [vmem:[#allocation15_spill] sm:$0xff] }
 0x4cf   : > { %v1197_v29 = vadd.f32 %v1192_v33, %v1173_v38  ;;  %v1890_v26 = vsel %vm538_vm0, 0.0, %v1881_v12  ;;  %v6588_v63 = vld [vmem:[#allocation35_spill] sm:$0xff]  ;;  %6590 = vst [vmem:[#allocation44_spill] sm:$0xff] %v4824_v54  ;;  %v4826_v38 = vmul.f32 0.11111111, %v822_v59 }
 0x4d0   : > { %6586 = vst [vmem:[#allocation22_spill] sm:$0xff] %v4816_v27  ;;  %v974_v1 = vadd.f32 %v6588_v63, %v6587_v50  ;;  %v832_v40 = vadd.f32 %v696_v23, %v4586_v31  ;;  %v697_v24 = vadd.f32 %v6589_v32, %v681_v25  ;;  %v1204_v33 = vmul.f32 0.11111111, %v1196_v19  ;;  %v6594_v31 = vld [vmem:[#allocation16_spill] sm:$0xff]  ;;  %v6596_v25 = vld [vmem:[#allocation17_spill] sm:$0xff]  ;;  %v6606_v58 = vld [vmem:[#allocation51_spill] sm:$0xff] }
 0x4d1   : > { %1762 = vrot.lane.b32.xlu1 %v4548_v16, %s3312_s29  ;;  %v752_v16 = vadd.f32 %v6585_v20, %v6584_v56  ;;  %6591 = vst [vmem:[#allocation23_spill] sm:$0xff] %v4826_v38  ;;  %v6592_v56 = vld [vmem:[#allocation49_spill] sm:$0xff]  ;;  %1828 = vrot.lane.b32.xlu0 %v4803_v35, %s3311_s22  ;;  %v4833_v20 = vmul.f32 0.11111111, %v823_v34  ;;  %v6595_v23 = vld [vmem:[#allocation36_spill] sm:$0xff]  ;;  %v4842_v59 = vsel %vm547_vm1, %v1890_v26, 0.0  ;;  %v682_v39 = vadd.f32 %v6606_v58, %v6605_v52 }
 0x4d2   : > { %v4805_v0 = vpop.permute.xlu1 %1882  ;;  %v975_v32 = vadd.f32 %v6595_v23, %v6594_v31  ;;  %v6597_v50 = vld [vmem:[#allocation37_spill] sm:$0xff]  ;;  %6598 = vst [vmem:[#allocation15_spill] sm:$0xff] %v4842_v59  ;;  %v4844_v19 = vpop.permute.xlu0 %2056  ;;  %v6602_v34 = vld [vmem:[#allocation39_spill] sm:$0xff]  ;;  %v1205_v27 = vmul.f32 0.11111111, %v1197_v29  ;;  %v4855_v31 = vadd.f32 %v806_v8, %v4655_v47  ;;  %v848_v23 = vadd.f32 %v832_v40, %v4611_v60  ;;  %v6612_v40 = vld [vmem:[#allocation50_spill] sm:$0xff] }
 0x4d3   : > { %v768_v12 = vadd.f32 %v6592_v56, %v752_v16  ;;  %6593 = vst [vmem:[#allocation47_spill] sm:$0xff] %v4833_v20  ;;  %v4839_v63 = vadd.f32 %v6597_v50, %v6596_v25  ;;  %v6599_v56 = vld [vmem:[#allocation18_spill] sm:$0xff]  ;;  %v833_v26 = vadd.f32 %v697_v24, %v4604_v18  ;;  %v6603_v25 = vld [vmem:[#allocation24_spill] sm:$0xff]  ;;  %v6609_v47 = vld [vmem:[#allocation59_spill] sm:$0xff]  ;;  %v4879_v52 = vmul.f32 %v4833_v20, %v4833_v20 }
 0x4d4   : > { %v977_v4 = vadd.f32 %v6600_v49, %v6599_v56  ;;  %v6604_v50 = vld [vmem:[#allocation48_spill] sm:$0xff]  ;;  %v4865_v49 = vmul.f32 %v4826_v38, %v4826_v38  ;;  %v4871_v8 = vadd.f32 %v6609_v47, %v974_v1  ;;  %v4881_v24 = vmul.f32 %v1204_v33, %v1204_v33  ;;  %v6613_v60 = vld [vmem:[#allocation53_spill] sm:$0xff] }
 0x4d5   : > { %1840 = vrot.lane.b32.xlu1 %v4709_v53, %s3312_s29  ;;  %v6601_v53 = vld [vmem:[#allocation19_spill] sm:$0xff]  ;;  %v753_v9 = vadd.f32 %v6604_v50, %v6603_v25  ;;  %v876_v29 = vrot.slane %v768_v12, 2  ;;  %1842 = vrot.lane.b32.xlu0 %v4712_v11, %s3312_s29  ;;  %6611 = vst [vmem:[#allocation16_spill] sm:$0xff] %v4879_v52  ;;  %v4890_v12 = vmul.f32 %v1205_v27, %v4666_v55  ;;  %v6615_v56 = vld [vmem:[#allocation52_spill] sm:$0xff]  ;;  %v6617_v25 = vld [vmem:[#allocation26_spill] sm:$0xff] }
 0x4d6   : > { %v4846_v16 = vpop.permute.xlu1 %2058  ;;  %v4852_v54 = vadd.f32 %v6602_v34, %v6601_v53  ;;  %6607 = vst [vmem:[#allocation35_spill] sm:$0xff] %v4865_v49  ;;  %v4868_v53 = vmul.f32 %v1204_v33, %v4647_v51  ;;  %6610 = vst [vmem:[#allocation49_spill] sm:$0xff] %v4871_v8  ;;  %v698_v51 = vadd.f32 %v6613_v60, %v682_v39  ;;  %v4885_v58 = vpop.permute.xlu0 %2060  ;;  %v6618_v50 = vld [vmem:[#allocation54_spill] sm:$0xff]  ;;  %v1815_v33 = vsel %vm538_vm0, 0.0, %v1807_v46  ;;  %v6619_v11 = vld [vmem:[#allocation20_spill] sm:$0xff] }
 0x4d7   : > { %v769_v18 = vadd.f32 %v6612_v40, %v753_v9  ;;  %6614 = vst [vmem:[#allocation36_spill] sm:$0xff] %v4890_v12  ;;  %v4893_v34 = vadd.f32 %v6615_v56, %v975_v32  ;;  %v683_v47 = vadd.f32 %v6618_v50, %v6617_v25  ;;  %v6620_v52 = vld [vmem:[#allocation40_spill] sm:$0xff]  ;;  %v4902_v39 = vmul.f32 %v1205_v27, %v1205_v27  ;;  %v6623_v46 = vld [vmem:[#allocation27_spill] sm:$0xff] }
 0x4d8   : > { %6608 = vst [vmem:[#allocation46_spill] sm:$0xff] %v4868_v53  ;;  %v4900_v9 = vadd.f32 %v6620_v52, %v6619_v11  ;;  %v4904_v40 = vmul.f32 0.11111111, %v848_v23  ;;  %v849_v60 = vadd.f32 %v833_v26, %v4652_v5  ;;  %v2484_v55 = vmul.f32 2.0, %v4868_v53  ;;  %v6622_v56 = vld [vmem:[#allocation56_spill] sm:$0xff]  ;;  %v6624_v23 = vld [vmem:[#allocation55_spill] sm:$0xff] }
 0x4d9   : > { %1904 = vrot.lane.b32.xlu1 %v4842_v59, %s3311_s22  ;;  %6616 = vst [vmem:[#allocation17_spill] sm:$0xff] %v4893_v34  ;;  %v884_v32 = vadd.f32 %v876_v29, %v4671_v30  ;;  %v699_v49 = vadd.f32 %v6622_v56, %v683_v47  ;;  %v1157_v25 = vrot.slane %v4871_v8, 7  ;;  %1916 = vrot.lane.b32.xlu0 %v4745_v48, %s3312_s29  ;;  %v877_v11 = vrot.slane %v769_v18, 2 }
 0x4da   : > { %v4887_v1 = vpop.permute.xlu1 %2062  ;;  %6621 = vst [vmem:[#allocation37_spill] sm:$0xff] %v4904_v40  ;;  %v834_v27 = vadd.f32 %v698_v51, %v4624_v14  ;;  %v754_v5 = vadd.f32 %v6624_v23, %v6623_v46  ;;  %v4919_v26 = vsel %vm547_vm1, %v1815_v33, 0.0  ;;  %v4921_v30 = vpop.permute.xlu0 %2064  ;;  %v2485_v52 = vmul.f32 2.0, %v4890_v12  ;;  %v6627_v33 = vld [vmem:[#allocation57_spill] sm:$0xff] }
 0x4db   : > { %6625 = vst [vmem:[#allocation18_spill] sm:$0xff] %v4919_v26  ;;  %v2524_v50 = vadd.f32 %v4881_v24, %v4688_v41  ;;  %v1161_v47 = vrot.slane %v4893_v34, 7  ;;  %v1891_v14 = vsel %vm538_vm0, 0.0, %v4805_v0  ;;  %v2525_v18 = vadd.f32 %v4902_v39, %v4702_v28 }
 0x4dc   : > { %v4933_v51 = vmul.f32 0.11111111, %v849_v60  ;;  %v770_v56 = vadd.f32 %v6627_v33, %v754_v5  ;;  %v4938_v46 = vadd.f32 %v4742_v36, %v4660_v22  ;;  %v4940_v23 = vadd.f32 0.0001, %v2484_v55  ;;  %v6631_v36 = vld [vmem:[#allocation62_spill] sm:$0xff] }
 0x4dd   : > { %1918 = vrot.lane.b32.xlu1 %v4748_v21, %s3312_s29  ;;  %v4942_v12 = vmul.f32 0.11111111, %v884_v32  ;;  %v835_v53 = vadd.f32 %v699_v49, %v4681_v61  ;;  %v1169_v0 = vsel %vm782_vm3, %v1161_v47, %v1157_v25  ;;  %1830 = vrot.lane.b32.xlu0 %v4919_v26, %s3311_s22  ;;  %v885_v60 = vadd.f32 %v877_v11, %v4766_v57 }
 0x4de   : > { %v4923_v29 = vpop.permute.xlu1 %2066  ;;  %6626 = vst [vmem:[#allocation38_spill] sm:$0xff] %v4933_v51  ;;  %6628 = vst [vmem:[#allocation19_spill] sm:$0xff] %v4938_v46  ;;  %v850_v22 = vadd.f32 %v834_v27, %v4678_v15  ;;  %v4954_v55 = vadd.f32 %v6631_v36, %v977_v4  ;;  %v4957_v32 = vsel %vm547_vm1, %v1891_v14, 0.0  ;;  %v4959_v61 = vpop.permute.xlu0 %2068  ;;  %v4963_v5 = vadd.f32 0.0001, %v2485_v52  ;;  %v6637_v27 = vld [vmem:[#allocation61_spill] sm:$0xff] }
 0x4df   : > { %6629 = vst [vmem:[#allocation39_spill] sm:$0xff] %v4940_v23  ;;  %6630 = vst [vmem:[#allocation24_spill] sm:$0xff] %v4942_v12  ;;  %v4965_v33 = vadd.f32 0.0001, %v2524_v50  ;;  %v4969_v23 = vmul.f32 %v4904_v40, %v4904_v40  ;;  %v4972_v15 = vrot.slane %v4871_v8, 1  ;;  %v878_v57 = vrot.slane %v770_v56, 2 }
 0x4e0   : > { %6632 = vst [vmem:[#allocation48_spill] sm:$0xff] %v4954_v55  ;;  %6633 = vst [vmem:[#allocation25_spill] sm:$0xff] %v4957_v32  ;;  %v4974_v4 = vadd.f32 0.0001, %v2525_v18  ;;  %v1174_v11 = vadd.f32 %v1169_v0, %v4871_v8  ;;  %v4979_v14 = vadd.f32 %v6637_v27, %v4839_v63  ;;  %v4983_v52 = vmul.f32 %v4933_v51, %v4933_v51 }
 0x4e1   : > { %1844 = vrot.lane.b32.xlu1 %v4803_v35, %s3312_s29  ;;  %6634 = vst [vmem:[#allocation51_spill] sm:$0xff] %v4963_v5  ;;  %6635 = vst [vmem:[#allocation59_spill] sm:$0xff] %v4969_v23  ;;  %v4986_v50 = vrot.slane %v4893_v34, 1  ;;  %v851_v36 = vadd.f32 %v835_v53, %v4722_v37  ;;  %v1165_v18 = vsel %vm782_vm3, %v1157_v25, %v1161_v47  ;;  %1906 = vrot.lane.b32.xlu0 %v4957_v32, %s3311_s22  ;;  %v6642_v25 = vld [vmem:[#allocation28_spill] sm:$0xff]  ;;  %v6643_v47 = vld [vmem:[#allocation58_spill] sm:$0xff] }
 0x4e2   : > { %v4961_v49 = vpop.permute.xlu1 %2070  ;;  %6636 = vst [vmem:[#allocation50_spill] sm:$0xff] %v4972_v15  ;;  %6638 = vst [vmem:[#allocation53_spill] sm:$0xff] %v4979_v14  ;;  %v4997_v63 = vmul.f32 %v4942_v12, %v4942_v12  ;;  %v4999_v56 = vmul.f32 0.11111111, %v885_v60  ;;  %v5001_v0 = vmul.f32 0.11111111, %v850_v22  ;;  %v5004_v37 = vpop.permute.xlu0 %2188  ;;  %v755_v5 = vadd.f32 %v6643_v47, %v6642_v25 }
 0x4e3   : > { %6639 = vst [vmem:[#allocation52_spill] sm:$0xff] %v4983_v52  ;;  %6640 = vst [vmem:[#allocation26_spill] sm:$0xff] %v4986_v50  ;;  %v1162_v27 = vrot.slane %v4954_v55, 7  ;;  %v2080_v60 = vsel %vm538_vm0, 0.0, %v4844_v19  ;;  %v2081_v22 = vsel %vm538_vm0, 0.0, %v4846_v16  ;;  %v5019_v35 = vadd.f32 %v878_v57, %v4774_v42  ;;  %v6645_v12 = vld [vmem:[#allocation60_spill] sm:$0xff] }
 0x4e4   : > { %6641 = vst [vmem:[#allocation54_spill] sm:$0xff] %v4997_v63  ;;  %v1175_v21 = vadd.f32 %v1165_v18, %v4893_v34  ;;  %v1158_v63 = vrot.slane %v4979_v14, 7  ;;  %v5023_v25 = vmul.f32 0.11111111, %v851_v36  ;;  %v1193_v47 = vsel %vm807_vm4, %v4986_v50, %v4972_v15  ;;  %v6666_v23 = vld [vmem:[#allocation102_spill] sm:$0xff] }
 0x4e5   : > { %1920 = vrot.lane.b32.xlu1 %v4842_v59, %s3312_s29  ;;  %v1189_v59 = vsel %vm807_vm4, %v4972_v15, %v4986_v50  ;;  %v5030_v19 = vadd.f32 %v6645_v12, %v755_v5  ;;  %v1353_v16 = vadd.f32 %v4220_v2, %v4146_v13  ;;  %1846 = vrot.lane.b32.xlu0 %v4919_v26, %s3312_s29  ;;  %v5043_v57 = vsel %vm547_vm1, %v2080_v60, 0.0 }
 0x4e6   : > { %v5006_v53 = vpop.permute.xlu1 %2190  ;;  %v1198_v48 = vadd.f32 %v1189_v59, %v1174_v11  ;;  %6644 = vst [vmem:[#allocation20_spill] sm:$0xff] %v5023_v25  ;;  %v1170_v42 = vsel %vm782_vm3, %v1162_v27, %v1158_v63  ;;  %v1352_v59 = vadd.f32 %v4218_v44, %v4140_v3  ;;  %6646 = vst [vmem:[#allocation40_spill] sm:$0xff] %v5043_v57  ;;  %v5046_v12 = vsel %vm547_vm1, %v2081_v22, 0.0  ;;  %v5048_v5 = vpop.permute.xlu0 %2264 }
 0x4e7   : > { %6647 = vst [vmem:[#allocation56_spill] sm:$0xff] %v5046_v12  ;;  %v1355_v2 = vadd.f32 %v4224_v43, %v4158_v7  ;;  %v5055_v11 = vadd.f32 %v4236_v62, %v1353_v16  ;;  %v2082_v36 = vsel %vm538_vm0, 0.0, %v4885_v58  ;;  %v2083_v3 = vsel %vm538_vm0, 0.0, %v4887_v1  ;;  %v6651_v7 = vld [vmem:[#allocation93_spill] sm:$0xff]  ;;  %v6652_v16 = vld [vmem:[#allocation98_spill] sm:$0xff] }
 0x4e8   : > { %v1199_v44 = vadd.f32 %v1193_v47, %v1175_v21  ;;  %v5061_v18 = vmul.f32 0.11111111, %v1198_v48  ;;  %v1166_v60 = vsel %vm782_vm3, %v1158_v63, %v1162_v27  ;;  %v5066_v22 = vrot.slane %v4954_v55, 1  ;;  %v6656_v21 = vld [vmem:[#allocation63_spill] sm:$0xff] }
 0x4e9   : > { %1922 = vrot.lane.b32.xlu1 %v4957_v32, %s3312_s29  ;;  %6648 = vst [vmem:[#allocation27_spill] sm:$0xff] %v5055_v11  ;;  %v5069_v43 = vrot.slane %v4979_v14, 1  ;;  %v1354_v62 = vadd.f32 %v6651_v7, %v4152_v45  ;;  %v5074_v58 = vadd.f32 %v6652_v16, %v1352_v59  ;;  %v6654_v32 = vld [vmem:[#allocation100_spill] sm:$0xff]  ;;  %2104 = vrot.lane.b32.xlu0 %v5043_v57, %s3311_s22  ;;  %v5089_v45 = vsel %vm547_vm1, %v2082_v36, 0.0 }
 0x4ea   : > { %v5050_v13 = vpop.permute.xlu1 %2266  ;;  %6649 = vst [vmem:[#allocation55_spill] sm:$0xff] %v5066_v22  ;;  %v5077_v1 = vadd.f32 %v6654_v32, %v1355_v2  ;;  %v1176_v48 = vadd.f32 %v1170_v42, %v4979_v14  ;;  %v5086_v63 = vadd.f32 %v6656_v21, %v4852_v54  ;;  %6657 = vst [vmem:[#allocation28_spill] sm:$0xff] %v5089_v45  ;;  %v5092_v27 = vsel %vm547_vm1, %v2083_v3, 0.0  ;;  %v5094_v32 = vpop.permute.xlu0 %2192  ;;  %v6659_v2 = vld [vmem:[#allocation99_spill] sm:$0xff]  ;;  %v6661_v21 = vld [vmem:[#allocation90_spill] sm:$0xff] }
 0x4eb   : > { %6650 = vst [vmem:[#allocation57_spill] sm:$0xff] %v5069_v43  ;;  %6653 = vst [vmem:[#allocation62_spill] sm:$0xff] %v5074_v58  ;;  %v1548_v59 = vrot.slane %v5055_v11, 7  ;;  %v5100_v7 = vadd.f32 %v6659_v2, %v1354_v62  ;;  %v2084_v42 = vsel %vm538_vm0, 0.0, %v4921_v30  ;;  %v2085_v54 = vsel %vm538_vm0, 0.0, %v4923_v29  ;;  %v6662_v62 = vld [vmem:[#allocation95_spill] sm:$0xff] }
 0x4ec   : > { %6655 = vst [vmem:[#allocation61_spill] sm:$0xff] %v5077_v1  ;;  %6658 = vst [vmem:[#allocation58_spill] sm:$0xff] %v5092_v27  ;;  %v5108_v36 = vmul.f32 %v5061_v18, %v5061_v18  ;;  %v1177_v3 = vadd.f32 %v1166_v60, %v4954_v55  ;;  %v1190_v16 = vsel %vm807_vm4, %v5069_v43, %v5066_v22  ;;  %v6663_v29 = vld [vmem:[#allocation64_spill] sm:$0xff]  ;;  %v1544_v52 = vrot.slane %v5074_v58, 7 }
 0x4ed   : > { %2106 = vrot.lane.b32.xlu1 %v5046_v12, %s3311_s22  ;;  %6660 = vst [vmem:[#allocation60_spill] sm:$0xff] %v5100_v7  ;;  %v1357_v2 = vadd.f32 %v6662_v62, %v6661_v21  ;;  %v1194_v30 = vsel %vm807_vm4, %v5066_v22, %v5069_v43  ;;  %v5123_v26 = vadd.f32 %v6663_v29, %v4900_v9  ;;  %v1549_v60 = vrot.slane %v5077_v1, 7  ;;  %v6664_v21 = vld [vmem:[#allocation89_spill] sm:$0xff]  ;;  %v6665_v62 = vld [vmem:[#allocation94_spill] sm:$0xff] }
 0x4ee   : > { %v5096_v47 = vpop.permute.xlu1 %2268  ;;  %2108 = vrot.lane.b32.xlu0 %v5089_v45, %s3311_s22  ;;  %v1356_v55 = vadd.f32 %v6665_v62, %v6664_v21  ;;  %v5137_v22 = vsel %vm547_vm1, %v2084_v42, 0.0  ;;  %v5140_v9 = vsel %vm547_vm1, %v2085_v54, 0.0  ;;  %v5142_v29 = vpop.permute.xlu0 %2194  ;;  %v1200_v43 = vadd.f32 %v1190_v16, %v1176_v48  ;;  %v6671_v54 = vld [vmem:[#allocation101_spill] sm:$0xff] }
 0x4ef   : > { %v5134_v46 = vadd.f32 %v6666_v23, %v1357_v2  ;;  %6668 = vst [vmem:[#allocation98_spill] sm:$0xff] %v5137_v22  ;;  %6669 = vst [vmem:[#allocation100_spill] sm:$0xff] %v5140_v9  ;;  %v1552_v40 = vsel %vm782_vm3, %v1544_v52, %v1548_v59  ;;  %v1556_v21 = vsel %vm782_vm3, %v1548_v59, %v1544_v52  ;;  %v1545_v23 = vrot.slane %v5100_v7, 7 }
 0x4f0   : > { %v5151_v2 = vmul.f32 0.11111111, %v1199_v44  ;;  %v1201_v62 = vadd.f32 %v1194_v30, %v1177_v3  ;;  %v5155_v14 = vadd.f32 %v6671_v54, %v1356_v55  ;;  %v5159_v48 = vrot.slane %v5055_v11, 1 }
 0x4f1   : > { %2110 = vrot.lane.b32.xlu1 %v5092_v27, %s3311_s22  ;;  %6667 = vst [vmem:[#allocation93_spill] sm:$0xff] %v5134_v46  ;;  %v1553_v16 = vsel %vm782_vm3, %v1545_v23, %v1549_v60  ;;  %v1557_v52 = vsel %vm782_vm3, %v1549_v60, %v1545_v23  ;;  %v1560_v44 = vadd.f32 %v1556_v21, %v5074_v58  ;;  %v1550_v3 = vrot.slane %v5134_v46, 7 }
 0x4f2   : > { %v5144_v51 = vpop.permute.xlu1 %2270  ;;  %6670 = vst [vmem:[#allocation63_spill] sm:$0xff] %v5151_v2  ;;  %6672 = vst [vmem:[#allocation99_spill] sm:$0xff] %v5155_v14  ;;  %2112 = vrot.lane.b32.xlu0 %v5137_v22, %s3311_s22  ;;  %v1561_v59 = vadd.f32 %v1552_v40, %v5055_v11  ;;  %v1721_v30 = vpop.permute.xlu0 %1720  ;;  %v2526_v60 = vadd.f32 %v5108_v36, %v4770_v10  ;;  %v5177_v23 = vmul.f32 0.11111111, %v1200_v43  ;;  %v5180_v42 = vrot.slane %v5074_v58, 1 }
 0x4f3   : > { %6673 = vst [vmem:[#allocation90_spill] sm:$0xff] %v5159_v48  ;;  %v5183_v15 = vrot.slane %v5077_v1, 1  ;;  %v5185_v55 = vmul.f32 0.11111111, %v1201_v62  ;;  %v1562_v40 = vadd.f32 %v1557_v52, %v5100_v7  ;;  %v1563_v21 = vadd.f32 %v1553_v16, %v5077_v1 }
 0x4f4   : > { %6674 = vst [vmem:[#allocation95_spill] sm:$0xff] %v5180_v42  ;;  %v1546_v11 = vrot.slane %v5155_v14, 7  ;;  %v6677_v20 = vrot.slane %v5086_v63, 7  ;;  %v6678_v38 = vrot.slane %v5123_v26, 7  ;;  %v1576_v62 = vsel %vm807_vm4, %v5180_v42, %v5159_v48 }
 0x4f5   : > { %2114 = vrot.lane.b32.xlu1 %v5140_v9, %s3311_s22  ;;  %6675 = vst [vmem:[#allocation64_spill] sm:$0xff] %v5183_v15  ;;  %6676 = vst [vmem:[#allocation89_spill] sm:$0xff] %v5185_v55  ;;  %v1580_v16 = vsel %vm807_vm4, %v5159_v48, %v5180_v42  ;;  %v5207_v52 = vrot.slane %v5100_v7, 1  ;;  %v5221_v48 = vmul.f32 %v5151_v2, %v5151_v2  ;;  %v5240_v7 = vrot.slane %v5134_v46, 1 }
 0x4f6   : > { %v5173_v54 = vpop.permute.xlu1 %1722  ;;  %v5196_v43 = vsel %vm782_vm3, %v6678_v38, %v6677_v20  ;;  %2136 = vrot.lane.b32.xlu0 %v5043_v57, %s3312_s29  ;;  %v1584_v38 = vadd.f32 %v1576_v62, %v1560_v44  ;;  %v1585_v20 = vadd.f32 %v1580_v16, %v1561_v59  ;;  %v1558_v1 = vsel %vm782_vm3, %v1550_v3, %v1546_v11  ;;  %v5215_v58 = vpop.permute.xlu0 %1724 }
 0x4f7   : > { %6679 = vst [vmem:[#allocation94_spill] sm:$0xff] %v5207_v52  ;;  %v1577_v57 = vsel %vm807_vm4, %v5207_v52, %v5183_v15  ;;  %v1581_v44 = vsel %vm807_vm4, %v5183_v15, %v5207_v52  ;;  %v2086_v59 = vsel %vm538_vm0, 0.0, %v4959_v61  ;;  %v2087_v62 = vsel %vm538_vm0, 0.0, %v4961_v49  ;;  %6680 = vst [vmem:[#allocation102_spill] sm:$0xff] %v5240_v7  ;;  %v6681_v61 = vld [vmem:[#allocation30_spill] sm:$0xff] }
 0x4f8   : > { %v5237_v16 = vmul.f32 %v5177_v23, %v5177_v23  ;;  %v1587_v42 = vadd.f32 %v1581_v44, %v1563_v21  ;;  %v5242_v2 = vadd.f32 0.0001, %v2526_v60  ;;  %v1554_v15 = vsel %vm782_vm3, %v1546_v11, %v1550_v3 }
 0x4f9   : > { %2138 = vrot.lane.b32.xlu1 %v5046_v12, %s3312_s29  ;;  %v1586_v12 = vadd.f32 %v1577_v57, %v1562_v40  ;;  %v1564_v52 = vadd.f32 %v1558_v1, %v5155_v14  ;;  %v1740_v25 = vadd.f32 %v6681_v61, %v4393_v17  ;;  %v5253_v49 = vmul.f32 0.11111111, %v1584_v38  ;;  %v6686_v38 = vld [vmem:[#allocation45_spill] sm:$0xff] }
 0x4fa   : > { %v5217_v8 = vpop.permute.xlu1 %1726  ;;  %2140 = vrot.lane.b32.xlu0 %v5089_v45, %s3312_s29  ;;  %v5256_v57 = vrot.slane %v5155_v14, 1  ;;  %v5259_v60 = vsel %vm547_vm1, %v2086_v59, 0.0  ;;  %v5262_v11 = vsel %vm547_vm1, %v2087_v62, 0.0  ;;  %v5264_v1 = vpop.permute.xlu0 %1728  ;;  %v5268_v3 = vmul.f32 %v5185_v55, %v5185_v55  ;;  %v6688_v45 = vld [vmem:[#allocation14_spill] sm:$0xff] }
 0x4fb   : > { %6683 = vst [vmem:[#allocation30_spill] sm:$0xff] %v5259_v60  ;;  %6684 = vst [vmem:[#allocation138_spill] sm:$0xff] %v5262_v11  ;;  %v5270_v40 = vmul.f32 0.11111111, %v1585_v20  ;;  %v5276_v44 = vadd.f32 %v5221_v48, %v6686_v38  ;;  %v5278_v59 = vmul.f32 0.11111111, %v1586_v12  ;;  %v1565_v62 = vadd.f32 %v1554_v15, %v5134_v46 }
 0x4fc   : > { %6682 = vst [vmem:[#allocation101_spill] sm:$0xff] %v5256_v57  ;;  %6685 = vst [vmem:[#allocation139_spill] sm:$0xff] %v5264_v1  ;;  %v5280_v61 = vmul.f32 0.11111111, %v1587_v42  ;;  %v5288_v20 = vrot.slane %v5123_v26, 1  ;;  %v6689_v1 = vld [vmem:[#allocation130_spill] sm:$0xff]  ;;  %v1582_v12 = vsel %vm807_vm4, %v5240_v7, %v5256_v57 }
 0x4fd   : > { %2142 = vrot.lane.b32.xlu1 %v5092_v27, %s3312_s29  ;;  %v1578_v27 = vsel %vm807_vm4, %v5256_v57, %v5240_v7  ;;  %v1742_v55 = vadd.f32 %v1721_v30, %v6689_v1  ;;  %v2461_v57 = vsub.f32 %v5270_v40, %v4702_v28  ;;  %v5321_v7 = vadd.f32 %v1582_v12, %v1565_v62 }
 0x4fe   : > { %v1749_v17 = vpop.permute.xlu1 %1748  ;;  %2116 = vrot.lane.b32.xlu0 %v5259_v60, %s3311_s22  ;;  %v1751_v42 = vpop.permute.xlu0 %1750  ;;  %v2276_v40 = vsel %vm538_vm0, 0.0, %v5048_v5  ;;  %v2277_v62 = vsel %vm538_vm0, 0.0, %v5050_v13 }
 0x4ff   : > { %v5272_v21 = vadd.f32 %v1749_v17, %v1740_v25  ;;  %v1588_v25 = vadd.f32 %v1578_v27, %v1564_v52  ;;  %v6687_v17 = vld [vmem:[#allocation129_spill] sm:$0xff]  ;;  %v2200_v27 = vsel %vm538_vm0, 0.0, %v5004_v37 }
 0x500   : > { %v1741_v14 = vadd.f32 %v6688_v45, %v6687_v17  ;;  %v2201_v45 = vsel %vm538_vm0, 0.0, %v5006_v53  ;;  %v5326_v50 = vsel %vm547_vm1, %v2200_v27, 0.0 }
 0x501   : > { %2118 = vrot.lane.b32.xlu1 %v5262_v11, %s3311_s22  ;;  %v1932_v52 = vrot.slane %v5272_v21, 7  ;;  %v5309_v1 = vrot.slane %v5272_v21, 1  ;;  %v5323_v46 = vmul.f32 0.11111111, %v1588_v25  ;;  %6691 = vst [vmem:[#allocation129_spill] sm:$0xff] %v5326_v50  ;;  %v5337_v28 = vsel %vm547_vm1, %v2201_v45, 0.0 }
 0x502   : > { %v1753_v30 = vpop.permute.xlu1 %1752  ;;  %v5311_v17 = vadd.f32 %v1751_v42, %v1741_v14  ;;  %2144 = vrot.lane.b32.xlu0 %v5137_v22, %s3312_s29  ;;  %6693 = vst [vmem:[#allocation130_spill] sm:$0xff] %v5337_v28  ;;  %v6694_v25 = vld [vmem:[#allocation131_spill] sm:$0xff]  ;;  %v1755_v27 = vpop.permute.xlu0 %1754  ;;  %v6698_v22 = vld [vmem:[#allocation133_spill] sm:$0xff] }
 0x503   : > { %v5313_v15 = vadd.f32 %v1753_v30, %v1742_v55  ;;  %v1743_v12 = vadd.f32 %v5173_v54, %v6694_v25 }
 0x504   : > { %6690 = vst [vmem:[#allocation45_spill] sm:$0xff] %v5311_v17  ;;  %v1936_v14 = vrot.slane %v5311_v17, 7  ;;  %v5330_v55 = vrot.slane %v5311_v17, 1 }
 0x505   : > { %2146 = vrot.lane.b32.xlu1 %v5140_v9, %s3312_s29  ;;  %v1933_v25 = vrot.slane %v5313_v15, 7  ;;  %v5362_v37 = vadd.f32 %v1755_v27, %v1743_v12  ;;  %v5372_v34 = vrot.slane %v5313_v15, 1 }
 0x506   : > { %6692 = vst [vmem:[#allocation14_spill] sm:$0xff] %v5330_v55  ;;  %v5345_v42 = vpop.permute.xlu1 %1730  ;;  %v1940_v30 = vsel %vm782_vm3, %v1932_v52, %v1936_v14  ;;  %v1944_v53 = vsel %vm782_vm3, %v1936_v14, %v1932_v52  ;;  %v1964_v5 = vsel %vm807_vm4, %v5309_v1, %v5330_v55  ;;  %v1968_v13 = vsel %vm807_vm4, %v5330_v55, %v5309_v1  ;;  %v6697_v14 = vld [vmem:[#allocation132_spill] sm:$0xff] }
 0x507   : > { %6695 = vst [vmem:[#allocation131_spill] sm:$0xff] %v5345_v42  ;;  %v1948_v54 = vadd.f32 %v1944_v53, %v5272_v21  ;;  %v1949_v45 = vadd.f32 %v1940_v30, %v5311_v17  ;;  %v5365_v52 = vsel %vm547_vm1, %v2276_v40, 0.0  ;;  %v1744_v9 = vadd.f32 %v5215_v58, %v6697_v14  ;;  %2212 = vrot.lane.b32.xlu0 %v5326_v50, %s3311_s22  ;;  %v1757_v58 = vpop.permute.xlu0 %1756 }
 0x508   : > { %6696 = vst [vmem:[#allocation140_spill] sm:$0xff] %v5365_v52  ;;  %v1745_v42 = vadd.f32 %v5217_v8, %v6698_v22  ;;  %v1937_v40 = vrot.slane %v5362_v37, 7  ;;  %v5380_v27 = vrot.slane %v5362_v37, 1  ;;  %v5383_v8 = vsel %vm547_vm1, %v2277_v62, 0.0 }
 0x509   : > { %2214 = vrot.lane.b32.xlu1 %v5337_v28, %s3311_s22  ;;  %v1972_v53 = vadd.f32 %v1964_v5, %v1948_v54  ;;  %v1973_v12 = vadd.f32 %v1968_v13, %v1949_v45  ;;  %6700 = vst [vmem:[#allocation133_spill] sm:$0xff] %v5383_v8  ;;  %v2202_v22 = vsel %vm538_vm0, 0.0, %v5094_v32  ;;  %v5387_v14 = vadd.f32 %v1757_v58, %v1744_v9 }
 0x50a   : > { %6699 = vst [vmem:[#allocation132_spill] sm:$0xff] %v5380_v27  ;;  %v1759_v30 = vpop.permute.xlu1 %1758  ;;  %v1941_v13 = vsel %vm782_vm3, %v1933_v25, %v1937_v40  ;;  %v1945_v54 = vsel %vm782_vm3, %v1937_v40, %v1933_v25  ;;  %v1965_v32 = vsel %vm807_vm4, %v5372_v34, %v5380_v27  ;;  %v1969_v9 = vsel %vm807_vm4, %v5380_v27, %v5372_v34 }
 0x50b   : > { %v5389_v55 = vadd.f32 %v1759_v30, %v1745_v42  ;;  %v1980_v17 = vmul.f32 0.11111111, %v1972_v53  ;;  %v1981_v5 = vmul.f32 0.11111111, %v1973_v12  ;;  %v1950_v45 = vadd.f32 %v1945_v54, %v5313_v15  ;;  %2288 = vrot.lane.b32.xlu0 %v5365_v52, %s3311_s22 }
 0x50c   : > { %v1951_v62 = vadd.f32 %v1941_v13, %v5362_v37  ;;  %v2278_v42 = vsel %vm538_vm0, 0.0, %v5096_v47  ;;  %v1934_v12 = vrot.slane %v5387_v14, 7  ;;  %v5419_v54 = vsel %vm547_vm1, %v2202_v22, 0.0 }
 0x50d   : > { %6701 = vst [vmem:[#allocation141_spill] sm:$0xff] %v5389_v55  ;;  %v2468_v25 = vsub.f32 %v1980_v17, %v4881_v24  ;;  %v2469_v53 = vsub.f32 %v1981_v5, %v4902_v39  ;;  %2290 = vrot.lane.b32.xlu1 %v5383_v8, %s3311_s22  ;;  %v1974_v40 = vadd.f32 %v1965_v32, %v1950_v45  ;;  %v1938_v30 = vrot.slane %v5389_v55, 7 }
 0x50e   : > { %v1975_v58 = vadd.f32 %v1969_v9, %v1951_v62  ;;  %v5416_v13 = vrot.slane %v5389_v55, 1  ;;  %6703 = vst [vmem:[#allocation143_spill] sm:$0xff] %v5419_v54  ;;  %v6704_v24 = vsub.f32 %v5253_v49, %v4688_v41  ;;  %v5425_v17 = vrot.slane %v5387_v14, 1 }
 0x50f   : > { %v2541_v39 = vadd.f32 %v2469_v53, %v2461_v57  ;;  %v1982_v5 = vmul.f32 0.11111111, %v1974_v40  ;;  %v1942_v45 = vsel %vm782_vm3, %v1934_v12, %v1938_v30  ;;  %v1946_v62 = vsel %vm782_vm3, %v1938_v30, %v1934_v12  ;;  %2148 = vrot.lane.b32.xlu0 %v5259_v60, %s3312_s29  ;;  %v6786_v60 = vld [vmem:[#allocation84_spill] sm:$0xff] }
 0x510   : > { %6702 = vst [vmem:[#allocation142_spill] sm:$0xff] %v5416_v13  ;;  %v2540_v47 = vadd.f32 %v2468_v25, %v6704_v24  ;;  %v1983_v27 = vmul.f32 0.11111111, %v1975_v58  ;;  %v1952_v41 = vadd.f32 %v1946_v62, %v5387_v14  ;;  %v1953_v49 = vadd.f32 %v1942_v45, %v5389_v55  ;;  %v6859_v55 = vld [vmem:[#allocation128_spill] sm:$0xff] }
 0x511   : > { %v2549_v32 = vadd.f32 0.0009, %v2541_v39  ;;  %2150 = vrot.lane.b32.xlu1 %v5262_v11, %s3312_s29  ;;  %v2470_v57 = vsub.f32 %v1982_v5, %v5108_v36  ;;  %v1966_v25 = vsel %vm807_vm4, %v5425_v17, %v5416_v13  ;;  %v1970_v53 = vsel %vm807_vm4, %v5416_v13, %v5425_v17 }
 0x512   : > { %v2548_v22 = vadd.f32 0.0009, %v2540_v47  ;;  %v2471_v9 = vsub.f32 %v1983_v27, %v5221_v48  ;;  %v1976_v58 = vadd.f32 %v1966_v25, %v1952_v41  ;;  %v1977_v36 = vadd.f32 %v1970_v53, %v1953_v49  ;;  %v6713_v49 = vld [vmem:[#allocation65_spill] sm:$0xff] }
 0x513   : > { %v5451_v40 = vmul.f32 %v2549_v32, %v4974_v4  ;;  %v6706_v48 = vrot.slane %v5123_v26, 7  ;;  %v6707_v27 = vrot.slane %v5086_v63, 7  ;;  %v1597_v24 = vmul.f32 0.11111111, %v5321_v7  ;;  %2216 = vrot.lane.b32.xlu0 %v5419_v54, %s3311_s22  ;;  %v6712_v32 = vld [vmem:[#allocation44_spill] sm:$0xff] }
 0x514   : > { %v5448_v12 = vmul.f32 %v2548_v22, %v4965_v33  ;;  %v6708_v47 = vsub.f32 %v5278_v59, %v4770_v10  ;;  %v6709_v33 = vsub.f32 %v5280_v61, %v6686_v38  ;;  %v1178_v5 = vadd.f32 %v5196_v43, %v5086_v63  ;;  %v6711_v10 = vld [vmem:[#allocation22_spill] sm:$0xff]  ;;  %v6714_v43 = vld [vmem:[#allocation69_spill] sm:$0xff] }
 0x515   : > { %6705 = vst [vmem:[#allocation144_spill] sm:$0xff] %v5451_v40  ;;  %v1167_v30 = vsel %vm782_vm3, %v6707_v27, %v6706_v48  ;;  %v5471_v45 = vsel %vm547_vm1, %v2278_v42, 0.0  ;;  %v2535_v62 = vadd.f32 0.0001, %v5276_v44  ;;  %v1984_v7 = vmul.f32 0.11111111, %v1976_v58  ;;  %2228 = vrot.lane.b32.xlu1 %v5326_v50, %s3312_s29 }
 0x516   : > { %v2542_v39 = vadd.f32 %v2470_v57, %v6708_v47  ;;  %v2543_v4 = vadd.f32 %v2471_v9, %v6709_v33  ;;  %6710 = vst [vmem:[#allocation145_spill] sm:$0xff] %v5471_v45  ;;  %v2528_v59 = vadd.f32 %v5237_v16, %v6711_v10  ;;  %v1985_v22 = vmul.f32 0.11111111, %v1977_v36  ;;  %v6719_v33 = vld [vmem:[#allocation66_spill] sm:$0xff]  ;;  %v6780_v50 = vld [vmem:[#allocation83_spill] sm:$0xff]  ;;  %v6858_v40 = vld [vmem:[#allocation29_spill] sm:$0xff] }
 0x517   : > { %v2529_v41 = vadd.f32 %v5268_v3, %v6712_v32  ;;  %v1064_v57 = vadd.f32 %v6714_v43, %v6713_v49  ;;  %v2464_v42 = vsub.f32 %v5323_v46, %v6711_v10  ;;  %v2472_v44 = vsub.f32 %v1984_v7, %v5237_v16  ;;  %2230 = vrot.lane.b32.xlu0 %v5337_v28, %s3312_s29 }
 0x518   : > { %v2550_v38 = vadd.f32 0.0009, %v2542_v39  ;;  %v2551_v61 = vadd.f32 0.0009, %v2543_v4  ;;  %v2465_v9 = vsub.f32 %v1597_v24, %v6712_v32  ;;  %v2473_v58 = vsub.f32 %v1985_v22, %v5268_v3  ;;  %v6718_v3 = vld [vmem:[#allocation73_spill] sm:$0xff]  ;;  %v6720_v4 = vld [vmem:[#allocation70_spill] sm:$0xff] }
 0x519   : > { %v5495_v36 = vmul.f32 0.11111111, %v5019_v35  ;;  %v5498_v48 = vrot.slane %v5086_v63, 1  ;;  %v1179_v46 = vadd.f32 %v1167_v30, %v5123_v26  ;;  %v2544_v16 = vadd.f32 %v2472_v44, %v2464_v42  ;;  %2292 = vrot.lane.b32.xlu1 %v5471_v45, %s3311_s22 }
 0x51a   : > { %v5487_v25 = vmul.f32 %v2550_v38, %v5242_v2  ;;  %v5489_v53 = vmul.f32 %v2551_v61, %v2535_v62  ;;  %v6717_v2 = vrot.slane %v5030_v19, 2  ;;  %v1080_v24 = vadd.f32 %v6718_v3, %v1064_v57  ;;  %v6732_v3 = vld [vmem:[#allocation20_spill] sm:$0xff] }
 0x51b   : > { %v2203_v47 = vsel %vm538_vm0, 0.0, %v5142_v29  ;;  %v2545_v35 = vadd.f32 %v2473_v58, %v2465_v9  ;;  %v2536_v39 = vadd.f32 0.0001, %v2528_v59  ;;  %v1191_v30 = vsel %vm807_vm4, %v5498_v48, %v5288_v20  ;;  %2304 = vrot.lane.b32.xlu0 %v5365_v52, %s3312_s29  ;;  %v6721_v59 = vld [vmem:[#allocation74_spill] sm:$0xff]  ;;  %v6728_v58 = vld [vmem:[#allocation41_spill] sm:$0xff]  ;;  %v6754_v52 = vld [vmem:[#allocation76_spill] sm:$0xff] }
 0x51c   : > { %6715 = vst [vmem:[#allocation22_spill] sm:$0xff] %v5487_v25  ;;  %6716 = vst [vmem:[#allocation44_spill] sm:$0xff] %v5489_v53  ;;  %v887_v27 = vadd.f32 %v6717_v2, %v4855_v31  ;;  %v1065_v62 = vadd.f32 %v6720_v4, %v6719_v33  ;;  %v2552_v7 = vadd.f32 0.0009, %v2544_v16  ;;  %v2537_v10 = vadd.f32 0.0001, %v2529_v41 }
 0x51d   : > { %v1195_v31 = vsel %vm807_vm4, %v5288_v20, %v5498_v48  ;;  %v1202_v19 = vadd.f32 %v1191_v30, %v1178_v5  ;;  %v2553_v38 = vadd.f32 0.0009, %v2545_v35  ;;  %v5523_v22 = vsel %vm547_vm1, %v2203_v47, 0.0  ;;  %2306 = vrot.lane.b32.xlu1 %v5383_v8, %s3312_s29  ;;  %v6724_v41 = vld [vmem:[#allocation32_spill] sm:$0xff]  ;;  %v6726_v5 = vld [vmem:[#allocation34_spill] sm:$0xff]  ;;  %v6735_v47 = vld [vmem:[#allocation21_spill] sm:$0xff] }
 0x51e   : > { %v1203_v29 = vadd.f32 %v1195_v31, %v1179_v46  ;;  %v1081_v61 = vadd.f32 %v6721_v59, %v1065_v62  ;;  %6722 = vst [vmem:[#allocation65_spill] sm:$0xff] %v5523_v22  ;;  %v5525_v32 = vmul.f32 %v2552_v7, %v2536_v39  ;;  %v5531_v49 = vmul.f32 %v5061_v18, %v6724_v41  ;;  %v6730_v18 = vld [vmem:[#allocation17_spill] sm:$0xff]  ;;  %v6731_v16 = vld [vmem:[#allocation26_spill] sm:$0xff]  ;;  %v6738_v33 = vld [vmem:[#allocation67_spill] sm:$0xff] }
 0x51f   : > { %v1212_v43 = vadd.f32 %v1080_v24, %v6726_v5  ;;  %v2279_v57 = vsel %vm538_vm0, 0.0, %v5144_v51  ;;  %v5536_v42 = vmul.f32 %v2553_v38, %v2537_v10  ;;  %v5540_v44 = vmul.f32 %v4999_v56, %v4999_v56  ;;  %v6736_v35 = vld [vmem:[#allocation89_spill] sm:$0xff]  ;;  %2218 = vrot.lane.b32.xlu0 %v5523_v22, %s3311_s22  ;;  %v6739_v4 = vld [vmem:[#allocation71_spill] sm:$0xff]  ;;  %v6744_v41 = vld [vmem:[#allocation72_spill] sm:$0xff] }
 0x520   : > { %6723 = vst [vmem:[#allocation69_spill] sm:$0xff] %v5525_v32  ;;  %6725 = vst [vmem:[#allocation73_spill] sm:$0xff] %v5531_v49  ;;  %v5544_v9 = vmul.f32 %v5001_v0, %v5001_v0  ;;  %v5548_v46 = vmul.f32 %v5177_v23, %v6728_v58  ;;  %v5552_v2 = vadd.f32 %v6731_v16, %v6730_v18  ;;  %v1210_v30 = vmul.f32 0.11111111, %v1202_v19  ;;  %v6740_v7 = vld [vmem:[#allocation49_spill] sm:$0xff]  ;;  %v6743_v19 = vld [vmem:[#allocation68_spill] sm:$0xff] }
 0x521   : > { %6727 = vst [vmem:[#allocation66_spill] sm:$0xff] %v5536_v42  ;;  %v5556_v51 = vmul.f32 %v6732_v3, %v6732_v3  ;;  %v5560_v24 = vmul.f32 %v5495_v36, %v5495_v36  ;;  %v5564_v39 = vmul.f32 %v6736_v35, %v6735_v47  ;;  %v1211_v23 = vmul.f32 0.11111111, %v1203_v29  ;;  %2232 = vrot.lane.b32.xlu1 %v5419_v54, %s3312_s29  ;;  %v6745_v58 = vld [vmem:[#allocation31_spill] sm:$0xff]  ;;  %v6748_v35 = vld [vmem:[#allocation81_spill] sm:$0xff]  ;;  %v6818_v32 = vld [vmem:[#allocation60_spill] sm:$0xff] }
 0x522   : > { %6729 = vst [vmem:[#allocation70_spill] sm:$0xff] %v5548_v46  ;;  %v1066_v62 = vadd.f32 %v6739_v4, %v6738_v33  ;;  %v1213_v10 = vadd.f32 %v1081_v61, %v6740_v7  ;;  %v5572_v31 = vsel %vm547_vm1, %v2279_v57, 0.0  ;;  %v2486_v38 = vmul.f32 2.0, %v5531_v49  ;;  %v6746_v16 = vld [vmem:[#allocation75_spill] sm:$0xff]  ;;  %v6747_v61 = vld [vmem:[#allocation77_spill] sm:$0xff]  ;;  %v6749_v33 = vld [vmem:[#allocation42_spill] sm:$0xff] }
 0x523   : > { %6733 = vst [vmem:[#allocation74_spill] sm:$0xff] %v5556_v51  ;;  %6734 = vst [vmem:[#allocation32_spill] sm:$0xff] %v5560_v24  ;;  %v5577_v59 = vmul.f32 0.11111111, %v887_v27  ;;  %v1067_v5 = vadd.f32 %v6744_v41, %v6743_v19  ;;  %v1228_v29 = vadd.f32 %v1212_v43, %v6745_v58  ;;  %v2488_v18 = vmul.f32 2.0, %v5548_v46  ;;  %v6750_v4 = vld [vmem:[#allocation63_spill] sm:$0xff]  ;;  %2294 = vrot.lane.b32.xlu0 %v5572_v31, %s3311_s22 }
 0x524   : > { %6737 = vst [vmem:[#allocation34_spill] sm:$0xff] %v5564_v39  ;;  %6741 = vst [vmem:[#allocation41_spill] sm:$0xff] %v5572_v31  ;;  %v1082_v47 = vadd.f32 %v6746_v16, %v1066_v62  ;;  %v1136_v57 = vadd.f32 %v6748_v35, %v6747_v61  ;;  %v5588_v7 = vmul.f32 %v6750_v4, %v6749_v33  ;;  %v2489_v54 = vmul.f32 2.0, %v5564_v39  ;;  %v6752_v27 = vld [vmem:[#allocation23_spill] sm:$0xff]  ;;  %v6755_v41 = vld [vmem:[#allocation78_spill] sm:$0xff] }
 0x525   : > { %6742 = vst [vmem:[#allocation17_spill] sm:$0xff] %v5577_v59  ;;  %v5592_v8 = vmul.f32 %v1210_v30, %v6752_v27  ;;  %v1083_v19 = vadd.f32 %v6754_v52, %v1067_v5  ;;  %v6756_v43 = vld [vmem:[#allocation82_spill] sm:$0xff]  ;;  %v5599_v62 = vmul.f32 %v1210_v30, %v1210_v30  ;;  %v6757_v16 = vld [vmem:[#allocation47_spill] sm:$0xff]  ;;  %v6760_v4 = vld [vmem:[#allocation85_spill] sm:$0xff]  ;;  %2308 = vrot.lane.b32.xlu1 %v5471_v45, %s3312_s29  ;;  %v5608_v27 = vadd.f32 0.0001, %v2486_v38 }
 0x526   : > { %6751 = vst [vmem:[#allocation26_spill] sm:$0xff] %v5588_v7  ;;  %v1137_v58 = vadd.f32 %v6756_v43, %v6755_v41  ;;  %v5602_v61 = vmul.f32 %v1211_v23, %v6757_v16  ;;  %v6759_v35 = vld [vmem:[#allocation50_spill] sm:$0xff]  ;;  %v1152_v39 = vadd.f32 %v6760_v4, %v1136_v57  ;;  %v5612_v52 = vmul.f32 %v5577_v59, %v5577_v59  ;;  %v6765_v46 = vld [vmem:[#allocation53_spill] sm:$0xff]  ;;  %v6767_v45 = vld [vmem:[#allocation92_spill] sm:$0xff] }
 0x527   : > { %6753 = vst [vmem:[#allocation20_spill] sm:$0xff] %v5592_v8  ;;  %v1229_v33 = vadd.f32 %v1213_v10, %v6759_v35  ;;  %6761 = vst [vmem:[#allocation89_spill] sm:$0xff] %v5608_v27  ;;  %v1232_v5 = vmul.f32 0.11111111, %v1228_v29  ;;  %v6763_v41 = vld [vmem:[#allocation86_spill] sm:$0xff]  ;;  %v5617_v16 = vmul.f32 %v1211_v23, %v1211_v23  ;;  %v1214_v10 = vadd.f32 %v1082_v47, %v6765_v46  ;;  %v6768_v59 = vld [vmem:[#allocation97_spill] sm:$0xff] }
 0x528   : > { %6758 = vst [vmem:[#allocation21_spill] sm:$0xff] %v5602_v61  ;;  %6762 = vst [vmem:[#allocation67_spill] sm:$0xff] %v5612_v52  ;;  %v1153_v30 = vadd.f32 %v6763_v41, %v1137_v58  ;;  %v5615_v43 = vadd.f32 0.0001, %v2488_v18  ;;  %v2487_v57 = vmul.f32 2.0, %v5588_v7  ;;  %v2490_v38 = vmul.f32 2.0, %v5592_v8  ;;  %2234 = vrot.lane.b32.xlu0 %v5523_v22, %s3312_s29 }
 0x529   : > { %v5621_v35 = vadd.f32 0.0001, %v2489_v54  ;;  %v1215_v4 = vadd.f32 %v1083_v19, %v5086_v63  ;;  %v1359_v28 = vadd.f32 %v6768_v59, %v6767_v45  ;;  %v2491_v29 = vmul.f32 2.0, %v5602_v61  ;;  %v6769_v23 = vld [vmem:[#allocation35_spill] sm:$0xff]  ;;  %2310 = vrot.lane.b32.xlu1 %v5572_v31, %s3312_s29  ;;  %v6770_v54 = vld [vmem:[#allocation37_spill] sm:$0xff]  ;;  %v6773_v41 = vld [vmem:[#allocation96_spill] sm:$0xff] }
 0x52a   : > { %6764 = vst [vmem:[#allocation71_spill] sm:$0xff] %v5615_v43  ;;  %v2530_v18 = vadd.f32 %v5599_v62, %v6769_v23  ;;  %v1233_v46 = vmul.f32 0.11111111, %v1229_v33  ;;  %v1256_v47 = vrot.slane %v1152_v39, 2  ;;  %v5635_v58 = vmul.f32 %v1232_v5, %v6770_v54  ;;  %v6772_v19 = vld [vmem:[#allocation91_spill] sm:$0xff]  ;;  %v6774_v59 = vld [vmem:[#allocation104_spill] sm:$0xff] }
 0x52b   : > { %6766 = vst [vmem:[#allocation49_spill] sm:$0xff] %v5621_v35  ;;  %v1257_v63 = vrot.slane %v1153_v30, 2  ;;  %v1358_v45 = vadd.f32 %v6773_v41, %v6772_v19  ;;  %v5640_v8 = vadd.f32 %v6774_v59, %v1359_v28  ;;  %v6775_v22 = vld [vmem:[#allocation16_spill] sm:$0xff]  ;;  %v5644_v35 = vmul.f32 %v1232_v5, %v1232_v5  ;;  %v6776_v33 = vld [vmem:[#allocation57_spill] sm:$0xff]  ;;  %v6779_v30 = vld [vmem:[#allocation79_spill] sm:$0xff] }
 0x52c   : > { %6771 = vst [vmem:[#allocation68_spill] sm:$0xff] %v5635_v58  ;;  %v2531_v61 = vadd.f32 %v5617_v16, %v6775_v22  ;;  %v1230_v39 = vadd.f32 %v1214_v10, %v6776_v33  ;;  %v5647_v43 = vadd.f32 0.0001, %v2487_v57  ;;  %v5649_v31 = vadd.f32 0.0001, %v2490_v38  ;;  %v6781_v19 = vld [vmem:[#allocation103_spill] sm:$0xff] }
 0x52d   : > { %v1231_v54 = vadd.f32 %v1215_v4, %v5498_v48  ;;  %v1138_v27 = vadd.f32 %v6780_v50, %v6779_v30  ;;  %v5655_v41 = vadd.f32 %v6781_v19, %v1358_v45  ;;  %v5657_v28 = vadd.f32 0.0001, %v2491_v29  ;;  %v6783_v59 = vld [vmem:[#allocation38_spill] sm:$0xff]  ;;  %v6785_v5 = vld [vmem:[#allocation80_spill] sm:$0xff]  ;;  %v6787_v57 = vld [vmem:[#allocation19_spill] sm:$0xff] }
 0x52e   : > { %6777 = vst [vmem:[#allocation72_spill] sm:$0xff] %v5647_v43  ;;  %6778 = vst [vmem:[#allocation31_spill] sm:$0xff] %v5649_v31  ;;  %v5660_v11 = vmul.f32 %v1233_v46, %v6783_v59  ;;  %v1139_v10 = vadd.f32 %v6786_v60, %v6785_v5  ;;  %v1264_v33 = vadd.f32 %v1256_v47, %v6787_v57  ;;  %v2660_v38 = vmul.f32 2.0, %v5635_v58  ;;  %v6788_v4 = vld [vmem:[#allocation87_spill] sm:$0xff]  ;;  %v6790_v59 = vld [vmem:[#allocation88_spill] sm:$0xff] }
 0x52f   : > { %6782 = vst [vmem:[#allocation75_spill] sm:$0xff] %v5657_v28  ;;  %v1265_v48 = vadd.f32 %v1257_v63, %v5552_v2  ;;  %v1154_v31 = vadd.f32 %v6788_v4, %v1138_v27  ;;  %v1551_v50 = vrot.slane %v5640_v8, 7  ;;  %v6789_v45 = vld [vmem:[#allocation59_spill] sm:$0xff]  ;;  %v5671_v30 = vmul.f32 %v1233_v46, %v1233_v46  ;;  %v6791_v47 = vld [vmem:[#allocation48_spill] sm:$0xff]  ;;  %v6802_v49 = vld [vmem:[#allocation106_spill] sm:$0xff] }
 0x530   : > { %6784 = vst [vmem:[#allocation77_spill] sm:$0xff] %v5660_v11  ;;  %v2680_v29 = vadd.f32 %v5644_v35, %v6789_v45  ;;  %v1234_v19 = vmul.f32 0.11111111, %v1230_v39  ;;  %v1155_v28 = vadd.f32 %v6790_v59, %v1139_v10  ;;  %v5674_v43 = vadd.f32 0.0001, %v2530_v18  ;;  %v6792_v5 = vld [vmem:[#allocation55_spill] sm:$0xff] }
 0x531   : > { %v1235_v60 = vmul.f32 0.11111111, %v1231_v54  ;;  %v1250_v57 = vadd.f32 %v6792_v5, %v6791_v47  ;;  %v1547_v2 = vrot.slane %v5655_v41, 7  ;;  %v5679_v63 = vadd.f32 0.0001, %v2531_v61  ;;  %v6795_v59 = vld [vmem:[#allocation52_spill] sm:$0xff] }
 0x532   : > { %v2661_v27 = vmul.f32 2.0, %v5660_v11  ;;  %v1268_v4 = vmul.f32 0.11111111, %v1264_v33  ;;  %v1251_v46 = vadd.f32 %v5288_v20, %v5123_v26  ;;  %v5684_v58 = vadd.f32 0.0001, %v2660_v38  ;;  %v6803_v52 = vld [vmem:[#allocation110_spill] sm:$0xff] }
 0x533   : > { %v1269_v39 = vmul.f32 0.11111111, %v1265_v48  ;;  %v1258_v10 = vrot.slane %v1154_v31, 2  ;;  %v1559_v18 = vsel %vm782_vm3, %v1551_v50, %v1547_v2  ;;  %v5688_v54 = vadd.f32 0.0001, %v2680_v29  ;;  %v6800_v29 = vld [vmem:[#allocation105_spill] sm:$0xff] }
 0x534   : > { %6793 = vst [vmem:[#allocation81_spill] sm:$0xff] %v5684_v58  ;;  %v2681_v47 = vadd.f32 %v5671_v30, %v6795_v59  ;;  %v5693_v61 = vmul.f32 %v1234_v19, %v5001_v0  ;;  %v1259_v5 = vrot.slane %v1155_v28, 2  ;;  %v5695_v33 = vmul.f32 %v1234_v19, %v1234_v19  ;;  %v6801_v58 = vld [vmem:[#allocation109_spill] sm:$0xff] }
 0x535   : > { %6794 = vst [vmem:[#allocation42_spill] sm:$0xff] %v5688_v54  ;;  %v5697_v11 = vmul.f32 %v1235_v60, %v1235_v60  ;;  %v1555_v26 = vsel %vm782_vm3, %v1547_v2, %v1551_v50  ;;  %v1575_v20 = vrot.slane %v5640_v8, 1  ;;  %v5702_v31 = vadd.f32 0.0001, %v2661_v27  ;;  %v6804_v54 = vld [vmem:[#allocation113_spill] sm:$0xff] }
 0x536   : > { %6796 = vst [vmem:[#allocation63_spill] sm:$0xff] %v5693_v61  ;;  %6797 = vst [vmem:[#allocation23_spill] sm:$0xff] %v5695_v33  ;;  %v5704_v38 = vmul.f32 %v1268_v4, %v1268_v4  ;;  %v1566_v48 = vadd.f32 %v1559_v18, %v5655_v41  ;;  %v1448_v0 = vadd.f32 %v6801_v58, %v6800_v29  ;;  %v5712_v19 = vrot.slane %v5655_v41, 1 }
 0x537   : > { %6798 = vst [vmem:[#allocation76_spill] sm:$0xff] %v5697_v11  ;;  %6799 = vst [vmem:[#allocation78_spill] sm:$0xff] %v5702_v31  ;;  %v5709_v7 = vmul.f32 %v1269_v39, %v1269_v39  ;;  %v1266_v28 = vadd.f32 %v1258_v10, %v1250_v57  ;;  %v1449_v50 = vadd.f32 %v6803_v52, %v6802_v49  ;;  %v2662_v2 = vmul.f32 2.0, %v5693_v61  ;;  %v6805_v57 = vld [vmem:[#allocation114_spill] sm:$0xff]  ;;  %v6807_v52 = vld [vmem:[#allocation24_spill] sm:$0xff] }
 0x538   : > { %v1267_v27 = vadd.f32 %v1259_v5, %v1251_v46  ;;  %v1567_v31 = vadd.f32 %v1555_v26, %v5640_v8  ;;  %v1464_v42 = vadd.f32 %v6804_v54, %v1448_v0  ;;  %v2682_v18 = vadd.f32 %v5695_v33, %v5544_v9  ;;  %v6809_v5 = vld [vmem:[#allocation54_spill] sm:$0xff] }
 0x539   : > { %v2683_v58 = vadd.f32 %v5697_v11, %v5556_v51  ;;  %v1465_v10 = vadd.f32 %v6805_v57, %v1449_v50  ;;  %v1579_v29 = vsel %vm807_vm4, %v5712_v19, %v1575_v20  ;;  %v5727_v49 = vadd.f32 0.0001, %v2681_v47  ;;  %v1825_v47 = vpop.permute.xlu0 %1824  ;;  %v6813_v11 = vld [vmem:[#allocation62_spill] sm:$0xff] }
 0x53a   : > { %v5730_v46 = vmul.f32 %v1268_v4, %v6807_v52  ;;  %v2781_v54 = vadd.f32 %v5704_v38, %v6809_v5  ;;  %v1590_v26 = vadd.f32 %v1579_v29, %v1566_v48  ;;  %v5735_v0 = vmul.f32 %v1235_v60, %v6732_v3 }
 0x53b   : > { %6806 = vst [vmem:[#allocation82_spill] sm:$0xff] %v5727_v49  ;;  %v2782_v61 = vadd.f32 %v5709_v7, %v5540_v44  ;;  %v1270_v50 = vmul.f32 0.11111111, %v1266_v28  ;;  %v1583_v57 = vsel %vm807_vm4, %v1575_v20, %v5712_v19  ;;  %v5742_v51 = vpop.permute.xlu1 %1826  ;;  %v5744_v4 = vadd.f32 0.0001, %v2662_v2  ;;  %v6817_v28 = vld [vmem:[#allocation111_spill] sm:$0xff] }
 0x53c   : > { %6808 = vst [vmem:[#allocation47_spill] sm:$0xff] %v5730_v46  ;;  %6810 = vst [vmem:[#allocation50_spill] sm:$0xff] %v5735_v0  ;;  %v5746_v52 = vmul.f32 0.11111111, %v1267_v27  ;;  %v1600_v48 = vadd.f32 %v1464_v42, %v6813_v11  ;;  %v1591_v29 = vadd.f32 %v1583_v57, %v1567_v31  ;;  %v5749_v3 = vadd.f32 0.0001, %v2682_v18 }
 0x53d   : > { %6811 = vst [vmem:[#allocation85_spill] sm:$0xff] %v5744_v4  ;;  %v5751_v60 = vadd.f32 0.0001, %v2683_v58  ;;  %v6816_v0 = vld [vmem:[#allocation107_spill] sm:$0xff]  ;;  %v1601_v53 = vadd.f32 %v1465_v10, %v6818_v32  ;;  %v5757_v25 = vmul.f32 2.0, %v5730_v46  ;;  %v5762_v2 = vmul.f32 %v1269_v39, %v4999_v56  ;;  %v5774_v32 = vpop.permute.xlu0 %1900  ;;  %v6832_v4 = vld [vmem:[#allocation94_spill] sm:$0xff] }
 0x53e   : > { %6812 = vst [vmem:[#allocation86_spill] sm:$0xff] %v5746_v52  ;;  %6814 = vst [vmem:[#allocation53_spill] sm:$0xff] %v5749_v3  ;;  %v1450_v49 = vadd.f32 %v6817_v28, %v6816_v0  ;;  %v5759_v33 = vadd.f32 0.0001, %v2781_v54  ;;  %v5764_v27 = vmul.f32 0.11111111, %v1590_v26  ;;  %v5768_v42 = vmul.f32 %v1270_v50, %v1270_v50 }
 0x53f   : > { %6815 = vst [vmem:[#allocation92_spill] sm:$0xff] %v5751_v60  ;;  %6819 = vst [vmem:[#allocation97_spill] sm:$0xff] %v5757_v25  ;;  %v5766_v11 = vadd.f32 0.0001, %v2782_v61  ;;  %v5771_v31 = vmul.f32 %v1270_v50, %v5495_v36  ;;  %v6825_v18 = vld [vmem:[#allocation115_spill] sm:$0xff]  ;;  %v5776_v10 = vpop.permute.xlu1 %1902  ;;  %v5780_v54 = vmul.f32 %v5746_v52, %v5746_v52  ;;  %v6829_v61 = vld [vmem:[#allocation90_spill] sm:$0xff]  ;;  %v5797_v52 = vadd.f32 %v1575_v20, %v5640_v8 }
 0x540   : > { %6820 = vst [vmem:[#allocation35_spill] sm:$0xff] %v5759_v33  ;;  %6821 = vst [vmem:[#allocation37_spill] sm:$0xff] %v5762_v2  ;;  %v1466_v58 = vadd.f32 %v6825_v18, %v1450_v49  ;;  %v6827_v56 = vld [vmem:[#allocation95_spill] sm:$0xff]  ;;  %v5785_v57 = vmul.f32 0.11111111, %v1591_v29  ;;  %v6830_v28 = vld [vmem:[#allocation108_spill] sm:$0xff]  ;;  %v1617_v49 = vadd.f32 %v1601_v53, %v6832_v4  ;;  %v1837_v13 = vadd.f32 %v5742_v51, %v6858_v40 }
 0x541   : > { %6822 = vst [vmem:[#allocation91_spill] sm:$0xff] %v5766_v11  ;;  %6823 = vst [vmem:[#allocation96_spill] sm:$0xff] %v5768_v42  ;;  %v1616_v39 = vadd.f32 %v1600_v48, %v6827_v56  ;;  %v6828_v26 = vld [vmem:[#allocation27_spill] sm:$0xff]  ;;  %v6831_v36 = vld [vmem:[#allocation112_spill] sm:$0xff]  ;;  %v1761_v20 = vpop.permute.xlu0 %1760 }
 0x542   : > { %6824 = vst [vmem:[#allocation104_spill] sm:$0xff] %v5771_v31  ;;  %6826 = vst [vmem:[#allocation16_spill] sm:$0xff] %v5780_v54  ;;  %v1636_v0 = vadd.f32 %v6829_v61, %v6828_v26  ;;  %v1451_v50 = vadd.f32 %v6831_v36, %v6830_v28  ;;  %v6833_v18 = vld [vmem:[#allocation61_spill] sm:$0xff]  ;;  %v6834_v46 = vld [vmem:[#allocation64_spill] sm:$0xff] }
 0x543   : > { %v1637_v60 = vadd.f32 %v6834_v46, %v6833_v18  ;;  %v6835_v25 = vld [vmem:[#allocation93_spill] sm:$0xff]  ;;  %v6836_v31 = vld [vmem:[#allocation102_spill] sm:$0xff]  ;;  %v6838_v56 = vld [vmem:[#allocation139_spill] sm:$0xff]  ;;  %v1763_v33 = vpop.permute.xlu1 %1762  ;;  %v5811_v42 = vmul.f32 0.11111111, %v1616_v39 }
 0x544   : > { %v5794_v3 = vadd.f32 %v6836_v31, %v6835_v25  ;;  %v6837_v29 = vld [vmem:[#allocation134_spill] sm:$0xff]  ;;  %v6839_v61 = vld [vmem:[#allocation135_spill] sm:$0xff]  ;;  %v6842_v2 = vld [vmem:[#allocation116_spill] sm:$0xff] }
 0x545   : > { %v1746_v26 = vadd.f32 %v6838_v56, %v6837_v29  ;;  %v6840_v28 = vld [vmem:[#allocation131_spill] sm:$0xff]  ;;  %v1467_v46 = vadd.f32 %v6842_v2, %v1451_v50  ;;  %v6843_v18 = vld [vmem:[#allocation117_spill] sm:$0xff]  ;;  %v6845_v31 = vld [vmem:[#allocation118_spill] sm:$0xff]  ;;  %v2467_v29 = vsub.f32 %v5785_v57, %v6775_v22 }
 0x546   : > { %v1747_v36 = vadd.f32 %v6840_v28, %v6839_v61  ;;  %v6841_v53 = vld [vmem:[#allocation99_spill] sm:$0xff]  ;;  %v6844_v54 = vld [vmem:[#allocation121_spill] sm:$0xff]  ;;  %v6846_v11 = vld [vmem:[#allocation122_spill] sm:$0xff] }
 0x547   : > { %v1602_v4 = vadd.f32 %v1466_v58, %v6841_v53  ;;  %v1524_v25 = vadd.f32 %v6844_v54, %v6843_v18  ;;  %v1525_v8 = vadd.f32 %v6846_v11, %v6845_v31  ;;  %v5815_v56 = vadd.f32 %v1761_v20, %v1746_v26  ;;  %v6847_v2 = vld [vmem:[#allocation119_spill] sm:$0xff]  ;;  %v6849_v54 = vld [vmem:[#allocation125_spill] sm:$0xff]  ;;  %v6850_v18 = vld [vmem:[#allocation126_spill] sm:$0xff] }
 0x548   : > { %v5817_v61 = vadd.f32 %v1763_v33, %v1747_v36  ;;  %v5819_v58 = vmul.f32 0.11111111, %v1617_v49  ;;  %v6848_v50 = vld [vmem:[#allocation123_spill] sm:$0xff]  ;;  %v6853_v33 = vld [vmem:[#allocation101_spill] sm:$0xff]  ;;  %v1603_v26 = vadd.f32 %v1467_v46, %v5655_v41 }
 0x549   : > { %v1526_v28 = vadd.f32 %v6848_v50, %v6847_v2  ;;  %v1540_v53 = vadd.f32 %v6849_v54, %v1524_v25  ;;  %v1541_v11 = vadd.f32 %v6850_v18, %v1525_v8  ;;  %v1935_v31 = vrot.slane %v5815_v56, 7  ;;  %v6854_v36 = vld [vmem:[#allocation127_spill] sm:$0xff]  ;;  %v6855_v2 = vld [vmem:[#allocation12_spill] sm:$0xff]  ;;  %v1829_v50 = vpop.permute.xlu0 %1828  ;;  %v1841_v8 = vpop.permute.xlu1 %1840  ;;  %v6860_v51 = vld [vmem:[#allocation13_spill] sm:$0xff] }
 0x54a   : > { %v5827_v39 = vrot.slane %v5815_v56, 1  ;;  %v1939_v22 = vrot.slane %v5817_v61, 7  ;;  %v5831_v57 = vrot.slane %v5817_v61, 1  ;;  %v1618_v49 = vadd.f32 %v1602_v4, %v6853_v33  ;;  %v6856_v4 = vld [vmem:[#allocation120_spill] sm:$0xff] }
 0x54b   : > { %v1542_v20 = vadd.f32 %v6854_v36, %v1526_v28  ;;  %v1836_v25 = vadd.f32 %v1825_v47, %v6855_v2  ;;  %v6857_v47 = vld [vmem:[#allocation124_spill] sm:$0xff]  ;;  %v1645_v2 = vrot.slane %v1541_v11, 2 }
 0x54c   : > { %6851 = vst [vmem:[#allocation57_spill] sm:$0xff] %v5827_v39  ;;  %6852 = vst [vmem:[#allocation79_spill] sm:$0xff] %v5831_v57  ;;  %v1943_v54 = vsel %vm782_vm3, %v1935_v31, %v1939_v22  ;;  %v1947_v18 = vsel %vm782_vm3, %v1939_v22, %v1935_v31  ;;  %v1967_v48 = vsel %vm807_vm4, %v5827_v39, %v5831_v57  ;;  %v1644_v22 = vrot.slane %v1540_v53, 2 }
 0x54d   : > { %v1971_v41 = vsel %vm807_vm4, %v5831_v57, %v5827_v39  ;;  %v1527_v46 = vadd.f32 %v6857_v47, %v6856_v4  ;;  %v1954_v28 = vadd.f32 %v1947_v18, %v5815_v56  ;;  %v1955_v33 = vadd.f32 %v1943_v54, %v5817_v61  ;;  %v1843_v4 = vpop.permute.xlu0 %1842  ;;  %v1905_v47 = vpop.permute.xlu1 %1904 }
 0x54e   : > { %v1852_v36 = vadd.f32 %v1841_v8, %v1836_v25  ;;  %v2649_v54 = vsub.f32 %v5819_v58, %v6795_v59  ;;  %v1619_v25 = vadd.f32 %v1603_v26, %v5712_v19  ;;  %v1646_v8 = vrot.slane %v1542_v20, 2 }
 0x54f   : > { %v1543_v24 = vadd.f32 %v6859_v55, %v1527_v46  ;;  %v1978_v6 = vadd.f32 %v1967_v48, %v1954_v28  ;;  %v1979_v39 = vadd.f32 %v1971_v41, %v1955_v33  ;;  %v1853_v18 = vadd.f32 %v1843_v4, %v1837_v13  ;;  %v6866_v4 = vld [vmem:[#allocation43_spill] sm:$0xff] }
 0x550   : > { %v1988_v57 = vadd.f32 %v1852_v36, %v5272_v21  ;;  %v5862_v53 = vmul.f32 0.11111111, %v1618_v49  ;;  %v1652_v55 = vadd.f32 %v1644_v22, %v1636_v0  ;;  %v1912_v48 = vadd.f32 %v5774_v32, %v6860_v51  ;;  %v6861_v21 = vld [vmem:[#allocation33_spill] sm:$0xff] }
 0x551   : > { %v1986_v11 = vmul.f32 0.11111111, %v1978_v6  ;;  %v1987_v31 = vmul.f32 0.11111111, %v1979_v39  ;;  %v1913_v41 = vadd.f32 %v5776_v10, %v6861_v21  ;;  %v1989_v46 = vadd.f32 %v1853_v18, %v5313_v15  ;;  %v1917_v49 = vpop.permute.xlu0 %1916  ;;  %v1919_v6 = vpop.permute.xlu1 %1918  ;;  %v6863_v15 = vld [vmem:[#allocation45_spill] sm:$0xff] }
 0x552   : > { %v2004_v40 = vadd.f32 %v1988_v57, %v5309_v1  ;;  %v1653_v28 = vadd.f32 %v1645_v2, %v1637_v60  ;;  %v1647_v33 = vrot.slane %v1543_v24, 2  ;;  %v1654_v39 = vadd.f32 %v1646_v8, %v5794_v3  ;;  %v6864_v60 = vld [vmem:[#allocation14_spill] sm:$0xff] }
 0x553   : > { %v2474_v19 = vsub.f32 %v1986_v11, %v5599_v62  ;;  %v2475_v13 = vsub.f32 %v1987_v31, %v5617_v16  ;;  %v2005_v1 = vadd.f32 %v1989_v46, %v5372_v34  ;;  %v1928_v0 = vadd.f32 %v1917_v49, %v1912_v48  ;;  %v6865_v62 = vld [vmem:[#allocation132_spill] sm:$0xff] }
 0x554   : > { %v1929_v57 = vadd.f32 %v1919_v6, %v1913_v41  ;;  %v6862_v32 = vsub.f32 %v5764_v27, %v6769_v23  ;;  %v2024_v24 = vadd.f32 %v6864_v60, %v6863_v15  ;;  %v2025_v20 = vadd.f32 %v6865_v62, %v5362_v37 }
 0x555   : > { %v2547_v26 = vadd.f32 %v2475_v13, %v2467_v29  ;;  %v2008_v16 = vmul.f32 0.11111111, %v2004_v40  ;;  %v2009_v36 = vmul.f32 0.11111111, %v2005_v1  ;;  %v2032_v31 = vrot.slane %v1928_v0, 2  ;;  %v1831_v18 = vpop.permute.xlu0 %1830  ;;  %v1845_v11 = vpop.permute.xlu1 %1844 }
 0x556   : > { %v2546_v10 = vadd.f32 %v2474_v19, %v6862_v32  ;;  %v2033_v22 = vrot.slane %v1929_v57, 2  ;;  %v1656_v3 = vmul.f32 0.11111111, %v1652_v55  ;;  %v1838_v8 = vadd.f32 %v1829_v50, %v6866_v4  ;;  %v6871_v57 = vld [vmem:[#allocation25_spill] sm:$0xff] }
 0x557   : > { %v2555_v34 = vadd.f32 0.0009, %v2547_v26  ;;  %v1657_v23 = vmul.f32 0.11111111, %v1653_v28  ;;  %v1655_v27 = vadd.f32 %v1647_v33, %v5797_v52  ;;  %v2040_v29 = vadd.f32 %v2032_v31, %v2024_v24  ;;  %v6867_v33 = vld [vmem:[#allocation15_spill] sm:$0xff]  ;;  %v6874_v24 = vld [vmem:[#allocation144_spill] sm:$0xff] }
 0x558   : > { %v2554_v2 = vadd.f32 0.0009, %v2546_v10  ;;  %v2041_v51 = vadd.f32 %v2033_v22, %v2025_v20  ;;  %v5883_v48 = vmul.f32 0.11111111, %v1654_v39  ;;  %v1854_v55 = vadd.f32 %v1845_v11, %v1838_v8  ;;  %v6873_v10 = vld [vmem:[#allocation142_spill] sm:$0xff]  ;;  %v6877_v8 = vld [vmem:[#allocation79_spill] sm:$0xff] }
 0x559   : > { %v5889_v40 = vmul.f32 %v2555_v34, %v5679_v63  ;;  %v2652_v21 = vsub.f32 %v2008_v16, %v5644_v35  ;;  %v2653_v50 = vsub.f32 %v2009_v36, %v5671_v30  ;;  %v2044_v41 = vmul.f32 0.11111111, %v2040_v29  ;;  %v1907_v13 = vpop.permute.xlu0 %1906  ;;  %v1921_v49 = vpop.permute.xlu1 %1920  ;;  %v6875_v16 = vld [vmem:[#allocation23_spill] sm:$0xff]  ;;  %v6876_v36 = vld [vmem:[#allocation22_spill] sm:$0xff]  ;;  %v6878_v29 = vld [vmem:[#allocation44_spill] sm:$0xff] }
 0x55a   : > { %v5886_v37 = vmul.f32 %v2554_v2, %v5674_v43  ;;  %v2045_v46 = vmul.f32 0.11111111, %v2041_v51  ;;  %v2650_v52 = vsub.f32 %v5862_v53, %v5544_v9  ;;  %v5895_v28 = vmul.f32 0.11111111, %v1619_v25 }
 0x55b   : > { %v1914_v19 = vadd.f32 %v1905_v47, %v6867_v33  ;;  %v1990_v43 = vadd.f32 %v1854_v55, %v5387_v14  ;;  %v2749_v63 = vsub.f32 %v1656_v3, %v6809_v5  ;;  %v2750_v6 = vsub.f32 %v1657_v23, %v5540_v44  ;;  %v6868_v47 = vld [vmem:[#allocation32_spill] sm:$0xff]  ;;  %v6870_v44 = vld [vmem:[#allocation18_spill] sm:$0xff]  ;;  %v6879_v55 = vld [vmem:[#allocation57_spill] sm:$0xff] }
 0x55c   : > { %v2564_v35 = vadd.f32 1e-07, %v5448_v12  ;;  %v2753_v30 = vsub.f32 %v2044_v41, %v5704_v38  ;;  %v5903_v39 = vmul.f32 0.11111111, %v1655_v27  ;;  %v2754_v9 = vsub.f32 %v2045_v46, %v5709_v7  ;;  %v6872_v7 = vld [vmem:[#allocation141_spill] sm:$0xff]  ;;  %v6881_v33 = vld [vmem:[#allocation96_spill] sm:$0xff] }
 0x55d   : > { %v2006_v25 = vadd.f32 %v1990_v43, %v5425_v17  ;;  %v1930_v53 = vadd.f32 %v1921_v49, %v1914_v19  ;;  %v2751_v14 = vsub.f32 %v5883_v48, %v6868_v47  ;;  %v6869_v1 = vsub.f32 %v5811_v42, %v6789_v45  ;;  %v1847_v15 = vpop.permute.xlu0 %1846  ;;  %v1923_v60 = vpop.permute.xlu1 %1922  ;;  %v6884_v49 = vld [vmem:[#allocation82_spill] sm:$0xff] }
 0x55e   : > { %v2689_v12 = vadd.f32 %v2653_v50, %v2649_v54  ;;  %v1839_v38 = vadd.f32 %v1831_v18, %v6870_v44  ;;  %v1915_v32 = vadd.f32 %v1907_v13, %v6871_v57  ;;  %v2026_v17 = vadd.f32 %v6873_v10, %v6872_v7  ;;  %v6880_v50 = vld [vmem:[#allocation69_spill] sm:$0xff]  ;;  %v6883_v13 = vld [vmem:[#allocation42_spill] sm:$0xff]  ;;  %v6886_v44 = vld [vmem:[#allocation35_spill] sm:$0xff] }
 0x55f   : > { %v2688_v5 = vadd.f32 %v2652_v21, %v6869_v1  ;;  %v2010_v0 = vmul.f32 0.11111111, %v2006_v25  ;;  %v2034_v26 = vrot.slane %v1930_v53, 2  ;;  %v2565_v62 = vadd.f32 1e-07, %v6874_v24  ;;  %v6885_v1 = vld [vmem:[#allocation67_spill] sm:$0xff] }
 0x560   : > { %3109 = vrcp.f32 %v2564_v35  ;;  %v2789_v45 = vadd.f32 %v2753_v30, %v2749_v63  ;;  %v1855_v42 = vadd.f32 %v1847_v15, %v1839_v38  ;;  %v2790_v20 = vadd.f32 %v2754_v9, %v2750_v6  ;;  %v6887_v57 = vld [vmem:[#allocation91_spill] sm:$0xff]  ;;  %v6888_v7 = vld [vmem:[#allocation16_spill] sm:$0xff] }
 0x561   : > { %v2654_v59 = vsub.f32 %v2010_v0, %v6875_v16  ;;  %v2042_v58 = vadd.f32 %v2034_v26, %v2026_v17  ;;  %v1931_v54 = vadd.f32 %v1923_v60, %v1915_v32  ;;  %v2566_v31 = vadd.f32 1e-07, %v6876_v36  ;;  %v2105_v23 = vpop.permute.xlu0 %2104  ;;  %v2107_v27 = vpop.permute.xlu1 %2106  ;;  %v6889_v17 = vld [vmem:[#allocation37_spill] sm:$0xff]  ;;  %v6892_v16 = vld [vmem:[#allocation104_spill] sm:$0xff]  ;;  %v6893_v36 = vld [vmem:[#allocation74_spill] sm:$0xff] }
 0x562   : > { %v2692_v22 = vadd.f32 0.0009, %v2688_v5  ;;  %v2693_v3 = vadd.f32 0.0009, %v2689_v12  ;;  %v1991_v2 = vadd.f32 %v1855_v42, %v5815_v56  ;;  %v2027_v18 = vadd.f32 %v6877_v8, %v5817_v61 }
 0x563   : > { %v2690_v34 = vadd.f32 %v2654_v59, %v2650_v52  ;;  %v2046_v4 = vmul.f32 0.11111111, %v2042_v58  ;;  %v2035_v11 = vrot.slane %v1931_v54, 2  ;;  %3111 = vrcp.f32 %v2565_v62  ;;  %v6882_v52 = vld [vmem:[#allocation66_spill] sm:$0xff]  ;;  %v6891_v62 = vld [vmem:[#allocation76_spill] sm:$0xff] }
 0x564   : > { %v2567_v51 = vadd.f32 1e-07, %v6878_v29  ;;  %v2793_v48 = vadd.f32 0.0009, %v2789_v45  ;;  %v2007_v21 = vadd.f32 %v1991_v2, %v6879_v55  ;;  %v2568_v41 = vadd.f32 1e-07, %v6880_v50 }
 0x565   : > { %v2794_v46 = vadd.f32 0.0009, %v2790_v20  ;;  %v2755_v19 = vsub.f32 %v2046_v4, %v6881_v33  ;;  %v2043_v56 = vadd.f32 %v2035_v11, %v2027_v18  ;;  %3113 = vrcp.f32 %v2566_v31  ;;  %v2109_v25 = vpop.permute.xlu0 %2108  ;;  %v2111_v53 = vpop.permute.xlu1 %2110  ;;  %v6894_v2 = vld [vmem:[#allocation97_spill] sm:$0xff]  ;;  %v6895_v4 = vld [vmem:[#allocation40_spill] sm:$0xff] }
 0x566   : > { %v2569_v43 = vadd.f32 1e-07, %v6882_v52  ;;  %v2696_v61 = vmul.f32 %v2692_v22, %v6883_v13  ;;  %v2697_v63 = vmul.f32 %v2693_v3, %v6884_v49  ;;  %v2694_v6 = vadd.f32 0.0009, %v2690_v34  ;;  %v6896_v18 = vld [vmem:[#allocation56_spill] sm:$0xff] }
 0x567   : > { %v2791_v35 = vadd.f32 %v2755_v19, %v2751_v14  ;;  %v2011_v30 = vmul.f32 0.11111111, %v2007_v21  ;;  %v2047_v9 = vmul.f32 0.11111111, %v2043_v56  ;;  %v2752_v5 = vsub.f32 %v5903_v39, %v6885_v1  ;;  %v6897_v56 = vld [vmem:[#allocation28_spill] sm:$0xff] }
 0x568   : > { %3115 = vrcp.f32 %v2567_v51  ;;  %v2570_v12 = vadd.f32 1e-07, %v5886_v37  ;;  %v2797_v38 = vmul.f32 %v2793_v48, %v6886_v44  ;;  %v2571_v0 = vadd.f32 1e-07, %v5889_v40  ;;  %v6890_v37 = vld [vmem:[#allocation53_spill] sm:$0xff] }
 0x569   : > { %3117 = vrcp.f32 %v2568_v41  ;;  %v2798_v32 = vmul.f32 %v2794_v46, %v6887_v57  ;;  %v2756_v10 = vsub.f32 %v2047_v9, %v6888_v7  ;;  %v2762_v26 = vmul.f32 2.0, %v6889_v17  ;;  %v2113_v40 = vpop.permute.xlu0 %2112  ;;  %v5946_v20 = vpop.permute.xlu1 %2114 }
 0x56a   : > { %v5939_v14 = vpop.eup %3109  ;;  %v2783_v15 = vadd.f32 %v6881_v33, %v6868_v47  ;;  %3119 = vrcp.f32 %v2569_v43  ;;  %v2700_v39 = vadd.f32 1e-07, %v2696_v61  ;;  %v2701_v60 = vadd.f32 1e-07, %v2697_v63  ;;  %v6898_v43 = vld [vmem:[#allocation58_spill] sm:$0xff] }
 0x56b   : > { %v2698_v24 = vmul.f32 %v2694_v6, %v6890_v37  ;;  %v2655_v45 = vsub.f32 %v2011_v30, %v6891_v62  ;;  %v2792_v42 = vadd.f32 %v2756_v10, %v2752_v5  ;;  %v2763_v59 = vmul.f32 2.0, %v6892_v16  ;;  %v6900_v62 = vld [vmem:[#allocation98_spill] sm:$0xff] }
 0x56c   : > { %v2784_v58 = vadd.f32 %v6888_v7, %v6885_v1  ;;  %3121 = vrcp.f32 %v2570_v12  ;;  %v2801_v54 = vadd.f32 1e-07, %v2797_v38  ;;  %v2651_v47 = vsub.f32 %v5895_v28, %v6893_v36 }
 0x56d   : > { %3123 = vrcp.f32 %v2571_v0  ;;  %v2802_v31 = vadd.f32 1e-07, %v2798_v32  ;;  %v2795_v22 = vadd.f32 0.0009, %v2791_v35  ;;  %v5953_v3 = vpop.eup %3111  ;;  %v5956_v34 = vadd.f32 0.0001, %v6894_v2  ;;  %v2137_v55 = vpop.permute.xlu0 %2136 }
 0x56e   : > { %3125 = vrcp.f32 %v2700_v39  ;;  %v2128_v8 = vadd.f32 %v2105_v23, %v6895_v4  ;;  %v2129_v11 = vadd.f32 %v2107_v27, %v6896_v18  ;;  %v2787_v29 = vadd.f32 0.0001, %v2783_v15  ;;  %v2139_v21 = vpop.permute.xlu1 %2138 }
 0x56f   : > { %3127 = vrcp.f32 %v2701_v60  ;;  %v2702_v51 = vadd.f32 1e-07, %v2698_v24  ;;  %v2691_v48 = vadd.f32 %v2655_v45, %v2651_v47  ;;  %v5960_v28 = vpop.eup %3113  ;;  %v5962_v50 = vadd.f32 0.0001, %v2762_v26 }
 0x570   : > { %3129 = vrcp.f32 %v2801_v54  ;;  %v5964_v41 = vadd.f32 %v2137_v55, %v2128_v8  ;;  %v5966_v46 = vadd.f32 %v2139_v21, %v2129_v11  ;;  %v5968_v33 = vadd.f32 0.0001, %v2763_v59 }
 0x571   : > { %v2788_v23 = vadd.f32 0.0001, %v2784_v58  ;;  %3131 = vrcp.f32 %v2802_v31  ;;  %v2799_v27 = vmul.f32 %v2795_v22, %v2787_v29  ;;  %v2130_v52 = vadd.f32 %v2109_v25, %v6897_v56  ;;  %v2141_v9 = vpop.permute.xlu0 %2140  ;;  %v6901_v31 = vld [vmem:[#allocation92_spill] sm:$0xff] }
 0x572   : > { %v5970_v19 = vpop.eup %3115  ;;  %v2131_v13 = vadd.f32 %v2111_v53, %v6898_v43  ;;  %v2320_v61 = vrot.slane %v5964_v41, 7  ;;  %v2324_v49 = vrot.slane %v5966_v46, 7  ;;  %3133 = vrcp.f32 %v2702_v51  ;;  %v2143_v1 = vpop.permute.xlu1 %2142 }
 0x573   : > { %v5976_v63 = vpop.eup %3117  ;;  %v2695_v6 = vadd.f32 0.0009, %v2691_v48  ;;  %v5979_v35 = vrot.slane %v5964_v41, 1  ;;  %v2348_v30 = vrot.slane %v5966_v46, 1  ;;  %v5988_v44 = vadd.f32 %v2141_v9, %v2130_v52  ;;  %v6902_v48 = vld [vmem:[#allocation100_spill] sm:$0xff]  ;;  %v6903_v52 = vld [vmem:[#allocation46_spill] sm:$0xff] }
 0x574   : > { %v5982_v5 = vpop.eup %3119  ;;  %v2328_v53 = vsel %vm782_vm3, %v2320_v61, %v2324_v49  ;;  %v2332_v12 = vsel %vm782_vm3, %v2324_v49, %v2320_v61  ;;  %v5990_v38 = vadd.f32 %v2143_v1, %v2131_v13  ;;  %v2803_v0 = vadd.f32 1e-07, %v2799_v27  ;;  %v6904_v13 = vld [vmem:[#allocation36_spill] sm:$0xff] }
 0x575   : > { %v2336_v57 = vadd.f32 %v2332_v12, %v5964_v41  ;;  %v2337_v32 = vadd.f32 %v2328_v53, %v5966_v46  ;;  %v2352_v7 = vsel %vm807_vm4, %v5979_v35, %v2348_v30  ;;  %v2356_v26 = vsel %vm807_vm4, %v2348_v30, %v5979_v35  ;;  %v2117_v54 = vpop.permute.xlu0 %2116 }
 0x576   : > { %v5997_v10 = vpop.eup %3121  ;;  %v2321_v15 = vrot.slane %v5988_v44, 7  ;;  %v2325_v39 = vrot.slane %v5990_v38, 7  ;;  %v6005_v60 = vrot.slane %v5990_v38, 1  ;;  %v2796_v24 = vadd.f32 0.0009, %v2792_v42  ;;  %v2119_v36 = vpop.permute.xlu1 %2118 }
 0x577   : > { %v6007_v37 = vpop.eup %3123  ;;  %v2132_v45 = vadd.f32 %v2113_v40, %v6900_v62  ;;  %v2360_v59 = vadd.f32 %v2352_v7, %v2336_v57  ;;  %v2361_v58 = vadd.f32 %v2356_v26, %v2337_v32  ;;  %v2699_v22 = vmul.f32 %v2695_v6, %v6901_v31 }
 0x578   : > { %v6010_v47 = vpop.eup %3125  ;;  %v6014_v2 = vrot.slane %v5988_v44, 1  ;;  %v2329_v4 = vsel %vm782_vm3, %v2321_v15, %v2325_v39  ;;  %v2333_v8 = vsel %vm782_vm3, %v2325_v39, %v2321_v15  ;;  %3135 = vrcp.f32 %v2803_v0 }
 0x579   : > { %v6020_v42 = vpop.eup %3127  ;;  %v2368_v40 = vmul.f32 0.11111111, %v2360_v59  ;;  %v2369_v18 = vmul.f32 0.11111111, %v2361_v58  ;;  %v2338_v11 = vadd.f32 %v2333_v8, %v5988_v44  ;;  %v2339_v29 = vadd.f32 %v2329_v4, %v5990_v38  ;;  %v2145_v9 = vpop.permute.xlu0 %2144 }
 0x57a   : > { %v6024_v51 = vpop.eup %3129  ;;  %v2133_v55 = vadd.f32 %v5946_v20, %v6902_v48  ;;  %v2353_v21 = vsel %vm807_vm4, %v6014_v2, %v6005_v60  ;;  %v2357_v27 = vsel %vm807_vm4, %v6005_v60, %v6014_v2  ;;  %v2147_v20 = vpop.permute.xlu1 %2146  ;;  %v6040_v1 = vadd.f32 1e-07, %v2699_v22  ;;  %v6906_v22 = vld [vmem:[#allocation26_spill] sm:$0xff] }
 0x57b   : > { %v6036_v56 = vpop.eup %3131  ;;  %v2476_v43 = vsub.f32 %v2368_v40, %v6903_v52  ;;  %v2477_v61 = vsub.f32 %v2369_v18, %v6904_v13  ;;  %v2362_v49 = vadd.f32 %v2353_v21, %v2338_v11  ;;  %v2363_v6 = vadd.f32 %v2357_v27, %v2339_v29  ;;  %v6907_v18 = vld [vmem:[#allocation30_spill] sm:$0xff]  ;;  %v6909_v21 = vld [vmem:[#allocation51_spill] sm:$0xff] }
 0x57c   : > { %v6042_v53 = vmul.f32 %v2796_v24, %v2788_v23  ;;  %v6044_v12 = vadd.f32 %v2145_v9, %v2132_v45  ;;  %v6046_v0 = vadd.f32 %v2147_v20, %v2133_v55  ;;  %v6048_v57 = vpop.eup %3133  ;;  %v6054_v58 = vadd.f32 %v2348_v30, %v5966_v46  ;;  %v6905_v45 = vld [vmem:[#allocation73_spill] sm:$0xff]  ;;  %v6908_v30 = vld [vmem:[#allocation39_spill] sm:$0xff] }
 0x57d   : > { %v2500_v32 = vmul.f32 2.0, %v2476_v43  ;;  %v2501_v7 = vmul.f32 2.0, %v2477_v61  ;;  %v2370_v26 = vmul.f32 0.11111111, %v2362_v49  ;;  %v2371_v15 = vmul.f32 0.11111111, %v2363_v6  ;;  %v2213_v8 = vpop.permute.xlu0 %2212 }
 0x57e   : > { %v2322_v39 = vrot.slane %v6044_v12, 7  ;;  %v2326_v62 = vrot.slane %v6046_v0, 7  ;;  %v2350_v59 = vrot.slane %v6046_v0, 1  ;;  %v2215_v40 = vpop.permute.xlu1 %2214  ;;  %v2134_v11 = vadd.f32 %v2117_v54, %v6907_v18  ;;  %v6912_v18 = vld [vmem:[#allocation72_spill] sm:$0xff] }
 0x57f   : > { %v2508_v23 = vadd.f32 0.0009, %v2500_v32  ;;  %v2509_v24 = vadd.f32 0.0009, %v2501_v7  ;;  %v2478_v31 = vsub.f32 %v2370_v26, %v6905_v45  ;;  %v2479_v4 = vsub.f32 %v2371_v15, %v6906_v22  ;;  %v6910_v15 = vld [vmem:[#allocation138_spill] sm:$0xff] }
 0x580   : > { %v6060_v29 = vrot.slane %v6044_v12, 1  ;;  %v2330_v48 = vsel %vm782_vm3, %v2322_v39, %v2326_v62  ;;  %v2334_v46 = vsel %vm782_vm3, %v2326_v62, %v2322_v39  ;;  %v2135_v39 = vadd.f32 %v2119_v36, %v6910_v15 }
 0x581   : > { %v2516_v55 = vmul.f32 %v2508_v23, %v6908_v30  ;;  %v2517_v27 = vmul.f32 %v2509_v24, %v6909_v21  ;;  %v2502_v52 = vmul.f32 2.0, %v2478_v31  ;;  %v2503_v43 = vmul.f32 2.0, %v2479_v4  ;;  %v2289_v7 = vpop.permute.xlu0 %2288  ;;  %v6911_v4 = vld [vmem:[#allocation89_spill] sm:$0xff]  ;;  %v6914_v21 = vld [vmem:[#allocation130_spill] sm:$0xff] }
 0x582   : > { %v2340_v13 = vadd.f32 %v2334_v46, %v6044_v12  ;;  %v2341_v61 = vadd.f32 %v2330_v48, %v6046_v0  ;;  %v2354_v54 = vsel %vm807_vm4, %v6060_v29, %v2350_v59  ;;  %v2358_v49 = vsel %vm807_vm4, %v2350_v59, %v6060_v29  ;;  %v6078_v26 = vpop.eup %3135  ;;  %v2291_v24 = vpop.permute.xlu1 %2290  ;;  %v6913_v30 = vld [vmem:[#allocation129_spill] sm:$0xff] }
 0x583   : > { %v2580_v6 = vmul.f32 %v5939_v14, %v2516_v55  ;;  %v2581_v9 = vmul.f32 %v5953_v3, %v2517_v27  ;;  %v2510_v20 = vadd.f32 0.0009, %v2502_v52  ;;  %v2511_v32 = vadd.f32 0.0009, %v2503_v43 }
 0x584   : > { %v2364_v62 = vadd.f32 %v2354_v54, %v2340_v13  ;;  %v2365_v23 = vadd.f32 %v2358_v49, %v2341_v61  ;;  %v6083_v45 = vadd.f32 %v6005_v60, %v5990_v38  ;;  %v2224_v55 = vadd.f32 %v2213_v8, %v6913_v30  ;;  %v6915_v60 = vld [vmem:[#allocation70_spill] sm:$0xff] }
 0x585   : > { %v2588_v31 = vsub.f32 1.0, %v2580_v6  ;;  %v2589_v22 = vsub.f32 1.0, %v2581_v9  ;;  %v2518_v14 = vmul.f32 %v2510_v20, %v6911_v4  ;;  %v2519_v3 = vmul.f32 %v2511_v32, %v6912_v18  ;;  %v2149_v38 = vpop.permute.xlu0 %2148  ;;  %v6916_v54 = vld [vmem:[#allocation34_spill] sm:$0xff]  ;;  %v6917_v6 = vld [vmem:[#allocation140_spill] sm:$0xff] }
 0x586   : > { %v2372_v48 = vmul.f32 0.11111111, %v2364_v62  ;;  %v2373_v46 = vmul.f32 0.11111111, %v2365_v23  ;;  %v2225_v27 = vadd.f32 %v2215_v40, %v6914_v21  ;;  %v2300_v9 = vadd.f32 %v2289_v7, %v6917_v6  ;;  %v2151_v32 = vpop.permute.xlu1 %2150 }
 0x587   : > { %v2596_v36 = vmul.f32 0.5, %v2588_v31  ;;  %v2597_v52 = vmul.f32 0.5, %v2589_v22  ;;  %v2582_v43 = vmul.f32 %v5960_v28, %v2518_v14  ;;  %v2583_v13 = vmul.f32 %v5970_v19, %v2519_v3  ;;  %v6918_v22 = vld [vmem:[#allocation133_spill] sm:$0xff] }
 0x588   : > { %v2480_v61 = vsub.f32 %v2372_v48, %v6915_v60  ;;  %v2481_v49 = vsub.f32 %v2373_v46, %v6916_v54  ;;  %v6094_v20 = vadd.f32 %v2149_v38, %v2134_v11  ;;  %v2301_v28 = vadd.f32 %v2291_v24, %v6918_v22  ;;  %v6920_v38 = vld [vmem:[#allocation49_spill] sm:$0xff] }
 0x589   : > { %v2604_v15 = vmax.f32 %v2596_v36, 0.0  ;;  %v2605_v8 = vmax.f32 %v2597_v52, 0.0  ;;  %v2590_v62 = vsub.f32 1.0, %v2582_v43  ;;  %v2591_v40 = vsub.f32 1.0, %v2583_v13  ;;  %v2217_v48 = vpop.permute.xlu0 %2216 }
 0x58a   : > { %v2504_v23 = vmul.f32 2.0, %v2480_v61  ;;  %v2505_v31 = vmul.f32 2.0, %v2481_v49  ;;  %v6098_v19 = vadd.f32 %v2350_v59, %v6046_v0  ;;  %v2323_v46 = vrot.slane %v6094_v20, 7  ;;  %v2229_v21 = vpop.permute.xlu1 %2228  ;;  %v6919_v59 = vld [vmem:[#allocation71_spill] sm:$0xff] }
 0x58b   : > { %v2612_v4 = vmin.f32 %v2604_v15, 1.0  ;;  %v2613_v14 = vmin.f32 %v2605_v8, 1.0  ;;  %v2598_v18 = vmul.f32 0.5, %v2590_v62  ;;  %v2599_v3 = vmul.f32 0.5, %v2591_v40 }
 0x58c   : > { %v2512_v7 = vadd.f32 0.0009, %v2504_v23  ;;  %v2513_v11 = vadd.f32 0.0009, %v2505_v31  ;;  %v6101_v30 = vadd.f32 %v2151_v32, %v2135_v39  ;;  %v6105_v24 = vrot.slane %v6094_v20, 1 }
 0x58d   : > { %v2620_v36 = vsel %vm440_vm2, %v2612_v4, 0.0  ;;  %v2606_v52 = vmax.f32 %v2598_v18, 0.0  ;;  %v2607_v43 = vmax.f32 %v2599_v3, 0.0  ;;  %v2627_v0 = vsel %vm440_vm2, %v2613_v14, 0.0  ;;  %v2231_v32 = vpop.permute.xlu0 %2230 }
 0x58e   : > { %v2520_v13 = vmul.f32 %v2512_v7, %v6919_v59  ;;  %v2521_v60 = vmul.f32 %v2513_v11, %v6920_v38  ;;  %v2327_v61 = vrot.slane %v6101_v30, 7  ;;  %v6112_v39 = vrot.slane %v6101_v30, 1  ;;  %v2293_v23 = vpop.permute.xlu1 %2292 }
 0x58f   : > { %v2614_v54 = vmin.f32 %v2606_v52, 1.0  ;;  %v2615_v49 = vmin.f32 %v2607_v43, 1.0  ;;  %v2240_v6 = vadd.f32 %v2229_v21, %v2224_v55  ;;  %3137 = vrcp.f32 %v6040_v1 }
 0x590   : > { %v2584_v15 = vmul.f32 %v5976_v63, %v2520_v13  ;;  %v2585_v8 = vmul.f32 %v5982_v5, %v2521_v60  ;;  %v2331_v62 = vsel %vm782_vm3, %v2323_v46, %v2327_v61  ;;  %v2335_v40 = vsel %vm782_vm3, %v2327_v61, %v2323_v46  ;;  %v6921_v13 = vld [vmem:[#allocation143_spill] sm:$0xff] }
 0x591   : > { %v2621_v31 = vsel %vm440_vm2, %v2614_v54, 0.0  ;;  %v2628_v22 = vsel %vm440_vm2, %v2615_v49, 0.0  ;;  %v2342_v4 = vadd.f32 %v2335_v40, %v6094_v20  ;;  %v2343_v55 = vadd.f32 %v2331_v62, %v6101_v30  ;;  %v2305_v21 = vpop.permute.xlu0 %2304 }
 0x592   : > { %v2622_v14 = vadd.f32 %v2621_v31, %v2620_v36  ;;  %v2629_v18 = vadd.f32 %v2628_v22, %v2627_v0  ;;  %v2592_v63 = vsub.f32 1.0, %v2584_v15  ;;  %v2593_v3 = vsub.f32 1.0, %v2585_v8  ;;  %v2307_v59 = vpop.permute.xlu1 %2306  ;;  %v6922_v31 = vld [vmem:[#allocation20_spill] sm:$0xff] }
 0x593   : > { %v2355_v5 = vsel %vm807_vm4, %v6105_v24, %v6112_v39  ;;  %v2359_v7 = vsel %vm807_vm4, %v6112_v39, %v6105_v24  ;;  %v2376_v11 = vadd.f32 %v2240_v6, %v5964_v41  ;;  %v2241_v46 = vadd.f32 %v2231_v32, %v2225_v27 }
 0x594   : > { %v2600_v52 = vmul.f32 0.5, %v2592_v63  ;;  %v2601_v43 = vmul.f32 0.5, %v2593_v3  ;;  %v2366_v36 = vadd.f32 %v2355_v5, %v2342_v4  ;;  %v2367_v0 = vadd.f32 %v2359_v7, %v2343_v55  ;;  %v6923_v4 = vld [vmem:[#allocation21_spill] sm:$0xff] }
 0x595   : > { %v2226_v38 = vadd.f32 %v2217_v48, %v6921_v13  ;;  %v2392_v60 = vadd.f32 %v2376_v11, %v5979_v35  ;;  %v2377_v61 = vadd.f32 %v2241_v46, %v5988_v44  ;;  %v2316_v54 = vadd.f32 %v2305_v21, %v2300_v9  ;;  %v6924_v35 = vld [vmem:[#allocation68_spill] sm:$0xff] }
 0x596   : > { %v2608_v49 = vmax.f32 %v2600_v52, 0.0  ;;  %v2609_v15 = vmax.f32 %v2601_v43, 0.0  ;;  %v2374_v25 = vmul.f32 0.11111111, %v2366_v36  ;;  %v2375_v8 = vmul.f32 0.11111111, %v2367_v0  ;;  %v2233_v55 = vpop.permute.xlu1 %2232 }
 0x597   : > { %v2396_v62 = vmul.f32 0.11111111, %v2392_v60  ;;  %v2393_v41 = vadd.f32 %v2377_v61, %v6014_v2  ;;  %v2420_v27 = vrot.slane %v2316_v54, 2  ;;  %v2317_v6 = vadd.f32 %v2307_v59, %v2301_v28  ;;  %v6925_v52 = vld [vmem:[#allocation77_spill] sm:$0xff] }
 0x598   : > { %v2616_v32 = vmin.f32 %v2608_v49, 1.0  ;;  %v2617_v40 = vmin.f32 %v2609_v15, 1.0  ;;  %v2482_v22 = vsub.f32 %v2374_v25, %v6922_v31  ;;  %v2483_v48 = vsub.f32 %v2375_v8, %v6923_v4  ;;  %v6926_v54 = vld [vmem:[#allocation145_spill] sm:$0xff]  ;;  %v6927_v25 = vld [vmem:[#allocation31_spill] sm:$0xff] }
 0x599   : > { %v2656_v63 = vsub.f32 %v2396_v62, %v6924_v35  ;;  %v2397_v44 = vmul.f32 0.11111111, %v2393_v41  ;;  %v2428_v9 = vadd.f32 %v2420_v27, %v6054_v58  ;;  %v2421_v3 = vrot.slane %v2317_v6, 2  ;;  %v2219_v58 = vpop.permute.xlu0 %2218 }
 0x59a   : > { %v2623_v5 = vsel %vm440_vm2, %v2616_v32, 0.0  ;;  %v2630_v7 = vsel %vm440_vm2, %v2617_v40, 0.0  ;;  %v2506_v2 = vmul.f32 2.0, %v2482_v22  ;;  %v2507_v11 = vmul.f32 2.0, %v2483_v48  ;;  %v2309_v6 = vpop.permute.xlu1 %2308  ;;  %v6930_v32 = vld [vmem:[#allocation81_spill] sm:$0xff] }
 0x59b   : > { %v6143_v28 = vadd.f32 %v2623_v5, %v2622_v14  ;;  %v6145_v46 = vadd.f32 %v2630_v7, %v2629_v18  ;;  %v2668_v21 = vmul.f32 2.0, %v2656_v63  ;;  %v2657_v43 = vsub.f32 %v2397_v44, %v6925_v52  ;;  %v6928_v14 = vld [vmem:[#allocation75_spill] sm:$0xff]  ;;  %v6931_v22 = vld [vmem:[#allocation65_spill] sm:$0xff]  ;;  %v6932_v63 = vld [vmem:[#allocation78_spill] sm:$0xff] }
 0x59c   : > { %v2514_v36 = vadd.f32 0.0009, %v2506_v2  ;;  %v2515_v0 = vadd.f32 0.0009, %v2507_v11  ;;  %v2432_v59 = vmul.f32 0.11111111, %v2428_v9  ;;  %v2429_v13 = vadd.f32 %v2421_v3, %v6083_v45 }
 0x59d   : > { %v2672_v60 = vadd.f32 0.0009, %v2668_v21  ;;  %v2669_v61 = vmul.f32 2.0, %v2657_v43  ;;  %v2302_v49 = vadd.f32 %v2293_v23, %v6926_v54  ;;  %v2242_v15 = vadd.f32 %v2233_v55, %v2226_v38  ;;  %v6929_v18 = vld [vmem:[#allocation47_spill] sm:$0xff] }
 0x59e   : > { %v2522_v8 = vmul.f32 %v2514_v36, %v6927_v25  ;;  %v2523_v62 = vmul.f32 %v2515_v0, %v6928_v14  ;;  %v2757_v41 = vsub.f32 %v2432_v59, %v6929_v18  ;;  %v2433_v27 = vmul.f32 0.11111111, %v2429_v13  ;;  %v6933_v13 = vld [vmem:[#allocation63_spill] sm:$0xff] }
 0x59f   : > { %v2676_v40 = vmul.f32 %v2672_v60, %v6930_v32  ;;  %v2673_v31 = vadd.f32 0.0009, %v2669_v61  ;;  %v2227_v4 = vadd.f32 %v2219_v58, %v6931_v22  ;;  %v2378_v45 = vadd.f32 %v2242_v15, %v6044_v12 }
 0x5a0   : > { %v2586_v48 = vmul.f32 %v5997_v10, %v2522_v8  ;;  %v2587_v23 = vmul.f32 %v6007_v37, %v2523_v62  ;;  %v2769_v38 = vmul.f32 2.0, %v2757_v41  ;;  %v2758_v55 = vsub.f32 %v2433_v27, %v6889_v17 }
 0x5a1   : > { %v2708_v35 = vmul.f32 %v6010_v47, %v2676_v40  ;;  %v2677_v44 = vmul.f32 %v2673_v31, %v6932_v63  ;;  %v2394_v9 = vadd.f32 %v2378_v45, %v6060_v29  ;;  %v2318_v3 = vadd.f32 %v2309_v6, %v2302_v49  ;;  %v2295_v47 = vpop.permute.xlu0 %2294 }
 0x5a2   : > { %v2594_v5 = vsub.f32 1.0, %v2586_v48  ;;  %v2595_v7 = vsub.f32 1.0, %v2587_v23  ;;  %v2773_v2 = vadd.f32 0.0009, %v2769_v38  ;;  %v2770_v11 = vmul.f32 2.0, %v2758_v55  ;;  %v6934_v55 = vld [vmem:[#allocation85_spill] sm:$0xff] }
 0x5a3   : > { %v2712_v12 = vsub.f32 1.0, %v2708_v35  ;;  %v2709_v10 = vmul.f32 %v6020_v42, %v2677_v44  ;;  %v2398_v21 = vmul.f32 0.11111111, %v2394_v9  ;;  %v2422_v37 = vrot.slane %v2318_v3, 2 }
 0x5a4   : > { %v2602_v52 = vmul.f32 0.5, %v2594_v5  ;;  %v2603_v43 = vmul.f32 0.5, %v2595_v7  ;;  %v2777_v17 = vmul.f32 %v2773_v2, %v5956_v34  ;;  %v2774_v36 = vadd.f32 0.0009, %v2770_v11 }
 0x5a5   : > { %v2716_v0 = vmul.f32 0.5, %v2712_v12  ;;  %v2713_v59 = vsub.f32 1.0, %v2709_v10  ;;  %v2658_v29 = vsub.f32 %v2398_v21, %v6933_v13  ;;  %v2430_v58 = vadd.f32 %v2422_v37, %v6098_v19  ;;  %v2235_v31 = vpop.permute.xlu0 %2234  ;;  %v2311_v21 = vpop.permute.xlu1 %2310 }
 0x5a6   : > { %v2610_v60 = vmax.f32 %v2602_v52, 0.0  ;;  %v2611_v61 = vmax.f32 %v2603_v43, 0.0  ;;  %v2809_v54 = vmul.f32 %v6024_v51, %v2777_v17  ;;  %v2778_v42 = vmul.f32 %v2774_v36, %v5962_v50  ;;  %v6935_v43 = vld [vmem:[#allocation41_spill] sm:$0xff]  ;;  %v6936_v36 = vld [vmem:[#allocation136_spill] sm:$0xff] }
 0x5a7   : > { %v2720_v49 = vmax.f32 %v2716_v0, 0.0  ;;  %v2717_v15 = vmul.f32 0.5, %v2713_v59  ;;  %v2670_v25 = vmul.f32 2.0, %v2658_v29  ;;  %v2434_v8 = vmul.f32 0.11111111, %v2430_v58  ;;  %v6937_v0 = vld [vmem:[#allocation137_spill] sm:$0xff] }
 0x5a8   : > { %v2618_v34 = vmin.f32 %v2610_v60, 1.0  ;;  %v2619_v14 = vmin.f32 %v2611_v61, 1.0  ;;  %v2813_v62 = vsub.f32 1.0, %v2809_v54  ;;  %v2810_v18 = vmul.f32 %v6036_v56, %v2778_v42 }
 0x5a9   : > { %v2724_v41 = vmin.f32 %v2720_v49, 1.0  ;;  %v2721_v27 = vmax.f32 %v2717_v15, 0.0  ;;  %v2674_v6 = vadd.f32 0.0009, %v2670_v25  ;;  %v2759_v19 = vsub.f32 %v2434_v8, %v6892_v16  ;;  %v6938_v49 = vld [vmem:[#allocation50_spill] sm:$0xff] }
 0x5aa   : > { %v2625_v32 = vsel %vm440_vm2, %v2618_v34, 0.0  ;;  %v2632_v51 = vsel %vm440_vm2, %v2619_v14, 0.0  ;;  %v2817_v50 = vmul.f32 0.5, %v2813_v62  ;;  %v2814_v40 = vsub.f32 1.0, %v2810_v18  ;;  %v6940_v8 = vld [vmem:[#allocation86_spill] sm:$0xff] }
 0x5ab   : > { %v2626_v22 = vadd.f32 %v2625_v32, %v6143_v28  ;;  %v2633_v45 = vadd.f32 %v2632_v51, %v6145_v46  ;;  %v2729_v48 = vsel %vm2728_vm5, %v2724_v41, 0.0  ;;  %v2725_v56 = vmin.f32 %v2721_v27, 1.0  ;;  %v3138_v51 = vpop.eup %3137 }
 0x5ac   : > { %v2821_v23 = vmax.f32 %v2817_v50, 0.0  ;;  %v2818_v38 = vmul.f32 0.5, %v2814_v40  ;;  %v2678_v35 = vmul.f32 %v2674_v6, %v6934_v55  ;;  %v2771_v16 = vmul.f32 2.0, %v2759_v19 }
 0x5ad   : > { %v2634_v63 = vmul.f32 0.25, %v2626_v22  ;;  %v2635_v44 = vmul.f32 0.25, %v2633_v45  ;;  %v2730_v9 = vsel %vm2728_vm5, %v2725_v56, 0.0  ;;  %v2243_v3 = vadd.f32 %v2235_v31, %v2227_v4 }
 0x5ae   : > { %v2731_v5 = vadd.f32 %v2730_v9, %v2729_v48  ;;  %v2825_v7 = vmin.f32 %v2821_v23, 1.0  ;;  %v2822_v2 = vmax.f32 %v2818_v38, 0.0  ;;  %v2710_v28 = vmul.f32 %v6048_v57, %v2678_v35 }
 0x5af   : > { %v2838_v46 = vmul.f32 0.85, %v2634_v63  ;;  %v2839_v11 = vmul.f32 0.85, %v2635_v44  ;;  %v2775_v12 = vadd.f32 0.0009, %v2771_v16  ;;  %v2379_v10 = vadd.f32 %v2243_v3, %v6094_v20 }
 0x5b0   : > { %v2826_v37 = vmin.f32 %v2822_v2, 1.0  ;;  %v2714_v52 = vsub.f32 1.0, %v2710_v28  ;;  %v2303_v17 = vadd.f32 %v2295_v47, %v6935_v43  ;;  %v2830_v29 = vsel %vm2829_vm6, %v2825_v7, 0.0 }
 0x5b1   : > { %v2842_v4 = vadd.f32 %v6936_v36, %v2838_v46  ;;  %v2843_v59 = vadd.f32 %v6937_v0, %v2839_v11  ;;  %v2779_v13 = vmul.f32 %v2775_v12, %v5968_v33  ;;  %v2395_v57 = vadd.f32 %v2379_v10, %v6105_v24 }
 0x5b2   : > { %v2831_v58 = vsel %vm2829_vm6, %v2826_v37, 0.0  ;;  %v2718_v20 = vmul.f32 0.5, %v2714_v52  ;;  %v2319_v60 = vadd.f32 %v2311_v21, %v2303_v17  ;;  %v2804_v1 = vadd.f32 1e-07, %v6042_v53 }
 0x5b3   : > { %v2832_v61 = vadd.f32 %v2831_v58, %v2830_v29  ;;  %v2811_v54 = vmul.f32 %v6078_v26, %v2779_v13  ;;  %v2399_v47 = vmul.f32 0.11111111, %v2395_v57  ;;  %2844 = vst.msk [vmem:[%s6190_s30] sm:$0xff] %vm440_vm2, %v2842_v4  ;;  %2845 = vst.msk [vmem:[%s6190_s30 + $0x8] sm:$0xff] %vm440_vm2, %v2843_v59  ;;  %v2415_v24 = vadd.f32 %v6112_v39, %v6101_v30  ;;  %v6939_v26 = vld [vmem:[#allocation17_spill] sm:$0xff] }
 0x5b4   : > { %v2722_v33 = vmax.f32 %v2718_v20, 0.0  ;;  %v2423_v42 = vrot.slane %v2319_v60, 2  ;;  %v2663_v15 = vmul.f32 2.0, %v6938_v49  ;;  %v2748_v34 = vmul.f32 %v6940_v8, %v6939_v26 }
 0x5b5   : > { %v2815_v53 = vsub.f32 1.0, %v2811_v54  ;;  %v2659_v25 = vsub.f32 %v2399_v47, %v6938_v49  ;;  %3139 = vrcp.f32 %v2804_v1  ;;  %v2851_v17 = vrot.slane %v6937_v0, 1 }
 0x5b6   : > { %v2726_v14 = vmin.f32 %v2722_v33, 1.0  ;;  %v2431_v62 = vadd.f32 %v2423_v42, %v2415_v24  ;;  %v2667_v19 = vadd.f32 0.0001, %v2663_v15  ;;  %v2764_v50 = vmul.f32 2.0, %v2748_v34 }
 0x5b7   : > { %v2819_v18 = vmul.f32 0.5, %v2815_v53  ;;  %v2671_v41 = vmul.f32 2.0, %v2659_v25 }
 0x5b8   : > { %v2732_v27 = vsel %vm2728_vm5, %v2726_v14, 0.0  ;;  %v2435_v6 = vmul.f32 0.11111111, %v2431_v62  ;;  %v2768_v23 = vadd.f32 0.0001, %v2764_v50 }
 0x5b9   : > { %v2733_v32 = vadd.f32 %v2732_v27, %v2731_v5  ;;  %v2823_v30 = vmax.f32 %v2819_v18, 0.0  ;;  %v2675_v39 = vadd.f32 0.0009, %v2671_v41 }
 0x5ba   : > { %v2760_v40 = vsub.f32 %v2435_v6, %v2748_v34 }
 0x5bb   : > { %v2827_v31 = vmin.f32 %v2823_v30, 1.0  ;;  %v2679_v22 = vmul.f32 %v2675_v39, %v2667_v19 }
 0x5bc   : > { %v2772_v45 = vmul.f32 2.0, %v2760_v40 }
 0x5bd   : > { %v2833_v48 = vsel %vm2829_vm6, %v2827_v31, 0.0  ;;  %v2711_v56 = vmul.f32 %v3138_v51, %v2679_v22 }
 0x5be   : > { %v2834_v38 = vadd.f32 %v2833_v48, %v2832_v61  ;;  %v2776_v55 = vadd.f32 0.0009, %v2772_v45 }
 0x5bf   : > { %v2715_v35 = vsub.f32 1.0, %v2711_v56  ;;  %v3140_v63 = vpop.eup %3139 }
 0x5c0   : > { %v2780_v16 = vmul.f32 %v2776_v55, %v2768_v23 }
 0x5c1   : > { %v2719_v44 = vmul.f32 0.5, %v2715_v35 }
 0x5c2   : > { %v2812_v9 = vmul.f32 %v3140_v63, %v2780_v16 }
 0x5c3   : > { %v2723_v3 = vmax.f32 %v2719_v44, 0.0 }
 0x5c4   : > { %v2816_v5 = vsub.f32 1.0, %v2812_v9 }
 0x5c5   : > { %v2727_v7 = vmin.f32 %v2723_v3, 1.0 }
 0x5c6   : > { %v2820_v2 = vmul.f32 0.5, %v2816_v5 }
 0x5c7   : > { %v2734_v28 = vsel %vm2728_vm5, %v2727_v7, 0.0 }
 0x5c8   : > { %v2735_v46 = vadd.f32 %v2734_v28, %v2733_v32  ;;  %v2824_v11 = vmax.f32 %v2820_v2, 0.0 }
 0x5ca   : > { %v2736_v12 = vmul.f32 0.25, %v2735_v46  ;;  %v2828_v10 = vmin.f32 %v2824_v11, 1.0 }
 0x5cc   : > { %v2846_v21 = vmul.f32 0.85, %v2736_v12  ;;  %v2835_v37 = vsel %vm2829_vm6, %v2828_v10, 0.0 }
 0x5cd   : > { %v2836_v52 = vadd.f32 %v2835_v37, %v2834_v38 }
 0x5ce   : > { %v2847_v43 = vadd.f32 %v2846_v21, %v6936_v36 }
 0x5cf   : > { %v2837_v4 = vmul.f32 0.25, %v2836_v52 }
 0x5d0   : > { %2848 = vst.msk [vmem:[%s6190_s30] sm:$0x1] %vm2728_vm5, %v2847_v43 }
 0x5d1   : > { %v2849_v59 = vmul.f32 0.85, %v2837_v4 }
 0x5d3   : > { %v2853_v13 = vadd.f32 %v2851_v17, %v2849_v59 }
 0x5d5   : > { %2854 = vst.msk [vmem:[%s6190_s30 + $0x9] sm:$0x40] %vm2829_vm6, %v2853_v13 }
 0x5d6   : > { %3230 = shalt.err (!%p3227_p1)
}
 0x5d7   : > { %s3231_s4 = scalar_lea.hbm %s6215_s28, 256  ;;  %s3235_s22 = scalar_lea.hbm %s6271_s3, 512 }
 0x5d8   : > { %p3232_p6 = scmp.ne.s32.totalorder %s6215_s28, %s3231_s4  ;;  %p3236_p4 = scmp.lt.u32.totalorder %s6215_s28, %s6271_s3 }
 0x5d9   : > { %p3237_p8 = scmp.lt.u32.totalorder %s3235_s22, %s3231_s4  ;;  %p3239_p3 = scmp.lt.u32.totalorder %s3231_s4, %s6215_s28 }
 0x5da   : > { %p3233_p2 = pnand %p3232_p6, %p6941_p12 }
 0x5db   : > { %p3238_p0 = por %p3237_p8, %p3236_p4 }
 0x5dc   : > { %p3234_p5 = pneg %p3233_p2 }
 0x5dd   : > { %p3240_p13 = por %p3239_p3, %p3238_p0 }
 0x5df   : > { %p3241_p7 = pnand %p3240_p13, %p3234_p5 }
 0x5e1   : > { %3244 = shalt.err (!%p3241_p7)
}
 0x5e2   : > { %s3314_s30 = smov 128   ;;  %s3315_s10 = smov 8  }
 0x5e3   : > { %3038 = dma.vmem_to_hbm [thread:$0]  (%p6941_p12), %s6217_s18, 256, %s6215_s28, %s2856_s11, %s3314_s30, %s3314_s30, %s3315_s10  }
 0x5e4 PF: > { %s2886_s21 = sand.u32 1, %s3283_s12   ;;  %p6942_p10 = scmp.ne.s32.totalorder %s6422_s27, 0 }
 0x5e5   : > { %p6943_p9 = scmp.ge.s32.totalorder %s3303_s17, 2  ;;  %s2887_s9 = scalar_lea.sflag [#allocation4], %s2886_s21 }
 0x5e7   : > { %p3048_p11 = pnand %p6943_p9, %p6942_p10 }
 0x5e9   : > { %3278 = dma.done.wait (!%p3048_p11), %s2887_s9, 256  }
 0x5ea   : > { %3280 = vsyncadd (!%p3048_p11), %s2887_s9, 4294967040  ;;  %s22_s17 = sadd.s32 1, %s3303_s17   ;;  %s6944_s12 = smov %s3287_s13 }
 0x5eb   : > { %p19_p1 = scmp.ge.s32.totalorder %s22_s17, 4   ;;  %s6945_s13 = smov %s3291_s14 }
 0x5ec   : > { %s6946_s14 = smov %s3392_s26  ;;  %s6947_s15 = smov %s3299_s16 }
 0x5ed   : > { %s6948_s16 = smov %s6950_s20  ;;  %21 = sbr.rel (!%p19_p1) target bundleno = 8 (0x8), region = 93 }
 0x5f4   :  { %2892 = vsyncpa [#allocation3], 1 }
 0x5f5   :  { %2894 = vsyncpa [#allocation3 + $0x1], 1 }
 0x5f6   :  { %2895 = vsyncpa [#allocation6], 1 }
 0x5f7   :  { %2897 = vsyncpa [#allocation6 + $0x1], 1 }
 0x5f8   :  { %2898 = vsyncpa [#allocation4], 1 }
 0x5f9   :  { %2900 = vsyncpa [#allocation4 + $0x1], 1 }

</bundles_post_ra>
